<compile_context>
chip_gen: v7x
topology: tpu7x:2x2x1
jax: 0.10.0
libtpu: 0.0.40
codegen_flags: <defaults>
</compile_context>

<pallas_src>
import functools

import jax
import jax.numpy as jnp
from jax.experimental import pallas as pl
from jax.experimental.pallas import tpu as pltpu


# ---------------------------------------------------------------------------
# Pallas kernels
# ---------------------------------------------------------------------------
def _ln_kernel(x_ref, g_ref, b_ref, o_ref, *, eps):
    """o = LayerNorm(x) * gamma + beta   (reduction over the lane axis)."""
    x = x_ref[...].astype(jnp.float32)
    mu = jnp.mean(x, axis=-1, keepdims=True)
    xc = x - mu
    var = jnp.mean(xc * xc, axis=-1, keepdims=True)
    y = xc * jax.lax.rsqrt(var + eps) * g_ref[...] + b_ref[...]
    o_ref[...] = y.astype(o_ref.dtype)


def layernorm(x, gamma2d, beta2d, *, rows_per_block, out_dtype=jnp.bfloat16, eps=1e-5):
    M, H = x.shape
    assert M % rows_per_block == 0
    return pl.pallas_call(
        functools.partial(_ln_kernel, eps=eps),
        out_shape=jax.ShapeDtypeStruct((M, H), out_dtype),
        grid=(M // rows_per_block,),
        in_specs=[
            pl.BlockSpec((rows_per_block, H), lambda i: (i, 0)),
            pl.BlockSpec((1, H), lambda i: (0, 0)),
            pl.BlockSpec((1, H), lambda i: (0, 0)),
        ],
        out_specs=pl.BlockSpec((rows_per_block, H), lambda i: (i, 0)),
        compiler_params=pltpu.CompilerParams(dimension_semantics=("parallel",)),
    )(x, gamma2d, beta2d)


def _encoder_layer_kernel(x_ref, mask_ref,
                          wqkv_ref, bqkv_ref, wo_ref, bo_ref,
                          ln1g_ref, ln1b_ref,
                          wi_ref, bi_ref, wf_ref, bf_ref,
                          ln2g_ref, ln2b_ref,
                          o_ref, *, n_heads, head_dim, scale, eps):
    """One fully-fused transformer encoder layer for a single batch element."""
    S = x_ref.shape[0]
    H = n_heads * head_dim
    dH = head_dim

    def layer_norm(v, g, b):
        mu = jnp.mean(v, axis=-1, keepdims=True)
        vc = v - mu
        var = jnp.mean(vc * vc, axis=-1, keepdims=True)
        return vc * jax.lax.rsqrt(var + eps) * g + b

    x_bf = x_ref[...]                       # (S, H) bf16 hidden state (MXU operand)
    x = x_bf.astype(jnp.float32)            # f32 copy for residual / LN statistics
    mask = mask_ref[...]                    # (1, 1, S) additive key mask, f32

    # ---- fused QKV projection: one wide bf16 MXU matmul (K=H, N=3H) ----
    qkv = jnp.dot(x_bf, wqkv_ref[...],
                  preferred_element_type=jnp.float32) + bqkv_ref[...]    # (S, 3H)
    qkv_bf = qkv.astype(jnp.bfloat16)

    # ---- head-batched attention ----
    # Per-head slices start on 128-lane boundaries (head_dim % 128 == 0 here), so
    # no relayout copies; scores / context use batched einsums and the softmax
    # vector work (max / exp / sum / reciprocal) runs once over all heads.
    q3 = jnp.stack([qkv_bf[:, h * dH:(h + 1) * dH] for h in range(n_heads)], axis=0)
    k3 = jnp.stack([qkv_bf[:, H + h * dH:H + (h + 1) * dH] for h in range(n_heads)], axis=0)
    v3 = jnp.stack([qkv_bf[:, 2 * H + h * dH:2 * H + (h + 1) * dH] for h in range(n_heads)], axis=0)

    s = jnp.einsum('hqd,hkd->hqk', q3, k3,
                   preferred_element_type=jnp.float32) * scale           # (nH, S, S)
    s = s + mask
    s = s - jnp.max(s, axis=-1, keepdims=True)
    p = jnp.exp(s)
    # EUP approx reciprocal keeps the divide off the VALU critical path.
    p = p * pl.reciprocal(jnp.sum(p, axis=-1, keepdims=True), approx=True)

    ctx3 = jnp.einsum('hqk,hkd->hqd', p.astype(jnp.bfloat16), v3,
                      preferred_element_type=jnp.float32)                # (nH, S, dH)
    # Concatenate heads along lanes -> one full-depth (K=H) output projection.
    ctx = jnp.concatenate([ctx3[h] for h in range(n_heads)], axis=-1)    # (S, H)
    attn = jnp.dot(ctx.astype(jnp.bfloat16), wo_ref[...],
                   preferred_element_type=jnp.float32) + bo_ref[...]

    x = layer_norm(attn + x, ln1g_ref[...], ln1b_ref[...])

    # ---- FFN with fused GELU epilogue (intermediate stays on-chip) ----
    inter = jnp.dot(x.astype(jnp.bfloat16), wi_ref[...],
                    preferred_element_type=jnp.float32) + bi_ref[...]
    # TODO(synk): HF RoBERTa uses exact erf GELU; tanh approximation kept here
    # for guaranteed EUP lowering on all TPU generations.
    c = jnp.float32(0.7978845608028654)  # sqrt(2/pi)
    inter = 0.5 * inter * (1.0 + jnp.tanh(c * (inter + 0.044715 * inter * inter * inter)))
    ffn = jnp.dot(inter.astype(jnp.bfloat16), wf_ref[...],
                  preferred_element_type=jnp.float32) + bf_ref[...]
    x = layer_norm(ffn + x, ln2g_ref[...], ln2b_ref[...])

    o_ref[...] = x.astype(o_ref.dtype)


def encoder_layer(x, add_mask, lyr, cfg, *, batch, seq):
    H, I = cfg["hidden"], cfg["intermediate"]
    nH, dH = cfg["n_heads"], cfg["head_dim"]
    scale = 1.0 / float(dH) ** 0.5

    kernel = functools.partial(_encoder_layer_kernel, n_heads=nH, head_dim=dH,
                               scale=scale, eps=1e-5)

    # TODO(synk): at real shapes these constant-index weight blocks should be
    # single-buffered (pipeline_mode=pl.Buffered(1)) and K/N-tiled; at the demo
    # shapes they fit VMEM trivially.
    def wspec(shape):
        return pl.BlockSpec(shape, lambda b: (0, 0))

    flops = batch * (2 * seq * H * 3 * H                  # QKV proj
                     + nH * 4 * seq * seq * dH            # QK^T + PV
                     + 2 * seq * H * H                    # fused o-proj
                     + 4 * seq * H * I)                   # FFN
    cost = pl.CostEstimate(
        flops=flops,
        transcendentals=batch * (nH * seq * seq + seq * I),
        bytes_accessed=(2 * batch * seq * H * 2           # x in/out (bf16)
                        + 2 * (3 * H * H + H * H + 2 * H * I)),  # bf16 weights
    )

    return pl.pallas_call(
        kernel,
        out_shape=jax.ShapeDtypeStruct((batch * seq, H), jnp.bfloat16),
        grid=(batch,),
        in_specs=[
            pl.BlockSpec((seq, H), lambda b: (b, 0)),          # hidden state rows
            pl.BlockSpec((1, 1, seq), lambda b: (b, 0, 0)),    # additive key mask
            wspec((H, 3 * H)), wspec((1, 3 * H)),              # Wqkv, bqkv
            wspec((H, H)), wspec((1, H)),                      # Wo, bo
            wspec((1, H)), wspec((1, H)),                      # ln1 gamma, beta
            wspec((H, I)), wspec((1, I)),                      # Wi, bi
            wspec((I, H)), wspec((1, H)),                      # Wf, bf
            wspec((1, H)), wspec((1, H)),                      # ln2 gamma, beta
        ],
        out_specs=pl.BlockSpec((seq, H), lambda b: (b, 0)),
        compiler_params=pltpu.CompilerParams(dimension_semantics=("parallel",)),
        cost_estimate=cost,
    )(x, add_mask,
      lyr["wqkv"], lyr["bqkv"], lyr["wo"], lyr["bo"],
      lyr["ln1_g"], lyr["ln1_b"],
      lyr["wi"], lyr["bi"], lyr["wf"], lyr["bf"],
      lyr["ln2_g"], lyr["ln2_b"])


# ---------------------------------------------------------------------------
# Model (synthetic small RoBERTa + classifier head)
# ---------------------------------------------------------------------------
CFG = dict(
    vocab_size=100,
    max_pos=16,
    type_vocab=2,
    hidden=256,
    n_heads=2,
    head_dim=128,        # multiple of 128 -> lane-aligned head slices / ctx concat
    intermediate=1024,
    n_layers=2,
    num_labels=5,
    pad_id=1,
)


def init_params(key, cfg):
    """Kernel-ready parameters: fused bf16 QKV weight, (1, N) biases / LN params."""
    def nrm(k, shape, scale=0.02):
        return scale * jax.random.normal(k, shape, dtype=jnp.float32)

    keys = iter(jax.random.split(key, 128))
    H, I = cfg["hidden"], cfg["intermediate"]
    p = {
        "word_emb": nrm(next(keys), (cfg["vocab_size"], H)),
        "pos_emb": nrm(next(keys), (cfg["max_pos"], H)),
        "type_emb": nrm(next(keys), (cfg["type_vocab"], H)),
        "emb_ln_g": jnp.ones((1, H), jnp.float32),
        "emb_ln_b": jnp.zeros((1, H), jnp.float32),
        "cls_w": nrm(next(keys), (H, cfg["num_labels"])),
        "cls_b": jnp.zeros((cfg["num_labels"],), jnp.float32),
        "layers": [],
    }
    for _ in range(cfg["n_layers"]):
        lyr = {
            "wqkv": nrm(next(keys), (H, 3 * H)).astype(jnp.bfloat16),
            "bqkv": jnp.zeros((1, 3 * H), jnp.float32),
            "wo": nrm(next(keys), (H, H)).astype(jnp.bfloat16),
            "bo": jnp.zeros((1, H), jnp.float32),
            "ln1_g": jnp.ones((1, H), jnp.float32),
            "ln1_b": jnp.zeros((1, H), jnp.float32),
            "wi": nrm(next(keys), (H, I)).astype(jnp.bfloat16),
            "bi": jnp.zeros((1, I), jnp.float32),
            "wf": nrm(next(keys), (I, H)).astype(jnp.bfloat16),
            "bf": jnp.zeros((1, H), jnp.float32),
            "ln2_g": jnp.ones((1, H), jnp.float32),
            "ln2_b": jnp.zeros((1, H), jnp.float32),
        }
        p["layers"].append(lyr)
    return p


def roberta_position_ids(input_ids, pad_id):
    # RoBERTa: positions start at pad_id + 1 for non-pad tokens.
    mask = (input_ids != pad_id).astype(jnp.int32)
    return jnp.cumsum(mask, axis=1) * mask + pad_id


def forward(params, input_ids, attention_mask, token_type_ids, cfg):
    B, S = input_ids.shape
    H = cfg["hidden"]

    # ---- embeddings (gather is glue, done in plain JAX) ----
    pos_ids = roberta_position_ids(input_ids, cfg["pad_id"])
    emb = (jnp.take(params["word_emb"], input_ids, axis=0)
           + jnp.take(params["pos_emb"], pos_ids, axis=0)
           + jnp.take(params["type_emb"], token_type_ids, axis=0))       # (B,S,H)
    x = emb.reshape(B * S, H)
    # Embedding LayerNorm: one large row block per grid step; bf16 output so the
    # hidden state travels through HBM in bf16 between layers.
    rows = B * S
    rpb = rows if rows <= 512 else 512
    assert rows % rpb == 0
    x = layernorm(x, params["emb_ln_g"], params["emb_ln_b"], rows_per_block=rpb)
    # dropout(0.1): identity in eval/inference mode.

    add_mask = ((1.0 - attention_mask.astype(jnp.float32)) * -1e9).reshape(B, 1, S)

    for lyr in params["layers"]:
        x = encoder_layer(x, add_mask, lyr, cfg, batch=B, seq=S)

    hidden_state = x.reshape(B, S, H)
    pooler = hidden_state[:, 0]          # take <s> / CLS token
    # self.dropout(pooler): identity in eval mode.
    # Classifier (num_labels=5 lanes) kept in plain JAX — far too narrow to
    # amortize a pallas_call / lane-dense store.
    logits = pooler.astype(jnp.float32) @ params["cls_w"] + params["cls_b"]
    return logits                        # (B, num_labels)


# ---------------------------------------------------------------------------
if __name__ == "__main__":
    key = jax.random.PRNGKey(0)
    k_param, k_ids = jax.random.split(key)

    B, S = 2, 8
    params = init_params(k_param, CFG)

    input_ids = jax.random.randint(k_ids, (B, S), 3, CFG["vocab_size"], dtype=jnp.int32)
    # pad out the last two tokens of the second sequence
    input_ids = input_ids.at[1, -2:].set(CFG["pad_id"])
    attention_mask = jnp.ones((B, S), dtype=jnp.int32).at[1, -2:].set(0)
    token_type_ids = jnp.zeros((B, S), dtype=jnp.int32)

    fwd = jax.jit(functools.partial(forward, cfg=CFG))
    logits = fwd(params, input_ids, attention_mask, token_type_ids)
    logits = jax.block_until_ready(logits)
    assert logits.shape == (B, CFG["num_labels"])
    assert bool(jnp.all(jnp.isfinite(logits)))
    print("KERNEL_OK")
</pallas_src>

<mosaic_0001>
module attributes {stable_mosaic.version = 11 : i64} {
  func.func @_ln_kernel(%arg0: i32, %arg1: memref<16x256xf32, #tpu.memory_space<vmem>>, %arg2: memref<1x256xf32, #tpu.memory_space<vmem>>, %arg3: memref<1x256xf32, #tpu.memory_space<vmem>>, %arg4: memref<16x256xbf16, #tpu.memory_space<vmem>>) attributes {dimension_semantics = [#tpu.dimension_semantics<parallel>], iteration_bounds = array<i64: 1>, scalar_prefetch = 0 : i64, scratch_operands = 0 : i64, tpu.core_type = #tpu.core_type<tc>, window_params = [{transform_indices = @transform_0, window_bounds = array<i64: 16, 256>}, {pipeline_mode = #tpu.pipeline_mode<synchronous>, transform_indices = @transform_1, window_bounds = array<i64: 1, 256>}, {pipeline_mode = #tpu.pipeline_mode<synchronous>, transform_indices = @transform_2, window_bounds = array<i64: 1, 256>}, {transform_indices = @transform_3, window_bounds = array<i64: 16, 256>}]} {
    %c0 = arith.constant 0 : index
    %c0_0 = arith.constant 0 : index
    %0 = vector.load %arg1[%c0, %c0_0] : memref<16x256xf32, #tpu.memory_space<vmem>>, vector<16x256xf32>
    %cst = arith.constant dense<0.000000e+00> : vector<16xf32>
    %1 = vector.multi_reduction <add>, %0, %cst [1] : vector<16x256xf32> to vector<16xf32>
    %2 = vector.shape_cast %1 : vector<16xf32> to vector<16x1xf32>
    %cst_1 = arith.constant 2.560000e+02 : f32
    %3 = vector.broadcast %cst_1 : f32 to vector<16x1xf32>
    %4 = arith.divf %2, %3 : vector<16x1xf32>
    %5 = vector.broadcast %4 : vector<16x1xf32> to vector<16x256xf32>
    %6 = arith.subf %0, %5 : vector<16x256xf32>
    %7 = arith.mulf %6, %6 : vector<16x256xf32>
    %cst_2 = arith.constant dense<0.000000e+00> : vector<16xf32>
    %8 = vector.multi_reduction <add>, %7, %cst_2 [1] : vector<16x256xf32> to vector<16xf32>
    %9 = vector.shape_cast %8 : vector<16xf32> to vector<16x1xf32>
    %cst_3 = arith.constant 2.560000e+02 : f32
    %10 = vector.broadcast %cst_3 : f32 to vector<16x1xf32>
    %11 = arith.divf %9, %10 : vector<16x1xf32>
    %cst_4 = arith.constant 9.99999974E-6 : f32
    %12 = vector.broadcast %cst_4 : f32 to vector<16x1xf32>
    %13 = arith.addf %11, %12 : vector<16x1xf32>
    %14 = math.rsqrt %13 : vector<16x1xf32>
    %15 = vector.broadcast %14 : vector<16x1xf32> to vector<16x256xf32>
    %16 = arith.mulf %6, %15 : vector<16x256xf32>
    %c0_5 = arith.constant 0 : index
    %c0_6 = arith.constant 0 : index
    %17 = vector.load %arg2[%c0_5, %c0_6] : memref<1x256xf32, #tpu.memory_space<vmem>>, vector<1x256xf32>
    %18 = vector.broadcast %17 : vector<1x256xf32> to vector<16x256xf32>
    %19 = arith.mulf %16, %18 : vector<16x256xf32>
    %c0_7 = arith.constant 0 : index
    %c0_8 = arith.constant 0 : index
    %20 = vector.load %arg3[%c0_7, %c0_8] : memref<1x256xf32, #tpu.memory_space<vmem>>, vector<1x256xf32>
    %21 = vector.broadcast %20 : vector<1x256xf32> to vector<16x256xf32>
    %22 = arith.addf %19, %21 : vector<16x256xf32>
    %23 = arith.truncf %22 : vector<16x256xf32> to vector<16x256xbf16>
    %c0_9 = arith.constant 0 : index
    %c0_10 = arith.constant 0 : index
    %24 = vector.load %arg4[%c0_9, %c0_10] : memref<16x256xbf16, #tpu.memory_space<vmem>>, vector<16x256xbf16>
    tpu.vector_store %arg4[%c0_9, %c0_10], %23 {strides = array<i32>} : memref<16x256xbf16, #tpu.memory_space<vmem>>, vector<16x256xbf16>,
    return
  }
  func.func @transform_0(%arg0: i32) -> (i32, i32) {
    %c0_i32 = arith.constant 0 : i32
    %c0_i32_0 = arith.constant 0 : i32
    return %arg0, %c0_i32 : i32, i32
  }
  func.func @transform_1(%arg0: i32) -> (i32, i32) {
    %c0_i32 = arith.constant 0 : i32
    %c0_i32_0 = arith.constant 0 : i32
    %c0_i32_1 = arith.constant 0 : i32
    return %c0_i32, %c0_i32_0 : i32, i32
  }
  func.func @transform_2(%arg0: i32) -> (i32, i32) {
    %c0_i32 = arith.constant 0 : i32
    %c0_i32_0 = arith.constant 0 : i32
    %c0_i32_1 = arith.constant 0 : i32
    return %c0_i32, %c0_i32_0 : i32, i32
  }
  func.func @transform_3(%arg0: i32) -> (i32, i32) {
    %c0_i32 = arith.constant 0 : i32
    %c0_i32_0 = arith.constant 0 : i32
    return %arg0, %c0_i32 : i32, i32
  }
}

module attributes {stable_mosaic.version = 11 : i64} {
  func.func @_encoder_layer_kernel(%arg0: i32, %arg1: memref<8x256xbf16, #tpu.memory_space<vmem>>, %arg2: memref<1x1x8xf32, #tpu.memory_space<vmem>>, %arg3: memref<256x768xbf16, #tpu.memory_space<vmem>>, %arg4: memref<1x768xf32, #tpu.memory_space<vmem>>, %arg5: memref<256x256xbf16, #tpu.memory_space<vmem>>, %arg6: memref<1x256xf32, #tpu.memory_space<vmem>>, %arg7: memref<1x256xf32, #tpu.memory_space<vmem>>, %arg8: memref<1x256xf32, #tpu.memory_space<vmem>>, %arg9: memref<256x1024xbf16, #tpu.memory_space<vmem>>, %arg10: memref<1x1024xf32, #tpu.memory_space<vmem>>, %arg11: memref<1024x256xbf16, #tpu.memory_space<vmem>>, %arg12: memref<1x256xf32, #tpu.memory_space<vmem>>, %arg13: memref<1x256xf32, #tpu.memory_space<vmem>>, %arg14: memref<1x256xf32, #tpu.memory_space<vmem>>, %arg15: memref<8x256xbf16, #tpu.memory_space<vmem>>) attributes {dimension_semantics = [#tpu.dimension_semantics<parallel>], iteration_bounds = array<i64: 2>, scalar_prefetch = 0 : i64, scratch_operands = 0 : i64, tpu.core_type = #tpu.core_type<tc>, window_params = [{transform_indices = @transform_0, window_bounds = array<i64: 8, 256>}, {transform_indices = @transform_1, window_bounds = array<i64: 1, 1, 8>}, {pipeline_mode = #tpu.pipeline_mode<synchronous>, transform_indices = @transform_2, window_bounds = array<i64: 256, 768>}, {pipeline_mode = #tpu.pipeline_mode<synchronous>, transform_indices = @transform_3, window_bounds = array<i64: 1, 768>}, {pipeline_mode = #tpu.pipeline_mode<synchronous>, transform_indices = @transform_4, window_bounds = array<i64: 256, 256>}, {pipeline_mode = #tpu.pipeline_mode<synchronous>, transform_indices = @transform_5, window_bounds = array<i64: 1, 256>}, {pipeline_mode = #tpu.pipeline_mode<synchronous>, transform_indices = @transform_6, window_bounds = array<i64: 1, 256>}, {pipeline_mode = #tpu.pipeline_mode<synchronous>, transform_indices = @transform_7, window_bounds = array<i64: 1, 256>}, {pipeline_mode = #tpu.pipeline_mode<synchronous>, transform_indices = @transform_8, window_bounds = array<i64: 256, 1024>}, {pipeline_mode = #tpu.pipeline_mode<synchronous>, transform_indices = @transform_9, window_bounds = array<i64: 1, 1024>}, {pipeline_mode = #tpu.pipeline_mode<synchronous>, transform_indices = @transform_10, window_bounds = array<i64: 1024, 256>}, {pipeline_mode = #tpu.pipeline_mode<synchronous>, transform_indices = @transform_11, window_bounds = array<i64: 1, 256>}, {pipeline_mode = #tpu.pipeline_mode<synchronous>, transform_indices = @transform_12, window_bounds = array<i64: 1, 256>}, {pipeline_mode = #tpu.pipeline_mode<synchronous>, transform_indices = @transform_13, window_bounds = array<i64: 1, 256>}, {transform_indices = @transform_14, window_bounds = array<i64: 8, 256>}]} {
    %c0 = arith.constant 0 : index
    %c0_0 = arith.constant 0 : index
    %0 = vector.load %arg1[%c0, %c0_0] : memref<8x256xbf16, #tpu.memory_space<vmem>>, vector<8x256xbf16>
    %1 = arith.extf %0 : vector<8x256xbf16> to vector<8x256xf32>
    %c0_1 = arith.constant 0 : index
    %c0_2 = arith.constant 0 : index
    %c0_3 = arith.constant 0 : index
    %2 = vector.load %arg2[%c0_1, %c0_2, %c0_3] : memref<1x1x8xf32, #tpu.memory_space<vmem>>, vector<1x1x8xf32>
    %c0_4 = arith.constant 0 : index
    %c0_5 = arith.constant 0 : index
    %3 = vector.load %arg3[%c0_4, %c0_5] : memref<256x768xbf16, #tpu.memory_space<vmem>>, vector<256x768xbf16>
    %cst = arith.constant dense<0.000000e+00> : vector<8x768xf32>
    %4 = tpu.matmul %0, %3, %cst {dimension_numbers = #tpu.dot_dimension_numbers<[1], [0], [0], [1], [0, 0, 1, 1], [], []>} : vector<8x256xbf16>, vector<256x768xbf16>, vector<8x768xf32> -> vector<8x768xf32>
    %c0_6 = arith.constant 0 : index
    %c0_7 = arith.constant 0 : index
    %5 = vector.load %arg4[%c0_6, %c0_7] : memref<1x768xf32, #tpu.memory_space<vmem>>, vector<1x768xf32>
    %6 = vector.broadcast %5 : vector<1x768xf32> to vector<8x768xf32>
    %7 = arith.addf %4, %6 : vector<8x768xf32>
    %8 = arith.truncf %7 : vector<8x768xf32> to vector<8x768xbf16>
    %9 = vector.extract_strided_slice %8 {offsets = [0, 0], sizes = [8, 128], strides = [1, 1]} : vector<8x768xbf16> to vector<8x128xbf16>
    %10 = vector.extract_strided_slice %8 {offsets = [0, 128], sizes = [8, 128], strides = [1, 1]} : vector<8x768xbf16> to vector<8x128xbf16>
    %11 = vector.shape_cast %9 : vector<8x128xbf16> to vector<1x8x128xbf16>
    %12 = vector.shape_cast %10 : vector<8x128xbf16> to vector<1x8x128xbf16>
    %13 = tpu.concatenate %11, %12 in 0 : vector<1x8x128xbf16>, vector<1x8x128xbf16> -> vector<2x8x128xbf16>
    %14 = vector.extract_strided_slice %8 {offsets = [0, 256], sizes = [8, 128], strides = [1, 1]} : vector<8x768xbf16> to vector<8x128xbf16>
    %15 = vector.extract_strided_slice %8 {offsets = [0, 384], sizes = [8, 128], strides = [1, 1]} : vector<8x768xbf16> to vector<8x128xbf16>
    %16 = vector.shape_cast %14 : vector<8x128xbf16> to vector<1x8x128xbf16>
    %17 = vector.shape_cast %15 : vector<8x128xbf16> to vector<1x8x128xbf16>
    %18 = tpu.concatenate %16, %17 in 0 : vector<1x8x128xbf16>, vector<1x8x128xbf16> -> vector<2x8x128xbf16>
    %19 = vector.extract_strided_slice %8 {offsets = [0, 512], sizes = [8, 128], strides = [1, 1]} : vector<8x768xbf16> to vector<8x128xbf16>
    %20 = vector.extract_strided_slice %8 {offsets = [0, 640], sizes = [8, 128], strides = [1, 1]} : vector<8x768xbf16> to vector<8x128xbf16>
    %21 = vector.shape_cast %19 : vector<8x128xbf16> to vector<1x8x128xbf16>
    %22 = vector.shape_cast %20 : vector<8x128xbf16> to vector<1x8x128xbf16>
    %23 = tpu.concatenate %21, %22 in 0 : vector<1x8x128xbf16>, vector<1x8x128xbf16> -> vector<2x8x128xbf16>
    "tpu.trace_start"() <{level = 10 : i32, message = "hqd,hkd->hqk"}> : () -> ()
    %cst_8 = arith.constant dense<0.000000e+00> : vector<2x8x8xf32>
    %24 = tpu.matmul %13, %18, %cst_8 {dimension_numbers = #tpu.dot_dimension_numbers<[2], [2], [1], [1], [0, 0, 0, 1, 1, 1], [0], [0]>} : vector<2x8x128xbf16>, vector<2x8x128xbf16>, vector<2x8x8xf32> -> vector<2x8x8xf32>
    "tpu.trace_stop"() : () -> ()
    %cst_9 = arith.constant 0.0883883461 : f32
    %25 = vector.broadcast %cst_9 : f32 to vector<2x8x8xf32>
    %26 = arith.mulf %24, %25 : vector<2x8x8xf32>
    %27 = vector.broadcast %2 : vector<1x1x8xf32> to vector<2x8x8xf32>
    %28 = arith.addf %26, %27 : vector<2x8x8xf32>
    %cst_10 = arith.constant dense<0xFF800000> : vector<2x8xf32>
    %29 = vector.multi_reduction <maximumf>, %28, %cst_10 [2] : vector<2x8x8xf32> to vector<2x8xf32>
    %30 = vector.shape_cast %29 : vector<2x8xf32> to vector<2x8x1xf32>
    %31 = vector.broadcast %30 : vector<2x8x1xf32> to vector<2x8x8xf32>
    %32 = arith.subf %28, %31 : vector<2x8x8xf32>
    %33 = math.exp %32 : vector<2x8x8xf32>
    %cst_11 = arith.constant dense<0.000000e+00> : vector<2x8xf32>
    %34 = vector.multi_reduction <add>, %33, %cst_11 [2] : vector<2x8x8xf32> to vector<2x8xf32>
    %35 = vector.shape_cast %34 : vector<2x8xf32> to vector<2x8x1xf32>
    %36 = tpu.reciprocal %35 {approx = true} : vector<2x8x1xf32> -> vector<2x8x1xf32>
    %37 = vector.broadcast %36 : vector<2x8x1xf32> to vector<2x8x8xf32>
    %38 = arith.mulf %33, %37 : vector<2x8x8xf32>
    %39 = arith.truncf %38 : vector<2x8x8xf32> to vector<2x8x8xbf16>
    "tpu.trace_start"() <{level = 10 : i32, message = "hqk,hkd->hqd"}> : () -> ()
    %cst_12 = arith.constant dense<0.000000e+00> : vector<2x8x128xf32>
    %40 = tpu.matmul %39, %23, %cst_12 {dimension_numbers = #tpu.dot_dimension_numbers<[2], [1], [1], [2], [0, 0, 0, 1, 1, 2], [0], [0]>} : vector<2x8x8xbf16>, vector<2x8x128xbf16>, vector<2x8x128xf32> -> vector<2x8x128xf32>
    "tpu.trace_stop"() : () -> ()
    %41 = vector.extract_strided_slice %40 {offsets = [0, 0, 0], sizes = [1, 8, 128], strides = [1, 1, 1]} : vector<2x8x128xf32> to vector<1x8x128xf32>
    %42 = vector.shape_cast %41 : vector<1x8x128xf32> to vector<8x128xf32>
    %43 = vector.extract_strided_slice %40 {offsets = [1, 0, 0], sizes = [1, 8, 128], strides = [1, 1, 1]} : vector<2x8x128xf32> to vector<1x8x128xf32>
    %44 = vector.shape_cast %43 : vector<1x8x128xf32> to vector<8x128xf32>
    %45 = tpu.concatenate %42, %44 in 1 : vector<8x128xf32>, vector<8x128xf32> -> vector<8x256xf32>
    %46 = arith.truncf %45 : vector<8x256xf32> to vector<8x256xbf16>
    %c0_13 = arith.constant 0 : index
    %c0_14 = arith.constant 0 : index
    %47 = vector.load %arg5[%c0_13, %c0_14] : memref<256x256xbf16, #tpu.memory_space<vmem>>, vector<256x256xbf16>
    %cst_15 = arith.constant dense<0.000000e+00> : vector<8x256xf32>
    %48 = tpu.matmul %46, %47, %cst_15 {dimension_numbers = #tpu.dot_dimension_numbers<[1], [0], [0], [1], [0, 0, 1, 1], [], []>} : vector<8x256xbf16>, vector<256x256xbf16>, vector<8x256xf32> -> vector<8x256xf32>
    %c0_16 = arith.constant 0 : index
    %c0_17 = arith.constant 0 : index
    %49 = vector.load %arg6[%c0_16, %c0_17] : memref<1x256xf32, #tpu.memory_space<vmem>>, vector<1x256xf32>
    %50 = vector.broadcast %49 : vector<1x256xf32> to vector<8x256xf32>
    %51 = arith.addf %48, %50 : vector<8x256xf32>
    %52 = arith.addf %51, %1 : vector<8x256xf32>
    %c0_18 = arith.constant 0 : index
    %c0_19 = arith.constant 0 : index
    %53 = vector.load %arg7[%c0_18, %c0_19] : memref<1x256xf32, #tpu.memory_space<vmem>>, vector<1x256xf32>
    %c0_20 = arith.constant 0 : index
    %c0_21 = arith.constant 0 : index
    %54 = vector.load %arg8[%c0_20, %c0_21] : memref<1x256xf32, #tpu.memory_space<vmem>>, vector<1x256xf32>
    %cst_22 = arith.constant dense<0.000000e+00> : vector<8xf32>
    %55 = vector.multi_reduction <add>, %52, %cst_22 [1] : vector<8x256xf32> to vector<8xf32>
    %56 = vector.shape_cast %55 : vector<8xf32> to vector<8x1xf32>
    %cst_23 = arith.constant 2.560000e+02 : f32
    %57 = vector.broadcast %cst_23 : f32 to vector<8x1xf32>
    %58 = arith.divf %56, %57 : vector<8x1xf32>
    %59 = vector.broadcast %58 : vector<8x1xf32> to vector<8x256xf32>
    %60 = arith.subf %52, %59 : vector<8x256xf32>
    %61 = arith.mulf %60, %60 : vector<8x256xf32>
    %cst_24 = arith.constant dense<0.000000e+00> : vector<8xf32>
    %62 = vector.multi_reduction <add>, %61, %cst_24 [1] : vector<8x256xf32> to vector<8xf32>
    %63 = vector.shape_cast %62 : vector<8xf32> to vector<8x1xf32>
    %cst_25 = arith.constant 2.560000e+02 : f32
    %64 = vector.broadcast %cst_25 : f32 to vector<8x1xf32>
    %65 = arith.divf %63, %64 : vector<8x1xf32>
    %cst_26 = arith.constant 9.99999974E-6 : f32
    %66 = vector.broadcast %cst_26 : f32 to vector<8x1xf32>
    %67 = arith.addf %65, %66 : vector<8x1xf32>
    %68 = math.rsqrt %67 : vector<8x1xf32>
    %69 = vector.broadcast %68 : vector<8x1xf32> to vector<8x256xf32>
    %70 = arith.mulf %60, %69 : vector<8x256xf32>
    %71 = vector.broadcast %53 : vector<1x256xf32> to vector<8x256xf32>
    %72 = arith.mulf %70, %71 : vector<8x256xf32>
    %73 = vector.broadcast %54 : vector<1x256xf32> to vector<8x256xf32>
    %74 = arith.addf %72, %73 : vector<8x256xf32>
    %75 = arith.truncf %74 : vector<8x256xf32> to vector<8x256xbf16>
    %c0_27 = arith.constant 0 : index
    %c0_28 = arith.constant 0 : index
    %76 = vector.load %arg9[%c0_27, %c0_28] : memref<256x1024xbf16, #tpu.memory_space<vmem>>, vector<256x1024xbf16>
    %cst_29 = arith.constant dense<0.000000e+00> : vector<8x1024xf32>
    %77 = tpu.matmul %75, %76, %cst_29 {dimension_numbers = #tpu.dot_dimension_numbers<[1], [0], [0], [1], [0, 0, 1, 1], [], []>} : vector<8x256xbf16>, vector<256x1024xbf16>, vector<8x1024xf32> -> vector<8x1024xf32>
    %c0_30 = arith.constant 0 : index
    %c0_31 = arith.constant 0 : index
    %78 = vector.load %arg10[%c0_30, %c0_31] : memref<1x1024xf32, #tpu.memory_space<vmem>>, vector<1x1024xf32>
    %79 = vector.broadcast %78 : vector<1x1024xf32> to vector<8x1024xf32>
    %80 = arith.addf %77, %79 : vector<8x1024xf32>
    %cst_32 = arith.constant 5.000000e-01 : f32
    %81 = vector.broadcast %cst_32 : f32 to vector<8x1024xf32>
    %82 = arith.mulf %81, %80 : vector<8x1024xf32>
    %cst_33 = arith.constant 4.471500e-02 : f32
    %83 = vector.broadcast %cst_33 : f32 to vector<8x1024xf32>
    %84 = arith.mulf %83, %80 : vector<8x1024xf32>
    %85 = arith.mulf %84, %80 : vector<8x1024xf32>
    %86 = arith.mulf %85, %80 : vector<8x1024xf32>
    %87 = arith.addf %80, %86 : vector<8x1024xf32>
    %cst_34 = arith.constant 0.797884583 : f32
    %88 = vector.broadcast %cst_34 : f32 to vector<8x1024xf32>
    %89 = arith.mulf %88, %87 : vector<8x1024xf32>
    %90 = math.tanh %89 : vector<8x1024xf32>
    %cst_35 = arith.constant 1.000000e+00 : f32
    %91 = vector.broadcast %cst_35 : f32 to vector<8x1024xf32>
    %92 = arith.addf %91, %90 : vector<8x1024xf32>
    %93 = arith.mulf %82, %92 : vector<8x1024xf32>
    %94 = arith.truncf %93 : vector<8x1024xf32> to vector<8x1024xbf16>
    %c0_36 = arith.constant 0 : index
    %c0_37 = arith.constant 0 : index
    %95 = vector.load %arg11[%c0_36, %c0_37] : memref<1024x256xbf16, #tpu.memory_space<vmem>>, vector<1024x256xbf16>
    %cst_38 = arith.constant dense<0.000000e+00> : vector<8x256xf32>
    %96 = tpu.matmul %94, %95, %cst_38 {dimension_numbers = #tpu.dot_dimension_numbers<[1], [0], [0], [1], [0, 0, 1, 1], [], []>} : vector<8x1024xbf16>, vector<1024x256xbf16>, vector<8x256xf32> -> vector<8x256xf32>
    %c0_39 = arith.constant 0 : index
    %c0_40 = arith.constant 0 : index
    %97 = vector.load %arg12[%c0_39, %c0_40] : memref<1x256xf32, #tpu.memory_space<vmem>>, vector<1x256xf32>
    %98 = vector.broadcast %97 : vector<1x256xf32> to vector<8x256xf32>
    %99 = arith.addf %96, %98 : vector<8x256xf32>
    %100 = arith.addf %99, %74 : vector<8x256xf32>
    %c0_41 = arith.constant 0 : index
    %c0_42 = arith.constant 0 : index
    %101 = vector.load %arg13[%c0_41, %c0_42] : memref<1x256xf32, #tpu.memory_space<vmem>>, vector<1x256xf32>
    %c0_43 = arith.constant 0 : index
    %c0_44 = arith.constant 0 : index
    %102 = vector.load %arg14[%c0_43, %c0_44] : memref<1x256xf32, #tpu.memory_space<vmem>>, vector<1x256xf32>
    %cst_45 = arith.constant dense<0.000000e+00> : vector<8xf32>
    %103 = vector.multi_reduction <add>, %100, %cst_45 [1] : vector<8x256xf32> to vector<8xf32>
    %104 = vector.shape_cast %103 : vector<8xf32> to vector<8x1xf32>
    %cst_46 = arith.constant 2.560000e+02 : f32
    %105 = vector.broadcast %cst_46 : f32 to vector<8x1xf32>
    %106 = arith.divf %104, %105 : vector<8x1xf32>
    %107 = vector.broadcast %106 : vector<8x1xf32> to vector<8x256xf32>
    %108 = arith.subf %100, %107 : vector<8x256xf32>
    %109 = arith.mulf %108, %108 : vector<8x256xf32>
    %cst_47 = arith.constant dense<0.000000e+00> : vector<8xf32>
    %110 = vector.multi_reduction <add>, %109, %cst_47 [1] : vector<8x256xf32> to vector<8xf32>
    %111 = vector.shape_cast %110 : vector<8xf32> to vector<8x1xf32>
    %cst_48 = arith.constant 2.560000e+02 : f32
    %112 = vector.broadcast %cst_48 : f32 to vector<8x1xf32>
    %113 = arith.divf %111, %112 : vector<8x1xf32>
    %cst_49 = arith.constant 9.99999974E-6 : f32
    %114 = vector.broadcast %cst_49 : f32 to vector<8x1xf32>
    %115 = arith.addf %113, %114 : vector<8x1xf32>
    %116 = math.rsqrt %115 : vector<8x1xf32>
    %117 = vector.broadcast %116 : vector<8x1xf32> to vector<8x256xf32>
    %118 = arith.mulf %108, %117 : vector<8x256xf32>
    %119 = vector.broadcast %101 : vector<1x256xf32> to vector<8x256xf32>
    %120 = arith.mulf %118, %119 : vector<8x256xf32>
    %121 = vector.broadcast %102 : vector<1x256xf32> to vector<8x256xf32>
    %122 = arith.addf %120, %121 : vector<8x256xf32>
    %123 = arith.truncf %122 : vector<8x256xf32> to vector<8x256xbf16>
    %c0_50 = arith.constant 0 : index
    %c0_51 = arith.constant 0 : index
    %124 = vector.load %arg15[%c0_50, %c0_51] : memref<8x256xbf16, #tpu.memory_space<vmem>>, vector<8x256xbf16>
    tpu.vector_store %arg15[%c0_50, %c0_51], %123 {strides = array<i32>} : memref<8x256xbf16, #tpu.memory_space<vmem>>, vector<8x256xbf16>,
    return
  }
  func.func @transform_0(%arg0: i32) -> (i32, i32) {
    %c0_i32 = arith.constant 0 : i32
    %c0_i32_0 = arith.constant 0 : i32
    return %arg0, %c0_i32 : i32, i32
  }
  func.func @transform_1(%arg0: i32) -> (i32, i32, i32) {
    %c0_i32 = arith.constant 0 : i32
    %c0_i32_0 = arith.constant 0 : i32
    %c0_i32_1 = arith.constant 0 : i32
    return %arg0, %c0_i32, %c0_i32_0 : i32, i32, i32
  }
  func.func @transform_2(%arg0: i32) -> (i32, i32) {
    %c0_i32 = arith.constant 0 : i32
    %c0_i32_0 = arith.constant 0 : i32
    %c0_i32_1 = arith.constant 0 : i32
    return %c0_i32, %c0_i32_0 : i32, i32
  }
  func.func @transform_3(%arg0: i32) -> (i32, i32) {
    %c0_i32 = arith.constant 0 : i32
    %c0_i32_0 = arith.constant 0 : i32
    %c0_i32_1 = arith.constant 0 : i32
    return %c0_i32, %c0_i32_0 : i32, i32
  }
  func.func @transform_4(%arg0: i32) -> (i32, i32) {
    %c0_i32 = arith.constant 0 : i32
    %c0_i32_0 = arith.constant 0 : i32
    %c0_i32_1 = arith.constant 0 : i32
    return %c0_i32, %c0_i32_0 : i32, i32
  }
  func.func @transform_5(%arg0: i32) -> (i32, i32) {
    %c0_i32 = arith.constant 0 : i32
    %c0_i32_0 = arith.constant 0 : i32
    %c0_i32_1 = arith.constant 0 : i32
    return %c0_i32, %c0_i32_0 : i32, i32
  }
  func.func @transform_6(%arg0: i32) -> (i32, i32) {
    %c0_i32 = arith.constant 0 : i32
    %c0_i32_0 = arith.constant 0 : i32
    %c0_i32_1 = arith.constant 0 : i32
    return %c0_i32, %c0_i32_0 : i32, i32
  }
  func.func @transform_7(%arg0: i32) -> (i32, i32) {
    %c0_i32 = arith.constant 0 : i32
    %c0_i32_0 = arith.constant 0 : i32
    %c0_i32_1 = arith.constant 0 : i32
    return %c0_i32, %c0_i32_0 : i32, i32
  }
  func.func @transform_8(%arg0: i32) -> (i32, i32) {
    %c0_i32 = arith.constant 0 : i32
    %c0_i32_0 = arith.constant 0 : i32
    %c0_i32_1 = arith.constant 0 : i32
    return %c0_i32, %c0_i32_0 : i32, i32
  }
  func.func @transform_9(%arg0: i32) -> (i32, i32) {
    %c0_i32 = arith.constant 0 : i32
    %c0_i32_0 = arith.constant 0 : i32
    %c0_i32_1 = arith.constant 0 : i32
    return %c0_i32, %c0_i32_0 : i32, i32
  }
  func.func @transform_10(%arg0: i32) -> (i32, i32) {
    %c0_i32 = arith.constant 0 : i32
    %c0_i32_0 = arith.constant 0 : i32
    %c0_i32_1 = arith.constant 0 : i32
    return %c0_i32, %c0_i32_0 : i32, i32
  }
  func.func @transform_11(%arg0: i32) -> (i32, i32) {
    %c0_i32 = arith.constant 0 : i32
    %c0_i32_0 = arith.constant 0 : i32
    %c0_i32_1 = arith.constant 0 : i32
    return %c0_i32, %c0_i32_0 : i32, i32
  }
  func.func @transform_12(%arg0: i32) -> (i32, i32) {
    %c0_i32 = arith.constant 0 : i32
    %c0_i32_0 = arith.constant 0 : i32
    %c0_i32_1 = arith.constant 0 : i32
    return %c0_i32, %c0_i32_0 : i32, i32
  }
  func.func @transform_13(%arg0: i32) -> (i32, i32) {
    %c0_i32 = arith.constant 0 : i32
    %c0_i32_0 = arith.constant 0 : i32
    %c0_i32_1 = arith.constant 0 : i32
    return %c0_i32, %c0_i32_0 : i32, i32
  }
  func.func @transform_14(%arg0: i32) -> (i32, i32) {
    %c0_i32 = arith.constant 0 : i32
    %c0_i32_0 = arith.constant 0 : i32
    return %arg0, %c0_i32 : i32, i32
  }
}

module attributes {stable_mosaic.version = 11 : i64} {
  func.func @_encoder_layer_kernel(%arg0: i32, %arg1: memref<8x256xbf16, #tpu.memory_space<vmem>>, %arg2: memref<1x1x8xf32, #tpu.memory_space<vmem>>, %arg3: memref<256x768xbf16, #tpu.memory_space<vmem>>, %arg4: memref<1x768xf32, #tpu.memory_space<vmem>>, %arg5: memref<256x256xbf16, #tpu.memory_space<vmem>>, %arg6: memref<1x256xf32, #tpu.memory_space<vmem>>, %arg7: memref<1x256xf32, #tpu.memory_space<vmem>>, %arg8: memref<1x256xf32, #tpu.memory_space<vmem>>, %arg9: memref<256x1024xbf16, #tpu.memory_space<vmem>>, %arg10: memref<1x1024xf32, #tpu.memory_space<vmem>>, %arg11: memref<1024x256xbf16, #tpu.memory_space<vmem>>, %arg12: memref<1x256xf32, #tpu.memory_space<vmem>>, %arg13: memref<1x256xf32, #tpu.memory_space<vmem>>, %arg14: memref<1x256xf32, #tpu.memory_space<vmem>>, %arg15: memref<8x256xbf16, #tpu.memory_space<vmem>>) attributes {dimension_semantics = [#tpu.dimension_semantics<parallel>], iteration_bounds = array<i64: 2>, scalar_prefetch = 0 : i64, scratch_operands = 0 : i64, tpu.core_type = #tpu.core_type<tc>, window_params = [{transform_indices = @transform_0, window_bounds = array<i64: 8, 256>}, {transform_indices = @transform_1, window_bounds = array<i64: 1, 1, 8>}, {pipeline_mode = #tpu.pipeline_mode<synchronous>, transform_indices = @transform_2, window_bounds = array<i64: 256, 768>}, {pipeline_mode = #tpu.pipeline_mode<synchronous>, transform_indices = @transform_3, window_bounds = array<i64: 1, 768>}, {pipeline_mode = #tpu.pipeline_mode<synchronous>, transform_indices = @transform_4, window_bounds = array<i64: 256, 256>}, {pipeline_mode = #tpu.pipeline_mode<synchronous>, transform_indices = @transform_5, window_bounds = array<i64: 1, 256>}, {pipeline_mode = #tpu.pipeline_mode<synchronous>, transform_indices = @transform_6, window_bounds = array<i64: 1, 256>}, {pipeline_mode = #tpu.pipeline_mode<synchronous>, transform_indices = @transform_7, window_bounds = array<i64: 1, 256>}, {pipeline_mode = #tpu.pipeline_mode<synchronous>, transform_indices = @transform_8, window_bounds = array<i64: 256, 1024>}, {pipeline_mode = #tpu.pipeline_mode<synchronous>, transform_indices = @transform_9, window_bounds = array<i64: 1, 1024>}, {pipeline_mode = #tpu.pipeline_mode<synchronous>, transform_indices = @transform_10, window_bounds = array<i64: 1024, 256>}, {pipeline_mode = #tpu.pipeline_mode<synchronous>, transform_indices = @transform_11, window_bounds = array<i64: 1, 256>}, {pipeline_mode = #tpu.pipeline_mode<synchronous>, transform_indices = @transform_12, window_bounds = array<i64: 1, 256>}, {pipeline_mode = #tpu.pipeline_mode<synchronous>, transform_indices = @transform_13, window_bounds = array<i64: 1, 256>}, {transform_indices = @transform_14, window_bounds = array<i64: 8, 256>}]} {
    %c0 = arith.constant 0 : index
    %c0_0 = arith.constant 0 : index
    %0 = vector.load %arg1[%c0, %c0_0] : memref<8x256xbf16, #tpu.memory_space<vmem>>, vector<8x256xbf16>
    %1 = arith.extf %0 : vector<8x256xbf16> to vector<8x256xf32>
    %c0_1 = arith.constant 0 : index
    %c0_2 = arith.constant 0 : index
    %c0_3 = arith.constant 0 : index
    %2 = vector.load %arg2[%c0_1, %c0_2, %c0_3] : memref<1x1x8xf32, #tpu.memory_space<vmem>>, vector<1x1x8xf32>
    %c0_4 = arith.constant 0 : index
    %c0_5 = arith.constant 0 : index
    %3 = vector.load %arg3[%c0_4, %c0_5] : memref<256x768xbf16, #tpu.memory_space<vmem>>, vector<256x768xbf16>
    %cst = arith.constant dense<0.000000e+00> : vector<8x768xf32>
    %4 = tpu.matmul %0, %3, %cst {dimension_numbers = #tpu.dot_dimension_numbers<[1], [0], [0], [1], [0, 0, 1, 1], [], []>} : vector<8x256xbf16>, vector<256x768xbf16>, vector<8x768xf32> -> vector<8x768xf32>
    %c0_6 = arith.constant 0 : index
    %c0_7 = arith.constant 0 : index
    %5 = vector.load %arg4[%c0_6, %c0_7] : memref<1x768xf32, #tpu.memory_space<vmem>>, vector<1x768xf32>
    %6 = vector.broadcast %5 : vector<1x768xf32> to vector<8x768xf32>
    %7 = arith.addf %4, %6 : vector<8x768xf32>
    %8 = arith.truncf %7 : vector<8x768xf32> to vector<8x768xbf16>
    %9 = vector.extract_strided_slice %8 {offsets = [0, 0], sizes = [8, 128], strides = [1, 1]} : vector<8x768xbf16> to vector<8x128xbf16>
    %10 = vector.extract_strided_slice %8 {offsets = [0, 128], sizes = [8, 128], strides = [1, 1]} : vector<8x768xbf16> to vector<8x128xbf16>
    %11 = vector.shape_cast %9 : vector<8x128xbf16> to vector<1x8x128xbf16>
    %12 = vector.shape_cast %10 : vector<8x128xbf16> to vector<1x8x128xbf16>
    %13 = tpu.concatenate %11, %12 in 0 : vector<1x8x128xbf16>, vector<1x8x128xbf16> -> vector<2x8x128xbf16>
    %14 = vector.extract_strided_slice %8 {offsets = [0, 256], sizes = [8, 128], strides = [1, 1]} : vector<8x768xbf16> to vector<8x128xbf16>
    %15 = vector.extract_strided_slice %8 {offsets = [0, 384], sizes = [8, 128], strides = [1, 1]} : vector<8x768xbf16> to vector<8x128xbf16>
    %16 = vector.shape_cast %14 : vector<8x128xbf16> to vector<1x8x128xbf16>
    %17 = vector.shape_cast %15 : vector<8x128xbf16> to vector<1x8x128xbf16>
    %18 = tpu.concatenate %16, %17 in 0 : vector<1x8x128xbf16>, vector<1x8x128xbf16> -> vector<2x8x128xbf16>
    %19 = vector.extract_strided_slice %8 {offsets = [0, 512], sizes = [8, 128], strides = [1, 1]} : vector<8x768xbf16> to vector<8x128xbf16>
    %20 = vector.extract_strided_slice %8 {offsets = [0, 640], sizes = [8, 128], strides = [1, 1]} : vector<8x768xbf16> to vector<8x128xbf16>
    %21 = vector.shape_cast %19 : vector<8x128xbf16> to vector<1x8x128xbf16>
    %22 = vector.shape_cast %20 : vector<8x128xbf16> to vector<1x8x128xbf16>
    %23 = tpu.concatenate %21, %22 in 0 : vector<1x8x128xbf16>, vector<1x8x128xbf16> -> vector<2x8x128xbf16>
    "tpu.trace_start"() <{level = 10 : i32, message = "hqd,hkd->hqk"}> : () -> ()
    %cst_8 = arith.constant dense<0.000000e+00> : vector<2x8x8xf32>
    %24 = tpu.matmul %13, %18, %cst_8 {dimension_numbers = #tpu.dot_dimension_numbers<[2], [2], [1], [1], [0, 0, 0, 1, 1, 1], [0], [0]>} : vector<2x8x128xbf16>, vector<2x8x128xbf16>, vector<2x8x8xf32> -> vector<2x8x8xf32>
    "tpu.trace_stop"() : () -> ()
    %cst_9 = arith.constant 0.0883883461 : f32
    %25 = vector.broadcast %cst_9 : f32 to vector<2x8x8xf32>
    %26 = arith.mulf %24, %25 : vector<2x8x8xf32>
    %27 = vector.broadcast %2 : vector<1x1x8xf32> to vector<2x8x8xf32>
    %28 = arith.addf %26, %27 : vector<2x8x8xf32>
    %cst_10 = arith.constant dense<0xFF800000> : vector<2x8xf32>
    %29 = vector.multi_reduction <maximumf>, %28, %cst_10 [2] : vector<2x8x8xf32> to vector<2x8xf32>
    %30 = vector.shape_cast %29 : vector<2x8xf32> to vector<2x8x1xf32>
    %31 = vector.broadcast %30 : vector<2x8x1xf32> to vector<2x8x8xf32>
    %32 = arith.subf %28, %31 : vector<2x8x8xf32>
    %33 = math.exp %32 : vector<2x8x8xf32>
    %cst_11 = arith.constant dense<0.000000e+00> : vector<2x8xf32>
    %34 = vector.multi_reduction <add>, %33, %cst_11 [2] : vector<2x8x8xf32> to vector<2x8xf32>
    %35 = vector.shape_cast %34 : vector<2x8xf32> to vector<2x8x1xf32>
    %36 = tpu.reciprocal %35 {approx = true} : vector<2x8x1xf32> -> vector<2x8x1xf32>
    %37 = vector.broadcast %36 : vector<2x8x1xf32> to vector<2x8x8xf32>
    %38 = arith.mulf %33, %37 : vector<2x8x8xf32>
    %39 = arith.truncf %38 : vector<2x8x8xf32> to vector<2x8x8xbf16>
    "tpu.trace_start"() <{level = 10 : i32, message = "hqk,hkd->hqd"}> : () -> ()
    %cst_12 = arith.constant dense<0.000000e+00> : vector<2x8x128xf32>
    %40 = tpu.matmul %39, %23, %cst_12 {dimension_numbers = #tpu.dot_dimension_numbers<[2], [1], [1], [2], [0, 0, 0, 1, 1, 2], [0], [0]>} : vector<2x8x8xbf16>, vector<2x8x128xbf16>, vector<2x8x128xf32> -> vector<2x8x128xf32>
    "tpu.trace_stop"() : () -> ()
    %41 = vector.extract_strided_slice %40 {offsets = [0, 0, 0], sizes = [1, 8, 128], strides = [1, 1, 1]} : vector<2x8x128xf32> to vector<1x8x128xf32>
    %42 = vector.shape_cast %41 : vector<1x8x128xf32> to vector<8x128xf32>
    %43 = vector.extract_strided_slice %40 {offsets = [1, 0, 0], sizes = [1, 8, 128], strides = [1, 1, 1]} : vector<2x8x128xf32> to vector<1x8x128xf32>
    %44 = vector.shape_cast %43 : vector<1x8x128xf32> to vector<8x128xf32>
    %45 = tpu.concatenate %42, %44 in 1 : vector<8x128xf32>, vector<8x128xf32> -> vector<8x256xf32>
    %46 = arith.truncf %45 : vector<8x256xf32> to vector<8x256xbf16>
    %c0_13 = arith.constant 0 : index
    %c0_14 = arith.constant 0 : index
    %47 = vector.load %arg5[%c0_13, %c0_14] : memref<256x256xbf16, #tpu.memory_space<vmem>>, vector<256x256xbf16>
    %cst_15 = arith.constant dense<0.000000e+00> : vector<8x256xf32>
    %48 = tpu.matmul %46, %47, %cst_15 {dimension_numbers = #tpu.dot_dimension_numbers<[1], [0], [0], [1], [0, 0, 1, 1], [], []>} : vector<8x256xbf16>, vector<256x256xbf16>, vector<8x256xf32> -> vector<8x256xf32>
    %c0_16 = arith.constant 0 : index
    %c0_17 = arith.constant 0 : index
    %49 = vector.load %arg6[%c0_16, %c0_17] : memref<1x256xf32, #tpu.memory_space<vmem>>, vector<1x256xf32>
    %50 = vector.broadcast %49 : vector<1x256xf32> to vector<8x256xf32>
    %51 = arith.addf %48, %50 : vector<8x256xf32>
    %52 = arith.addf %51, %1 : vector<8x256xf32>
    %c0_18 = arith.constant 0 : index
    %c0_19 = arith.constant 0 : index
    %53 = vector.load %arg7[%c0_18, %c0_19] : memref<1x256xf32, #tpu.memory_space<vmem>>, vector<1x256xf32>
    %c0_20 = arith.constant 0 : index
    %c0_21 = arith.constant 0 : index
    %54 = vector.load %arg8[%c0_20, %c0_21] : memref<1x256xf32, #tpu.memory_space<vmem>>, vector<1x256xf32>
    %cst_22 = arith.constant dense<0.000000e+00> : vector<8xf32>
    %55 = vector.multi_reduction <add>, %52, %cst_22 [1] : vector<8x256xf32> to vector<8xf32>
    %56 = vector.shape_cast %55 : vector<8xf32> to vector<8x1xf32>
    %cst_23 = arith.constant 2.560000e+02 : f32
    %57 = vector.broadcast %cst_23 : f32 to vector<8x1xf32>
    %58 = arith.divf %56, %57 : vector<8x1xf32>
    %59 = vector.broadcast %58 : vector<8x1xf32> to vector<8x256xf32>
    %60 = arith.subf %52, %59 : vector<8x256xf32>
    %61 = arith.mulf %60, %60 : vector<8x256xf32>
    %cst_24 = arith.constant dense<0.000000e+00> : vector<8xf32>
    %62 = vector.multi_reduction <add>, %61, %cst_24 [1] : vector<8x256xf32> to vector<8xf32>
    %63 = vector.shape_cast %62 : vector<8xf32> to vector<8x1xf32>
    %cst_25 = arith.constant 2.560000e+02 : f32
    %64 = vector.broadcast %cst_25 : f32 to vector<8x1xf32>
    %65 = arith.divf %63, %64 : vector<8x1xf32>
    %cst_26 = arith.constant 9.99999974E-6 : f32
    %66 = vector.broadcast %cst_26 : f32 to vector<8x1xf32>
    %67 = arith.addf %65, %66 : vector<8x1xf32>
    %68 = math.rsqrt %67 : vector<8x1xf32>
    %69 = vector.broadcast %68 : vector<8x1xf32> to vector<8x256xf32>
    %70 = arith.mulf %60, %69 : vector<8x256xf32>
    %71 = vector.broadcast %53 : vector<1x256xf32> to vector<8x256xf32>
    %72 = arith.mulf %70, %71 : vector<8x256xf32>
    %73 = vector.broadcast %54 : vector<1x256xf32> to vector<8x256xf32>
    %74 = arith.addf %72, %73 : vector<8x256xf32>
    %75 = arith.truncf %74 : vector<8x256xf32> to vector<8x256xbf16>
    %c0_27 = arith.constant 0 : index
    %c0_28 = arith.constant 0 : index
    %76 = vector.load %arg9[%c0_27, %c0_28] : memref<256x1024xbf16, #tpu.memory_space<vmem>>, vector<256x1024xbf16>
    %cst_29 = arith.constant dense<0.000000e+00> : vector<8x1024xf32>
    %77 = tpu.matmul %75, %76, %cst_29 {dimension_numbers = #tpu.dot_dimension_numbers<[1], [0], [0], [1], [0, 0, 1, 1], [], []>} : vector<8x256xbf16>, vector<256x1024xbf16>, vector<8x1024xf32> -> vector<8x1024xf32>
    %c0_30 = arith.constant 0 : index
    %c0_31 = arith.constant 0 : index
    %78 = vector.load %arg10[%c0_30, %c0_31] : memref<1x1024xf32, #tpu.memory_space<vmem>>, vector<1x1024xf32>
    %79 = vector.broadcast %78 : vector<1x1024xf32> to vector<8x1024xf32>
    %80 = arith.addf %77, %79 : vector<8x1024xf32>
    %cst_32 = arith.constant 5.000000e-01 : f32
    %81 = vector.broadcast %cst_32 : f32 to vector<8x1024xf32>
    %82 = arith.mulf %81, %80 : vector<8x1024xf32>
    %cst_33 = arith.constant 4.471500e-02 : f32
    %83 = vector.broadcast %cst_33 : f32 to vector<8x1024xf32>
    %84 = arith.mulf %83, %80 : vector<8x1024xf32>
    %85 = arith.mulf %84, %80 : vector<8x1024xf32>
    %86 = arith.mulf %85, %80 : vector<8x1024xf32>
    %87 = arith.addf %80, %86 : vector<8x1024xf32>
    %cst_34 = arith.constant 0.797884583 : f32
    %88 = vector.broadcast %cst_34 : f32 to vector<8x1024xf32>
    %89 = arith.mulf %88, %87 : vector<8x1024xf32>
    %90 = math.tanh %89 : vector<8x1024xf32>
    %cst_35 = arith.constant 1.000000e+00 : f32
    %91 = vector.broadcast %cst_35 : f32 to vector<8x1024xf32>
    %92 = arith.addf %91, %90 : vector<8x1024xf32>
    %93 = arith.mulf %82, %92 : vector<8x1024xf32>
    %94 = arith.truncf %93 : vector<8x1024xf32> to vector<8x1024xbf16>
    %c0_36 = arith.constant 0 : index
    %c0_37 = arith.constant 0 : index
    %95 = vector.load %arg11[%c0_36, %c0_37] : memref<1024x256xbf16, #tpu.memory_space<vmem>>, vector<1024x256xbf16>
    %cst_38 = arith.constant dense<0.000000e+00> : vector<8x256xf32>
    %96 = tpu.matmul %94, %95, %cst_38 {dimension_numbers = #tpu.dot_dimension_numbers<[1], [0], [0], [1], [0, 0, 1, 1], [], []>} : vector<8x1024xbf16>, vector<1024x256xbf16>, vector<8x256xf32> -> vector<8x256xf32>
    %c0_39 = arith.constant 0 : index
    %c0_40 = arith.constant 0 : index
    %97 = vector.load %arg12[%c0_39, %c0_40] : memref<1x256xf32, #tpu.memory_space<vmem>>, vector<1x256xf32>
    %98 = vector.broadcast %97 : vector<1x256xf32> to vector<8x256xf32>
    %99 = arith.addf %96, %98 : vector<8x256xf32>
    %100 = arith.addf %99, %74 : vector<8x256xf32>
    %c0_41 = arith.constant 0 : index
    %c0_42 = arith.constant 0 : index
    %101 = vector.load %arg13[%c0_41, %c0_42] : memref<1x256xf32, #tpu.memory_space<vmem>>, vector<1x256xf32>
    %c0_43 = arith.constant 0 : index
    %c0_44 = arith.constant 0 : index
    %102 = vector.load %arg14[%c0_43, %c0_44] : memref<1x256xf32, #tpu.memory_space<vmem>>, vector<1x256xf32>
    %cst_45 = arith.constant dense<0.000000e+00> : vector<8xf32>
    %103 = vector.multi_reduction <add>, %100, %cst_45 [1] : vector<8x256xf32> to vector<8xf32>
    %104 = vector.shape_cast %103 : vector<8xf32> to vector<8x1xf32>
    %cst_46 = arith.constant 2.560000e+02 : f32
    %105 = vector.broadcast %cst_46 : f32 to vector<8x1xf32>
    %106 = arith.divf %104, %105 : vector<8x1xf32>
    %107 = vector.broadcast %106 : vector<8x1xf32> to vector<8x256xf32>
    %108 = arith.subf %100, %107 : vector<8x256xf32>
    %109 = arith.mulf %108, %108 : vector<8x256xf32>
    %cst_47 = arith.constant dense<0.000000e+00> : vector<8xf32>
    %110 = vector.multi_reduction <add>, %109, %cst_47 [1] : vector<8x256xf32> to vector<8xf32>
    %111 = vector.shape_cast %110 : vector<8xf32> to vector<8x1xf32>
    %cst_48 = arith.constant 2.560000e+02 : f32
    %112 = vector.broadcast %cst_48 : f32 to vector<8x1xf32>
    %113 = arith.divf %111, %112 : vector<8x1xf32>
    %cst_49 = arith.constant 9.99999974E-6 : f32
    %114 = vector.broadcast %cst_49 : f32 to vector<8x1xf32>
    %115 = arith.addf %113, %114 : vector<8x1xf32>
    %116 = math.rsqrt %115 : vector<8x1xf32>
    %117 = vector.broadcast %116 : vector<8x1xf32> to vector<8x256xf32>
    %118 = arith.mulf %108, %117 : vector<8x256xf32>
    %119 = vector.broadcast %101 : vector<1x256xf32> to vector<8x256xf32>
    %120 = arith.mulf %118, %119 : vector<8x256xf32>
    %121 = vector.broadcast %102 : vector<1x256xf32> to vector<8x256xf32>
    %122 = arith.addf %120, %121 : vector<8x256xf32>
    %123 = arith.truncf %122 : vector<8x256xf32> to vector<8x256xbf16>
    %c0_50 = arith.constant 0 : index
    %c0_51 = arith.constant 0 : index
    %124 = vector.load %arg15[%c0_50, %c0_51] : memref<8x256xbf16, #tpu.memory_space<vmem>>, vector<8x256xbf16>
    tpu.vector_store %arg15[%c0_50, %c0_51], %123 {strides = array<i32>} : memref<8x256xbf16, #tpu.memory_space<vmem>>, vector<8x256xbf16>,
    return
  }
  func.func @transform_0(%arg0: i32) -> (i32, i32) {
    %c0_i32 = arith.constant 0 : i32
    %c0_i32_0 = arith.constant 0 : i32
    return %arg0, %c0_i32 : i32, i32
  }
  func.func @transform_1(%arg0: i32) -> (i32, i32, i32) {
    %c0_i32 = arith.constant 0 : i32
    %c0_i32_0 = arith.constant 0 : i32
    %c0_i32_1 = arith.constant 0 : i32
    return %arg0, %c0_i32, %c0_i32_0 : i32, i32, i32
  }
  func.func @transform_2(%arg0: i32) -> (i32, i32) {
    %c0_i32 = arith.constant 0 : i32
    %c0_i32_0 = arith.constant 0 : i32
    %c0_i32_1 = arith.constant 0 : i32
    return %c0_i32, %c0_i32_0 : i32, i32
  }
  func.func @transform_3(%arg0: i32) -> (i32, i32) {
    %c0_i32 = arith.constant 0 : i32
    %c0_i32_0 = arith.constant 0 : i32
    %c0_i32_1 = arith.constant 0 : i32
    return %c0_i32, %c0_i32_0 : i32, i32
  }
  func.func @transform_4(%arg0: i32) -> (i32, i32) {
    %c0_i32 = arith.constant 0 : i32
    %c0_i32_0 = arith.constant 0 : i32
    %c0_i32_1 = arith.constant 0 : i32
    return %c0_i32, %c0_i32_0 : i32, i32
  }
  func.func @transform_5(%arg0: i32) -> (i32, i32) {
    %c0_i32 = arith.constant 0 : i32
    %c0_i32_0 = arith.constant 0 : i32
    %c0_i32_1 = arith.constant 0 : i32
    return %c0_i32, %c0_i32_0 : i32, i32
  }
  func.func @transform_6(%arg0: i32) -> (i32, i32) {
    %c0_i32 = arith.constant 0 : i32
    %c0_i32_0 = arith.constant 0 : i32
    %c0_i32_1 = arith.constant 0 : i32
    return %c0_i32, %c0_i32_0 : i32, i32
  }
  func.func @transform_7(%arg0: i32) -> (i32, i32) {
    %c0_i32 = arith.constant 0 : i32
    %c0_i32_0 = arith.constant 0 : i32
    %c0_i32_1 = arith.constant 0 : i32
    return %c0_i32, %c0_i32_0 : i32, i32
  }
  func.func @transform_8(%arg0: i32) -> (i32, i32) {
    %c0_i32 = arith.constant 0 : i32
    %c0_i32_0 = arith.constant 0 : i32
    %c0_i32_1 = arith.constant 0 : i32
    return %c0_i32, %c0_i32_0 : i32, i32
  }
  func.func @transform_9(%arg0: i32) -> (i32, i32) {
    %c0_i32 = arith.constant 0 : i32
    %c0_i32_0 = arith.constant 0 : i32
    %c0_i32_1 = arith.constant 0 : i32
    return %c0_i32, %c0_i32_0 : i32, i32
  }
  func.func @transform_10(%arg0: i32) -> (i32, i32) {
    %c0_i32 = arith.constant 0 : i32
    %c0_i32_0 = arith.constant 0 : i32
    %c0_i32_1 = arith.constant 0 : i32
    return %c0_i32, %c0_i32_0 : i32, i32
  }
  func.func @transform_11(%arg0: i32) -> (i32, i32) {
    %c0_i32 = arith.constant 0 : i32
    %c0_i32_0 = arith.constant 0 : i32
    %c0_i32_1 = arith.constant 0 : i32
    return %c0_i32, %c0_i32_0 : i32, i32
  }
  func.func @transform_12(%arg0: i32) -> (i32, i32) {
    %c0_i32 = arith.constant 0 : i32
    %c0_i32_0 = arith.constant 0 : i32
    %c0_i32_1 = arith.constant 0 : i32
    return %c0_i32, %c0_i32_0 : i32, i32
  }
  func.func @transform_13(%arg0: i32) -> (i32, i32) {
    %c0_i32 = arith.constant 0 : i32
    %c0_i32_0 = arith.constant 0 : i32
    %c0_i32_1 = arith.constant 0 : i32
    return %c0_i32, %c0_i32_0 : i32, i32
  }
  func.func @transform_14(%arg0: i32) -> (i32, i32) {
    %c0_i32 = arith.constant 0 : i32
    %c0_i32_0 = arith.constant 0 : i32
    return %arg0, %c0_i32 : i32, i32
  }
}

</mosaic_0001>

<bundles_post_ra>
// kernel: forward.3
= control target key start
LH: loop header
LB: loop body
LE: loop exit
PB: predicated region body
PF: predicated region fallthrough
CT: control target
= control target key end

     0   :  { %v53_v22 = vlaneseq  ;;  %s153_s0 = inlined_call_operand.vmem [shape: f32[16,256], index: 0, kind: input, shape index: {}]   ;;  %s154_s1 = inlined_call_operand.vmem [shape: f32[1,256], index: 1, kind: input, shape index: {}]   ;;  %s155_s2 = inlined_call_operand.vmem [shape: f32[1,256], index: 2, kind: input, shape index: {}]   ;;  %s156_s3 = inlined_call_operand.vmem [shape: bf16[16,256], index: 3, kind: output, shape index: {}]  }
   0x1   :  { %v14_v0 = vld [vmem:[%s153_s0] sm:$0xff]  ;;  %v15_v1 = vld [vmem:[%s153_s0 + $0x8] sm:$0xff]  ;;  %v16_v2 = vld [vmem:[%s153_s0 + $0x10] sm:$0xff] }
   0x2   :  { %v18_v3 = vadd.f32 %v15_v1, %v14_v0  ;;  %v17_v4 = vld [vmem:[%s153_s0 + $0x18] sm:$0xff]  ;;  %v54_v26 = vshrl.u32 %v53_v22, 7  ;;  %v51_v30 = vld [vmem:[%s154_s1] sm:$0x3] }
   0x3   :  { %v21_v5 = vadd.f32 %v17_v4, %v16_v2  ;;  %v67_v31 = vld [vmem:[%s155_s2] sm:$0x3] }
   0x4   :  { %19 = vadd.xlane.f32.xlu0 %v18_v3  ;;  %v55_v28 = vsub.s32 0, %v54_v26  ;;  %v59_v29 = vsub.s32 1, %v54_v26 }
   0x6   :  { %v56_v32 = vrot.slane %v51_v30, %v55_v28  ;;  %v60_v33 = vrot.slane %v51_v30, %v59_v29  ;;  %v72_v35 = vrot.slane %v67_v31, %v55_v28  ;;  %v76_v36 = vrot.slane %v67_v31, %v59_v29 }
   0x8   :  { %22 = vadd.xlane.f32.xlu0 %v21_v5 }
  0x91   :  { %v20_v6 = vpop.xlane.xlu0 %19 }
  0x92   :  { %v25_v7 = vmul.f32 0.00390625, %v20_v6 }
  0x94   :  { %v27_v8 = vsub.f32 %v14_v0, %v25_v7  ;;  %v28_v9 = vsub.f32 %v15_v1, %v25_v7 }
  0x95   :  { %v23_v10 = vpop.xlane.xlu0 %22 }
  0x96   :  { %v26_v11 = vmul.f32 0.00390625, %v23_v10  ;;  %v31_v12 = vmul.f32 %v27_v8, %v27_v8  ;;  %v32_v13 = vmul.f32 %v28_v9, %v28_v9 }
  0x98   :  { %v29_v14 = vsub.f32 %v16_v2, %v26_v11  ;;  %v30_v15 = vsub.f32 %v17_v4, %v26_v11  ;;  %v35_v16 = vadd.f32 %v32_v13, %v31_v12 }
  0x9a   :  { %36 = vadd.xlane.f32.xlu1 %v35_v16  ;;  %v33_v17 = vmul.f32 %v29_v14, %v29_v14  ;;  %v34_v18 = vmul.f32 %v30_v15, %v30_v15 }
  0x9c   :  { %v38_v19 = vadd.f32 %v34_v18, %v33_v17 }
  0x9e   :  { %39 = vadd.xlane.f32.xlu1 %v38_v19 }
 0x127   :  { %v37_v20 = vpop.xlane.xlu1 %36 }
 0x128   :  { %v41_v21 = vmul.f32 0.00390625, %v37_v20 }
 0x12a   :  { %v43_v23 = vadd.f32 1e-05, %v41_v21 }
 0x12b   :  { %v40_v24 = vpop.xlane.xlu1 %39 }
 0x12c   :  { %105 = vrsqrt.f32 %v43_v23  ;;  %v42_v25 = vmul.f32 0.00390625, %v40_v24 }
 0x12e   :  { %v44_v27 = vadd.f32 1e-05, %v42_v25 }
 0x130   :  { %107 = vrsqrt.f32 %v44_v27 }
 0x136   :  { %v106_v34 = vpop.eup %105 }
 0x137   :  { %v47_v37 = vmul.f32 %v106_v34, %v27_v8  ;;  %v48_v38 = vmul.f32 %v106_v34, %v28_v9 }
 0x139   :  { %v63_v39 = vmul.f32 %v56_v32, %v47_v37  ;;  %v64_v40 = vmul.f32 %v60_v33, %v48_v38 }
 0x13a   :  { %v108_v41 = vpop.eup %107 }
 0x13b   :  { %v79_v42 = vadd.f32 %v72_v35, %v63_v39  ;;  %v80_v43 = vadd.f32 %v76_v36, %v64_v40  ;;  %v49_v44 = vmul.f32 %v108_v41, %v29_v14  ;;  %v50_v45 = vmul.f32 %v108_v41, %v30_v15 }
 0x13d   :  { %v103_v46 = vpack.c.bf16 %v80_v43, %v79_v42  ;;  %v65_v47 = vmul.f32 %v56_v32, %v49_v44  ;;  %v66_v48 = vmul.f32 %v60_v33, %v50_v45 }
 0x13f   :  { %95 = vst [vmem:[%s156_s3] sm:$0xff] %v103_v46  ;;  %v81_v49 = vadd.f32 %v72_v35, %v65_v47  ;;  %v82_v50 = vadd.f32 %v76_v36, %v66_v48 }
 0x141   :  { %v104_v51 = vpack.c.bf16 %v82_v50, %v81_v49 }
 0x143   :  { %96 = vst [vmem:[%s156_s3 + $0x8] sm:$0xff] %v104_v51 }

// kernel: forward.5
= control target key start
LH: loop header
LB: loop body
LE: loop exit
PB: predicated region body
PF: predicated region fallthrough
CT: control target
= control target key end

     0   :  { %s4797_s29 = smov 0   ;;  %s6154_s0 = inlined_call_operand.vmem [shape: bf16[16,256], index: 0, kind: input, shape index: {}]   ;;  %s6155_s1 = inlined_call_operand.vmem [shape: f32[2,1,8], index: 1, kind: input, shape index: {}]   ;;  %s6156_s2 = inlined_call_operand.vmem [shape: bf16[256,768], index: 2, kind: input, shape index: {}]   ;;  %s6157_s3 = inlined_call_operand.vmem [shape: f32[1,768], index: 3, kind: input, shape index: {}]   ;;  %s6158_s4 = inlined_call_operand.vmem [shape: bf16[256,256], index: 4, kind: input, shape index: {}]   ;;  %s6159_s5 = inlined_call_operand.vmem [shape: f32[1,256], index: 5, kind: input, shape index: {}]   ;;  %s6160_s6 = inlined_call_operand.vmem [shape: f32[1,256], index: 6, kind: input, shape index: {}]   ;;  %s6161_s7 = inlined_call_operand.vmem [shape: f32[1,256], index: 7, kind: input, shape index: {}]   ;;  %s6162_s8 = inlined_call_operand.vmem [shape: bf16[256,1024], index: 8, kind: input, shape index: {}]   ;;  %s6163_s9 = inlined_call_operand.vmem [shape: f32[1,1024], index: 9, kind: input, shape index: {}]   ;;  %s6164_s10 = inlined_call_operand.vmem [shape: bf16[1024,256], index: 10, kind: input, shape index: {}]   ;;  %s6165_s11 = inlined_call_operand.vmem [shape: f32[1,256], index: 11, kind: input, shape index: {}]   ;;  %s6166_s12 = inlined_call_operand.vmem [shape: f32[1,256], index: 12, kind: input, shape index: {}]   ;;  %s6167_s13 = inlined_call_operand.vmem [shape: f32[1,256], index: 13, kind: input, shape index: {}]   ;;  %s6168_s14 = inlined_call_operand.vmem [shape: bf16[16,256], index: 14, kind: output, shape index: {}]  }
   0x1 LB: > { %s3852_s30 = sadd.s32 4294967295, %s4718_s29   ;;  %p3856_p0 = scmp.ge.s32.totalorder %s4718_s29, 1  ;;  %s4718_s29 = sphi %s4797_s29, %s24_s29  }
   0x2   : > { %p420_p1 = scmp.lt.s32.totalorder %s4718_s29, 3 }
   0x4   : > { %p421_p2 = pnand %p3856_p0, %p420_p1 }
   0x5   : > { %v4298_v0 = vld [vmem:[%s6156_s2 + $0xc] ss:$24 sps:$4 sm:$0xff] (!%p421_p2)   ;;  %v4300_v1 = vld [vmem:[%s6156_s2 + $0x8] ss:$24 sps:$4 sm:$0xff] (!%p421_p2)   ;;  %v4301_v2 = vld [vmem:[%s6156_s2 + $0x3c] ss:$24 sps:$4 sm:$0xff] (!%p421_p2)  }
   0x6   : > { %424 = sbr.rel (%p421_p2) target bundleno = 2427 (0x97b), region = 76  ;;  %1143 = vmatprep.subr.bf16.mxu1 (!%p421_p2), %v4298_v0  ;;  %v4303_v3 = vld [vmem:[%s6156_s2 + $0x4] ss:$24 sps:$4 sm:$0xff] (!%p421_p2)   ;;  %v4305_v4 = vld [vmem:[%s6156_s2 + $0x38] ss:$24 sps:$4 sm:$0xff] (!%p421_p2)   ;;  %p469_p3 = scmp.lt.s32.totalorder (!%p421_p2), %s3852_s30, 1 }
   0x7   : > { %1144 = vmatpush1.bf16.msra.mxu1 (!%p421_p2), %v4300_v1  ;;  %v4306_v5 = vld [vmem:[%s6156_s2] ss:$24 sps:$4 sm:$0xff] (!%p421_p2)   ;;  %v4307_v6 = vld [vmem:[%s6156_s2 + $0x6c] ss:$24 sps:$4 sm:$0xff] (!%p421_p2)   ;;  %1102 = vmatprep.subr.bf16.mxu0 (!%p421_p2), %v4303_v3  ;;  %v4312_v8 = vld [vmem:[%s6156_s2 + $0x30] ss:$24 sps:$4 sm:$0xff] (!%p421_p2)  }
   0x8   : > { %1145 = vmatprep.subr.bf16.mxu1 (!%p421_p2), %v4301_v2  ;;  %v4309_v7 = vld [vmem:[%s6156_s2 + $0x34] ss:$24 sps:$4 sm:$0xff] (!%p421_p2)   ;;  %1103 = vmatpush1.bf16.msra.mxu0 (!%p421_p2), %v4306_v5  ;;  %v4311_v9 = vld [vmem:[%s6156_s2 + $0x68] ss:$24 sps:$4 sm:$0xff] (!%p421_p2)   ;;  %v4315_v11 = vld [vmem:[%s6156_s2 + $0x64] ss:$24 sps:$4 sm:$0xff] (!%p421_p2)  }
   0x9   : > { %1104 = vmatprep.subr.bf16.mxu0 (!%p421_p2), %v4309_v7  ;;  %v4313_v10 = vld [vmem:[%s6156_s2 + $0x9c] ss:$24 sps:$4 sm:$0xff] (!%p421_p2)   ;;  %v4318_v12 = vld [vmem:[%s6156_s2 + $0x60] ss:$24 sps:$4 sm:$0xff] (!%p421_p2)   ;;  %v4319_v15 = vld [vmem:[%s6156_s2 + $0xcc] ss:$24 sps:$4 sm:$0xff] (!%p421_p2)  }
   0xa   : > { %v4317_v13 = vld [vmem:[%s6156_s2 + $0x98] ss:$24 sps:$4 sm:$0xff] (!%p421_p2)   ;;  %v4321_v14 = vld [vmem:[%s6156_s2 + $0x94] ss:$24 sps:$4 sm:$0xff] (!%p421_p2)   ;;  %v4323_v16 = vld [vmem:[%s6156_s2 + $0xc8] ss:$24 sps:$4 sm:$0xff] (!%p421_p2)  }
   0xb   : > { %1146 = vmatpush1.bf16.msra.mxu1 (!%p421_p2), %v4305_v4  ;;  %v4324_v17 = vld [vmem:[%s6156_s2 + $0x90] ss:$24 sps:$4 sm:$0xff] (!%p421_p2)   ;;  %v4327_v18 = vld [vmem:[%s6156_s2 + $0xc4] ss:$24 sps:$4 sm:$0xff] (!%p421_p2)   ;;  %v4330_v20 = vld [vmem:[%s6156_s2 + $0xc0] ss:$24 sps:$4 sm:$0xff] (!%p421_p2)  }
   0xc   : > { %1147 = vmatprep.subr.bf16.mxu1 (!%p421_p2), %v4307_v6  ;;  %1105 = vmatpush1.bf16.msra.mxu0 (!%p421_p2), %v4312_v8  ;;  %v4325_v19 = vld [vmem:[%s6156_s2 + $0xfc] ss:$24 sps:$4 sm:$0xff] (!%p421_p2)   ;;  %v4329_v21 = vld [vmem:[%s6156_s2 + $0xf8] ss:$24 sps:$4 sm:$0xff] (!%p421_p2)   ;;  %v4331_v23 = vld [vmem:[%s6156_s2 + $0x12c] ss:$24 sps:$4 sm:$0xff] (!%p421_p2)  }
   0xd   : > { %1106 = vmatprep.subr.bf16.mxu0 %v4315_v11  ;;  %v4333_v22 = vld [vmem:[%s6156_s2 + $0xf4] ss:$24 sps:$4 sm:$0xff]   ;;  %v4335_v24 = vld [vmem:[%s6156_s2 + $0x128] ss:$24 sps:$4 sm:$0xff]   ;;  %v4339_v26 = vld [vmem:[%s6156_s2 + $0x124] ss:$24 sps:$4 sm:$0xff]  }
   0xe   : > { %v4336_v25 = vld [vmem:[%s6156_s2 + $0xf0] ss:$24 sps:$4 sm:$0xff]   ;;  %v4337_v27 = vld [vmem:[%s6156_s2 + $0x15c] ss:$24 sps:$4 sm:$0xff]   ;;  %v4342_v28 = vld [vmem:[%s6156_s2 + $0x120] ss:$24 sps:$4 sm:$0xff]  }
   0xf   : > { %1148 = vmatpush1.bf16.msra.mxu1 %v4311_v9  ;;  %v4341_v29 = vld [vmem:[%s6156_s2 + $0x158] ss:$24 sps:$4 sm:$0xff]   ;;  %v4345_v30 = vld [vmem:[%s6156_s2 + $0x154] ss:$24 sps:$4 sm:$0xff]   ;;  %v4347_v32 = vld [vmem:[%s6156_s2 + $0x188] ss:$24 sps:$4 sm:$0xff]  }
  0x10   : > { %1149 = vmatprep.subr.bf16.mxu1 %v4313_v10  ;;  %1107 = vmatpush1.bf16.msra.mxu0 %v4318_v12  ;;  %v4343_v31 = vld [vmem:[%s6156_s2 + $0x18c] ss:$24 sps:$4 sm:$0xff]   ;;  %v4348_v33 = vld [vmem:[%s6156_s2 + $0x150] ss:$24 sps:$4 sm:$0xff]   ;;  %s6170_s30 = smov (!%p469_p3, %s3852_s30), 1  ;;  %vm4721_vm0 = vmmov 0  }
  0x11   : > { %1108 = vmatprep.subr.bf16.mxu0 %v4321_v14  ;;  %v4351_v34 = vld [vmem:[%s6156_s2 + $0x184] ss:$24 sps:$4 sm:$0xff]   ;;  %v4354_v36 = vld [vmem:[%s6156_s2 + $0x180] ss:$24 sps:$4 sm:$0xff]   ;;  %v4357_v38 = vld [vmem:[%s6156_s2 + $0x1b4] ss:$24 sps:$4 sm:$0xff]   ;;  %s476_s28 = scalar_lea.vmem %s6155_s1, %s6170_s30 }
  0x12   : > { %v4349_v35 = vld [vmem:[%s6156_s2 + $0x1bc] ss:$24 sps:$4 sm:$0xff]   ;;  %v4353_v37 = vld [vmem:[%s6156_s2 + $0x1b8] ss:$24 sps:$4 sm:$0xff]   ;;  %s4253_s23 = sshll.u32 %s6170_s30, 3  ;;  %vm1349_vm1 = vcmask 1043456  }
  0x13   : > { %1150 = vmatpush1.bf16.msra.mxu1 %v4317_v13  ;;  %v4355_v39 = vld [vmem:[%s6156_s2 + $0x1ec] ss:$24 sps:$4 sm:$0xff]   ;;  %v4359_v40 = vld [vmem:[%s6156_s2 + $0x1e8] ss:$24 sps:$4 sm:$0xff]   ;;  %s473_s18 = scalar_lea.vmem %s6154_s0, %s4253_s23  ;;  %v4361_v43 = vld [vmem:[%s6156_s2 + $0x21c] ss:$24 sps:$4 sm:$0xff]   ;;  %s481_s22 = scalar_lea.vmem %s6168_s14, %s4253_s23 }
  0x14   : > { %1151 = vmatprep.subr.bf16.mxu1 %v4319_v15  ;;  %1109 = vmatpush1.bf16.msra.mxu0 %v4324_v17  ;;  %v4360_v41 = vld [vmem:[%s6156_s2 + $0x1b0] ss:$24 sps:$4 sm:$0xff]   ;;  %v4363_v42 = vld [vmem:[%s6156_s2 + $0x1e4] ss:$24 sps:$4 sm:$0xff]   ;;  %v4366_v46 = vld [vmem:[%s6156_s2 + $0x1e0] ss:$24 sps:$4 sm:$0xff]  }
  0x15   : > { %1110 = vmatprep.subr.bf16.mxu0 %v4327_v18  ;;  %v4949_v44 = vld [vmem:[%s473_s18] sm:$0xff]  ;;  %v4365_v45 = vld [vmem:[%s6156_s2 + $0x218] ss:$24 sps:$4 sm:$0xff]   ;;  %v4369_v48 = vld [vmem:[%s6156_s2 + $0x214] ss:$24 sps:$4 sm:$0xff]   ;;  %vm1321_vm2 = vcmask 64512  }
  0x16   : > { %v3862_v47 = vcombine.high %v4949_v44, %v4949_v44  ;;  %v4367_v49 = vld [vmem:[%s6156_s2 + $0x24c] ss:$24 sps:$4 sm:$0xff]   ;;  %v4371_v50 = vld [vmem:[%s6156_s2 + $0x248] ss:$24 sps:$4 sm:$0xff]   ;;  %v4373_v53 = vld [vmem:[%s6156_s2 + $0x27c] ss:$24 sps:$4 sm:$0xff]   ;;  %v5012_v1 = vcombine.low %v4949_v44, %v4949_v44 }
  0x17   : > { %1152 = vmatpush1.bf16.msra.mxu1 %v4323_v16  ;;  %v4372_v51 = vld [vmem:[%s6156_s2 + $0x210] ss:$24 sps:$4 sm:$0xff]   ;;  %v4375_v52 = vld [vmem:[%s6156_s2 + $0x244] ss:$24 sps:$4 sm:$0xff]   ;;  %v4378_v55 = vld [vmem:[%s6156_s2 + $0x240] ss:$24 sps:$4 sm:$0xff]  }
  0x18   : > { %1153 = vmatprep.subr.bf16.mxu1 %v4325_v19  ;;  %1111 = vmatpush1.bf16.msra.mxu0 %v4330_v20  ;;  %v4377_v54 = vld [vmem:[%s6156_s2 + $0x278] ss:$24 sps:$4 sm:$0xff]   ;;  %v4381_v56 = vld [vmem:[%s6156_s2 + $0x274] ss:$24 sps:$4 sm:$0xff]   ;;  %v4383_v58 = vld [vmem:[%s6156_s2 + $0x2a8] ss:$24 sps:$4 sm:$0xff]  }
  0x19   : > { %1112 = vmatprep.subr.bf16.mxu0 %v4333_v22  ;;  %1175 = vmatprep.mubr.bf16.mxu1 %v3862_v47  ;;  %v4379_v57 = vld [vmem:[%s6156_s2 + $0x2ac] ss:$24 sps:$4 sm:$0xff]   ;;  %v4384_v59 = vld [vmem:[%s6156_s2 + $0x270] ss:$24 sps:$4 sm:$0xff]   ;;  %v4385_v61 = vld [vmem:[%s6156_s2 + $0x2dc] ss:$24 sps:$4 sm:$0xff]  }
  0x1a   : > { %1134 = vmatprep.mubr.bf16.mxu0 %v3862_v47  ;;  %v4387_v60 = vld [vmem:[%s6156_s2 + $0x2a4] ss:$24 sps:$4 sm:$0xff]   ;;  %v4389_v62 = vld [vmem:[%s6156_s2 + $0x2d8] ss:$24 sps:$4 sm:$0xff]   ;;  %v4393_v0 = vld [vmem:[%s6156_s2 + $0x2d4] ss:$24 sps:$4 sm:$0xff]  }
  0x1b   : > { %1154 = vmatpush1.bf16.msra.mxu1 %v4329_v21  ;;  %v4390_v63 = vld [vmem:[%s6156_s2 + $0x2a0] ss:$24 sps:$4 sm:$0xff]   ;;  %v4395_v2 = vld [vmem:[%s6156_s2 + $0x2d0] ss:$24 sps:$4 sm:$0xff]   ;;  %v4398_v3 = vld [vmem:[%s6156_s2 + $0x14] ss:$24 sps:$4 sm:$0xff]  }
  0x1c   : > { %1155 = vmatprep.subr.bf16.mxu1 %v4331_v23  ;;  %1113 = vmatpush1.bf16.msra.mxu0 %v4336_v25  ;;  %v4396_v4 = vld [vmem:[%s6156_s2 + $0x10] ss:$24 sps:$4 sm:$0xff]   ;;  %v4401_v5 = vld [vmem:[%s6156_s2 + $0x44] ss:$24 sps:$4 sm:$0xff]   ;;  %v4399_v6 = vld [vmem:[%s6156_s2 + $0x40] ss:$24 sps:$4 sm:$0xff]  }
  0x1d   : > { %1114 = vmatprep.subr.bf16.mxu0 %v4339_v26  ;;  %v4404_v7 = vld [vmem:[%s6156_s2 + $0x74] ss:$24 sps:$4 sm:$0xff]   ;;  %v4402_v8 = vld [vmem:[%s6156_s2 + $0x70] ss:$24 sps:$4 sm:$0xff]   ;;  %v4407_v9 = vld [vmem:[%s6156_s2 + $0xa4] ss:$24 sps:$4 sm:$0xff]  }
  0x1e   : > { %v4405_v10 = vld [vmem:[%s6156_s2 + $0xa0] ss:$24 sps:$4 sm:$0xff]   ;;  %v4410_v11 = vld [vmem:[%s6156_s2 + $0xd4] ss:$24 sps:$4 sm:$0xff]   ;;  %v4408_v12 = vld [vmem:[%s6156_s2 + $0xd0] ss:$24 sps:$4 sm:$0xff]  }
  0x1f   : > { %1156 = vmatpush1.bf16.msra.mxu1 %v4335_v24  ;;  %v4413_v13 = vld [vmem:[%s6156_s2 + $0x104] ss:$24 sps:$4 sm:$0xff]   ;;  %v4411_v14 = vld [vmem:[%s6156_s2 + $0x100] ss:$24 sps:$4 sm:$0xff]   ;;  %v4416_v15 = vld [vmem:[%s6156_s2 + $0x134] ss:$24 sps:$4 sm:$0xff]  }
  0x20   : > { %1157 = vmatprep.subr.bf16.mxu1 %v4337_v27  ;;  %1115 = vmatpush1.bf16.msra.mxu0 %v4342_v28  ;;  %v4414_v16 = vld [vmem:[%s6156_s2 + $0x130] ss:$24 sps:$4 sm:$0xff]   ;;  %v4419_v17 = vld [vmem:[%s6156_s2 + $0x164] ss:$24 sps:$4 sm:$0xff]   ;;  %v4417_v18 = vld [vmem:[%s6156_s2 + $0x160] ss:$24 sps:$4 sm:$0xff]  }
  0x21   : > { %1116 = vmatprep.subr.bf16.mxu0 %v4345_v30  ;;  %v4422_v19 = vld [vmem:[%s6156_s2 + $0x194] ss:$24 sps:$4 sm:$0xff]   ;;  %v4420_v20 = vld [vmem:[%s6156_s2 + $0x190] ss:$24 sps:$4 sm:$0xff]   ;;  %v4425_v21 = vld [vmem:[%s6156_s2 + $0x1c4] ss:$24 sps:$4 sm:$0xff]  }
  0x22   : > { %v4423_v22 = vld [vmem:[%s6156_s2 + $0x1c0] ss:$24 sps:$4 sm:$0xff]   ;;  %v4428_v23 = vld [vmem:[%s6156_s2 + $0x1f4] ss:$24 sps:$4 sm:$0xff]   ;;  %v4426_v24 = vld [vmem:[%s6156_s2 + $0x1f0] ss:$24 sps:$4 sm:$0xff]  }
  0x23   : > { %1158 = vmatpush1.bf16.msra.mxu1 %v4341_v29  ;;  %v4431_v25 = vld [vmem:[%s6156_s2 + $0x224] ss:$24 sps:$4 sm:$0xff]   ;;  %v4429_v26 = vld [vmem:[%s6156_s2 + $0x220] ss:$24 sps:$4 sm:$0xff]   ;;  %v4434_v27 = vld [vmem:[%s6156_s2 + $0x254] ss:$24 sps:$4 sm:$0xff]  }
  0x24   : > { %1159 = vmatprep.subr.bf16.mxu1 %v4343_v31  ;;  %1117 = vmatpush1.bf16.msra.mxu0 %v4348_v33  ;;  %v4432_v28 = vld [vmem:[%s6156_s2 + $0x250] ss:$24 sps:$4 sm:$0xff]   ;;  %v4437_v29 = vld [vmem:[%s6156_s2 + $0x284] ss:$24 sps:$4 sm:$0xff]   ;;  %v4435_v30 = vld [vmem:[%s6156_s2 + $0x280] ss:$24 sps:$4 sm:$0xff]  }
  0x25   : > { %1118 = vmatprep.subr.bf16.mxu0 %v4351_v34  ;;  %v4440_v31 = vld [vmem:[%s6156_s2 + $0x2b4] ss:$24 sps:$4 sm:$0xff]   ;;  %v4443_v33 = vld [vmem:[%s6156_s2 + $0x2e4] ss:$24 sps:$4 sm:$0xff]   ;;  %v4441_v34 = vld [vmem:[%s6156_s2 + $0x2e0] ss:$24 sps:$4 sm:$0xff]  }
  0x27   : > { %1160 = vmatpush1.bf16.msra.mxu1 %v4347_v32  ;;  %v4438_v32 = vld [vmem:[%s6156_s2 + $0x2b0] ss:$24 sps:$4 sm:$0xff]  }
  0x28   : > { %1161 = vmatprep.subr.bf16.mxu1 %v4349_v35  ;;  %1119 = vmatpush1.bf16.msra.mxu0 %v4354_v36  ;;  %v4720_v35 = vmov 0.0   ;;  %v585_v36 = vlaneseq }
  0x29   : > { %1120 = vmatprep.subr.bf16.mxu0 %v4357_v38 }
  0x2b   : > { %1162 = vmatpush1.bf16.msra.mxu1 %v4353_v37  ;;  %v5122_v37 = vshrl.u32 %v585_v36, 7 }
  0x2c   : > { %1163 = vmatprep.subr.bf16.mxu1 %v4355_v39  ;;  %1121 = vmatpush1.bf16.msra.mxu0 %v4360_v41  ;;  %v583_v39 = vld [vmem:[%s6157_s3] sm:$0x3f] }
  0x2d   : > { %1122 = vmatprep.subr.bf16.mxu0 %v4363_v42  ;;  %v595_v38 = vsub.s32 2, %v5122_v37  ;;  %v599_v42 = vsub.s32 3, %v5122_v37 }
  0x2f   : > { %1164 = vmatpush1.bf16.msra.mxu1 %v4359_v40  ;;  %v5129_v40 = vsub.s32 0, %v5122_v37  ;;  %v596_v41 = vrot.slane %v583_v39, %v595_v38 }
  0x30   : > { %1165 = vmatprep.subr.bf16.mxu1 %v4361_v43  ;;  %1123 = vmatpush1.bf16.msra.mxu0 %v4366_v46 }
  0x31   : > { %1124 = vmatprep.subr.bf16.mxu0 %v4369_v48 }
  0x33   : > { %1166 = vmatpush1.bf16.msra.mxu1 %v4365_v45  ;;  %v588_v45 = vrot.slane %v583_v39, %v5129_v40 }
  0x34   : > { %1167 = vmatprep.subr.bf16.mxu1 %v4367_v49  ;;  %1125 = vmatpush1.bf16.msra.mxu0 %v4372_v51 }
  0x35   : > { %1126 = vmatprep.subr.bf16.mxu0 %v4375_v52 }
  0x37   : > { %1168 = vmatpush1.bf16.msra.mxu1 %v4371_v50  ;;  %v600_v50 = vrot.slane %v583_v39, %v599_v42 }
  0x38   : > { %1169 = vmatprep.subr.bf16.mxu1 %v4373_v53  ;;  %1127 = vmatpush1.bf16.msra.mxu0 %v4378_v55 }
  0x39   : > { %1128 = vmatprep.subr.bf16.mxu0 %v4381_v56  ;;  %v5138_v56 = vsub.s32 1, %v5122_v37 }
  0x3b   : > { %1170 = vmatpush1.bf16.msra.mxu1 %v4377_v54 }
  0x3c   : > { %1171 = vmatprep.subr.bf16.mxu1 %v4379_v57  ;;  %1129 = vmatpush1.bf16.msra.mxu0 %v4384_v59 }
  0x3d   : > { %1130 = vmatprep.subr.bf16.mxu0 %v4387_v60  ;;  %v592_v60 = vrot.slane %v583_v39, %v5138_v56 }
  0x3f   : > { %1172 = vmatpush1.bf16.msra.mxu1 %v4383_v58 }
  0x40   : > { %1173 = vmatprep.subr.bf16.mxu1 %v4385_v61  ;;  %1131 = vmatpush1.bf16.msra.mxu0 %v4390_v63 }
  0x41   : > { %1132 = vmatprep.subr.bf16.mxu0 %v4393_v0  ;;  %v603_v0 = vsub.s32 4, %v5122_v37 }
  0x43   : > { %1174 = vmatpush1.bf16.msra.mxu1 %v4389_v62 }
  0x44   : > { %1133 = vmatpush1.bf16.msra.mxu0 %v4395_v2  ;;  %4276 = vmatprep.subr.bf16.mxu1 %v4720_v35  ;;  %v604_v2 = vrot.slane %v583_v39, %v603_v0 }
  0x45   : > { %1184 = vmatprep.subr.bf16.mxu0 %v4398_v3 }
  0x46   : > { %1176 = vmatmul.mubr.bf16.vlgmr.msra.gmra.mrb[0].mxu1 %v5012_v1 }
  0x47   : > { %1135 = vmatmul.mubr.bf16.vlgmr.msra.gmra.mrb[0].mxu0 %v5012_v1  ;;  %4278 = vmatprep.mubr.msk.bf16.mxu1 %vm4721_vm0, %v4720_v35 }
  0x48   : > { %1185 = vmatpush1.bf16.msra.mxu0 %v4396_v4  ;;  %1216 = vmatprep.mubr.bf16.mxu0 %v3862_v47 }
  0x49   : > { %1186 = vmatprep.subr.bf16.mxu0 %v4401_v5 }
  0x4c   : > { %1187 = vmatpush1.bf16.msra.mxu0 %v4399_v6 }
  0x4d   : > { %1188 = vmatprep.subr.bf16.mxu0 %v4404_v7 }
  0x50   : > { %1189 = vmatpush1.bf16.msra.mxu0 %v4402_v8 }
  0x51   : > { %1190 = vmatprep.subr.bf16.mxu0 %v4407_v9 }
  0x54   : > { %1191 = vmatpush1.bf16.msra.mxu0 %v4405_v10 }
  0x55   : > { %1192 = vmatprep.subr.bf16.mxu0 %v4410_v11 }
  0x58   : > { %1193 = vmatpush1.bf16.msra.mxu0 %v4408_v12 }
  0x59   : > { %1194 = vmatprep.subr.bf16.mxu0 %v4413_v13 }
  0x5c   : > { %1195 = vmatpush1.bf16.msra.mxu0 %v4411_v14 }
  0x5d   : > { %1196 = vmatprep.subr.bf16.mxu0 %v4416_v15  ;;  %v3959_v15 = vld [vmem:[%s476_s28] ss:$0 sm:$0xff] }
  0x60   : > { %1197 = vmatpush1.bf16.msra.mxu0 %v4414_v16 }
  0x61   : > { %1198 = vmatprep.subr.bf16.mxu0 %v4419_v17 }
  0x64   : > { %1199 = vmatpush1.bf16.msra.mxu0 %v4417_v18 }
  0x65   : > { %1200 = vmatprep.subr.bf16.mxu0 %v4422_v19 }
  0x68   : > { %1201 = vmatpush1.bf16.msra.mxu0 %v4420_v20 }
  0x69   : > { %1202 = vmatprep.subr.bf16.mxu0 %v4425_v21 }
  0x6c   : > { %1203 = vmatpush1.bf16.msra.mxu0 %v4423_v22 }
  0x6d   : > { %1204 = vmatprep.subr.bf16.mxu0 %v4428_v23 }
  0x70   : > { %1205 = vmatpush1.bf16.msra.mxu0 %v4426_v24 }
  0x71   : > { %1206 = vmatprep.subr.bf16.mxu0 %v4431_v25 }
  0x74   : > { %1207 = vmatpush1.bf16.msra.mxu0 %v4429_v26 }
  0x75   : > { %1208 = vmatprep.subr.bf16.mxu0 %v4434_v27 }
  0x78   : > { %1209 = vmatpush1.bf16.msra.mxu0 %v4432_v28 }
  0x79   : > { %1210 = vmatprep.subr.bf16.mxu0 %v4437_v29 }
  0x7c   : > { %1211 = vmatpush1.bf16.msra.mxu0 %v4435_v30 }
  0x7d   : > { %1212 = vmatprep.subr.bf16.mxu0 %v4440_v31 }
  0x80   : > { %1213 = vmatpush1.bf16.msra.mxu0 %v4438_v32 }
  0x81   : > { %1214 = vmatprep.subr.bf16.mxu0 %v4443_v33 }
  0x84   : > { %1215 = vmatpush1.bf16.msra.mxu0 %v4441_v34 }
  0x85   : > { %4264 = vmatprep.subr.bf16.mxu0 %v4720_v35 }
  0x87   : > { %1217 = vmatmul.mubr.bf16.vlgmr.msra.gmra.mrb[4].mxu0 %v5012_v1  ;;  %v607_v1 = vsub.s32 5, %v5122_v37 }
  0x88   : > { %4266 = vmatprep.mubr.msk.bf16.mxu0 %vm4721_vm0, %v4720_v35 }
  0x89   : > { %v608_v3 = vrot.slane %v583_v39, %v607_v1 }
 0x119   : > { %v1177_v43 = vpop.f32.mrb[0].mxu1 }
 0x11a   : > { %v1178_v46 = vadd.f32 %v1177_v43, %v596_v41  ;;  %v1179_v47 = vpop.f32.mrb[1].mxu1  ;;  %v1136_v52 = vpop.f32.mrb[0].mxu0 }
 0x11b   : > { %v1181_v48 = vpop.f32.mrb[2].mxu1  ;;  %v1137_v53 = vadd.f32 %v1136_v52, %v588_v45  ;;  %v1138_v54 = vpop.f32.mrb[1].mxu0  ;;  %v1180_v58 = vadd.f32 %v1179_v47, %v600_v50  ;;  %v4446_v50 = vld [vmem:[%s6158_s4 + $0x4] ss:$8 sps:$4 sm:$0xff]  }
 0x11c   : > { %v1227_v49 = vpack.c.bf16 %v1178_v46, %v1178_v46  ;;  %v1182_v51 = vpop.f32.mrb[3].mxu1  ;;  %v1140_v55 = vpop.f32.mrb[2].mxu0  ;;  %v1139_v62 = vadd.f32 %v1138_v54, %v592_v60  ;;  %v4453_v60 = vld [vmem:[%s6158_s4 + $0x30] ss:$8 sps:$4 sm:$0xff]  }
 0x11d   : > { %v1141_v57 = vpop.f32.mrb[3].mxu0  ;;  %v1225_v59 = vpack.c.bf16 %v1137_v53, %v1137_v53  ;;  %v1228_v61 = vpack.c.bf16 %v1180_v58, %v1180_v58  ;;  %v4444_v53 = vld [vmem:[%s6158_s4] ss:$8 sps:$4 sm:$0xff]   ;;  %v4449_v55 = vld [vmem:[%s6158_s4 + $0x14] ss:$8 sps:$4 sm:$0xff]  }
 0x11e   : > { %4265 = vmatpush3.bf16.xpose.msra.mxu0 %v1227_v49  ;;  %v1226_v63 = vpack.c.bf16 %v1139_v62, %v1139_v62  ;;  %v4447_v57 = vld [vmem:[%s6158_s4 + $0x10] ss:$8 sps:$4 sm:$0xff]   ;;  %v4450_v58 = vld [vmem:[%s6158_s4 + $0x20] ss:$8 sps:$4 sm:$0xff]  }
 0x11f   : > { %4270 = vmatprep.subr.bf16.mxu0 %v4720_v35  ;;  %v4456_v62 = vld [vmem:[%s6158_s4 + $0x40] ss:$8 sps:$4 sm:$0xff]  }
 0x125   : > { %4267 = vmatmul.mubr.bf16.vlgmr.msra.gmra.mrb[8].mxu0 %v1225_v59  ;;  %v4455_v59 = vld [vmem:[%s6158_s4 + $0x34] ss:$8 sps:$4 sm:$0xff]  }
 0x126   : > { %4271 = vmatpush3.bf16.xpose.msra.mxu0 %v1228_v61  ;;  %4272 = vmatprep.mubr.msk.bf16.mxu0 %vm4721_vm0, %v4720_v35  ;;  %v4458_v61 = vld [vmem:[%s6158_s4 + $0x44] ss:$8 sps:$4 sm:$0xff]  }
 0x12d   : > { %4273 = vmatmul.mubr.bf16.vlgmr.msra.gmra.mrb[12].mxu0 %v1226_v63  ;;  %v4461_v63 = vld [vmem:[%s6158_s4 + $0x54] ss:$8 sps:$4 sm:$0xff]  }
 0x15a   : > { %v1218_v4 = vpop.f32.mrb[4].mxu0 }
 0x15b   : > { %v1219_v5 = vadd.f32 %v1218_v4, %v604_v2  ;;  %v1220_v6 = vpop.f32.mrb[5].mxu0  ;;  %v4459_v2 = vld [vmem:[%s6158_s4 + $0x50] ss:$8 sps:$4 sm:$0xff]   ;;  %v4462_v4 = vld [vmem:[%s6158_s4 + $0x60] ss:$8 sps:$4 sm:$0xff]  }
 0x15c   : > { %v1221_v7 = vadd.f32 %v1220_v6, %v608_v3  ;;  %v1222_v8 = vpop.f32.mrb[6].mxu0  ;;  %v4464_v3 = vld [vmem:[%s6158_s4 + $0x64] ss:$8 sps:$4 sm:$0xff]   ;;  %v4465_v6 = vld [vmem:[%s6158_s4 + $0x70] ss:$8 sps:$4 sm:$0xff]  }
 0x15d   : > { %v1229_v9 = vpack.c.bf16 %v1219_v5, %v1219_v5  ;;  %v1223_v10 = vpop.f32.mrb[7].mxu0  ;;  %v4467_v5 = vld [vmem:[%s6158_s4 + $0x74] ss:$8 sps:$4 sm:$0xff]   ;;  %v4468_v8 = vld [vmem:[%s6158_s4 + $0x80] ss:$8 sps:$4 sm:$0xff]  }
 0x15e   : > { %v1230_v11 = vpack.c.bf16 %v1221_v7, %v1221_v7  ;;  %v4470_v7 = vld [vmem:[%s6158_s4 + $0x84] ss:$8 sps:$4 sm:$0xff]   ;;  %v4471_v10 = vld [vmem:[%s6158_s4 + $0x90] ss:$8 sps:$4 sm:$0xff]  }
 0x15f   : > { %v1351_v12 = vsel %vm1349_vm1, %v1229_v9, 0  ;;  %v4473_v9 = vld [vmem:[%s6158_s4 + $0x94] ss:$8 sps:$4 sm:$0xff]  }
 0x160   : > { %v1397_v13 = vsel %vm1349_vm1, %v1230_v11, 0  ;;  %4277 = vmatpush3.bf16.msra.mxu1 %v1351_v12  ;;  %v4476_v11 = vld [vmem:[%s6158_s4 + $0xa4] ss:$8 sps:$4 sm:$0xff]   ;;  %v4474_v12 = vld [vmem:[%s6158_s4 + $0xa0] ss:$8 sps:$4 sm:$0xff]  }
 0x161   : > { %4282 = vmatprep.subr.bf16.mxu1 %v4720_v35 }
 0x1f8   : > { %v1265_v14 = vpop.f32.mrb[8].mxu0 }
 0x1f9   : > { %v1311_v16 = vmul.f32 0.088388346, %v1265_v14  ;;  %v4268_v17 = vpop.f32.mrb[9].mxu0  ;;  %v4477_v14 = vld [vmem:[%s6158_s4 + $0xb0] ss:$8 sps:$4 sm:$0xff]  }
 0x1fa   : > { %v1268_v18 = vpop.f32.mrb[10].mxu0  ;;  %v4485_v17 = vld [vmem:[%s6158_s4 + $0xd4] ss:$8 sps:$4 sm:$0xff]  }
 0x1fb   : > { %v4269_v19 = vpop.f32.mrb[11].mxu0  ;;  %v1319_v20 = vadd.f32 %v3959_v15, %v1311_v16  ;;  %v4480_v16 = vld [vmem:[%s6158_s4 + $0xc0] ss:$8 sps:$4 sm:$0xff]   ;;  %v4483_v18 = vld [vmem:[%s6158_s4 + $0xd0] ss:$8 sps:$4 sm:$0xff]  }
 0x1fc   : > { %v4486_v19 = vld [vmem:[%s6158_s4 + $0xe0] ss:$8 sps:$4 sm:$0xff]  }
 0x1fd   : > { %v1322_v21 = vsel %vm1321_vm2, %v1319_v20, -inf }
 0x1fe   : > { %1323 = vmax.xlane.f32.xlu0 %v1322_v21  ;;  %v4491_v21 = vld [vmem:[%s6158_s4 + $0xf4] ss:$8 sps:$4 sm:$0xff]  }
 0x200   : > { %v1305_v22 = vpop.f32.mrb[12].mxu0 }
 0x201   : > { %v1312_v23 = vmul.f32 0.088388346, %v1305_v22  ;;  %v4274_v24 = vpop.f32.mrb[13].mxu0  ;;  %v4489_v22 = vld [vmem:[%s6158_s4 + $0xf0] ss:$8 sps:$4 sm:$0xff]  }
 0x202   : > { %v1308_v25 = vpop.f32.mrb[14].mxu0 }
 0x203   : > { %v4275_v26 = vpop.f32.mrb[15].mxu0  ;;  %v1320_v27 = vadd.f32 %v3959_v15, %v1312_v23  ;;  %v4482_v15 = vld [vmem:[%s6158_s4 + $0xc4] ss:$8 sps:$4 sm:$0xff]  }
 0x205   : > { %v1325_v28 = vsel %vm1321_vm2, %v1320_v27, -inf }
 0x206   : > { %1326 = vmax.xlane.f32.xlu0 %v1325_v28 }
 0x28b   : > { %v1324_v29 = vpop.xlane.xlu0 %1323 }
 0x28c   : > { %v1328_v30 = vsub.f32 %v1319_v20, %v1324_v29  ;;  %v4488_v20 = vld [vmem:[%s6158_s4 + $0xe4] ss:$8 sps:$4 sm:$0xff]  }
 0x28e   : > { %v1330_v31 = vmul.f32 1.442695, %v1328_v30 }
 0x290   : > { %4684 = vpow2.f32 %v1330_v31 }
 0x293   : > { %v1327_v32 = vpop.xlane.xlu0 %1326 }
 0x294   : > { %v1329_v33 = vsub.f32 %v1320_v27, %v1327_v32 }
 0x296   : > { %v1332_v34 = vmul.f32 1.442695, %v1329_v33  ;;  %v1473_v33 = vld [vmem:[%s6159_s5] sm:$0x3] }
 0x298   : > { %4686 = vpow2.f32 %v1332_v34  ;;  %v1478_v34 = vrot.slane %v1473_v33, %v5129_v40 }
 0x29a   : > { %v4685_v36 = vpop.eup %4684 }
 0x29b   : > { %v1334_v39 = vsel %vm1321_vm2, %v4685_v36, 0.0 }
 0x29c   : > { %1335 = vadd.xlane.f32.xlu1 %v1334_v39  ;;  %v484_v39 = vunpack.c.l.bf16 %v4949_v44 }
 0x2a2   : > { %v4687_v41 = vpop.eup %4686 }
 0x2a3   : > { %v1337_v43 = vsel %vm1321_vm2, %v4687_v41, 0.0 }
 0x2a4   : > { %1338 = vadd.xlane.f32.xlu1 %v1337_v43  ;;  %v485_v43 = vunpack.c.h.bf16 %v4949_v44  ;;  %v1739_v44 = vld [vmem:[%s6162_s8 + $0x20] sm:$0xff] }
 0x329   : > { %v1336_v45 = vpop.xlane.xlu1 %1335 }
 0x32a   : > { %4688 = vrcp.f32 %v1336_v45 }
 0x331   : > { %v1339_v46 = vpop.xlane.xlu1 %1338 }
 0x332   : > { %4690 = vrcp.f32 %v1339_v46 }
 0x334   : > { %v4689_v47 = vpop.eup %4688 }
 0x335   : > { %v1342_v48 = vmul.f32 %v4689_v47, %v4685_v36  ;;  %v1482_v36 = vrot.slane %v1473_v33, %v5138_v56 }
 0x337   : > { %v1344_v49 = vpack.c.bf16 %v1342_v48, %v1342_v48 }
 0x339   : > { %4279 = vmatmul.mubr.msk.bf16.vlgmr.msra.gmra.mrb[4].mxu1 %vm1321_vm2, %v1344_v49 }
 0x33a   : > { %4283 = vmatpush3.bf16.msra.mxu1 %v1397_v13  ;;  %4284 = vmatprep.mubr.msk.bf16.mxu1 %vm4721_vm0, %v4720_v35  ;;  %v4452_v35 = vld [vmem:[%s6158_s4 + $0x24] ss:$8 sps:$4 sm:$0xff]   ;;  %v4479_v13 = vld [vmem:[%s6158_s4 + $0xb4] ss:$8 sps:$4 sm:$0xff]  }
 0x33b   : > { %1645 = vmatprep.subr.bf16.mxu1 %v4446_v50 }
 0x33c   : > { %v4691_v51 = vpop.eup %4690 }
 0x33d   : > { %v1343_v52 = vmul.f32 %v4691_v51, %v4687_v41 }
 0x33f   : > { %v1345_v54 = vpack.c.bf16 %v1343_v52, %v1343_v52 }
 0x341   : > { %4285 = vmatmul.mubr.msk.bf16.vlgmr.msra.gmra.mrb[8].mxu1 %vm1321_vm2, %v1345_v54  ;;  %v1736_v54 = vld [vmem:[%s6162_s8 + $0x8] sm:$0xff] }
 0x342   : > { %1646 = vmatpush1.bf16.msra.mxu1 %v4444_v53  ;;  %v1735_v53 = vld [vmem:[%s6162_s8] sm:$0xff] }
 0x343   : > { %1647 = vmatprep.subr.bf16.mxu1 %v4449_v55  ;;  %v3994_v55 = vcombine.low %v1735_v53, %v1739_v44 }
 0x346   : > { %1648 = vmatpush1.bf16.msra.mxu1 %v4447_v57  ;;  %v3995_v57 = vcombine.high %v1735_v53, %v1739_v44  ;;  %v1795_v53 = vld [vmem:[%s6162_s8 + $0x1e0] sm:$0xff]  ;;  %v1792_v44 = vld [vmem:[%s6162_s8 + $0x1c8] sm:$0xff] }
 0x347   : > { %1649 = vmatprep.subr.bf16.mxu1 %v4452_v35  ;;  %v1740_v35 = vld [vmem:[%s6162_s8 + $0x28] sm:$0xff] }
 0x348   : > { %2545 = vmatprep.subr.bf16.mxu0 %v3995_v57 }
 0x349   : > { %2546 = vmatpush1.bf16.msra.mxu0 %v3994_v55 }
 0x34a   : > { %1650 = vmatpush1.bf16.msra.mxu1 %v4450_v58  ;;  %v1743_v58 = vld [vmem:[%s6162_s8 + $0x40] sm:$0xff] }
 0x34b   : > { %1651 = vmatprep.subr.bf16.mxu1 %v4455_v59  ;;  %v1747_v59 = vld [vmem:[%s6162_s8 + $0x60] sm:$0xff] }
 0x34e   : > { %1652 = vmatpush1.bf16.msra.mxu1 %v4453_v60  ;;  %v3996_v60 = vcombine.low %v1736_v54, %v1740_v35 }
 0x34f   : > { %1653 = vmatprep.subr.bf16.mxu1 %v4458_v61  ;;  %v3997_v61 = vcombine.high %v1736_v54, %v1740_v35  ;;  %v1796_v54 = vld [vmem:[%s6162_s8 + $0x1e8] sm:$0xff] }
 0x352   : > { %1654 = vmatpush1.bf16.msra.mxu1 %v4456_v62  ;;  %v4003_v62 = vcombine.high %v1743_v58, %v1747_v59 }
 0x353   : > { %1655 = vmatprep.subr.bf16.mxu1 %v4461_v63  ;;  %v1744_v63 = vld [vmem:[%s6162_s8 + $0x48] sm:$0xff] }
 0x354   : > { %2547 = vmatprep.subr.bf16.mxu0 %v4003_v62  ;;  %v1804_v62 = vld [vmem:[%s6162_s8 + $0x228] sm:$0xff] }
 0x356   : > { %1656 = vmatpush1.bf16.msra.mxu1 %v4459_v2  ;;  %v1748_v2 = vld [vmem:[%s6162_s8 + $0x68] sm:$0xff] }
 0x357   : > { %1657 = vmatprep.subr.bf16.mxu1 %v4464_v3  ;;  %v1751_v3 = vld [vmem:[%s6162_s8 + $0x80] sm:$0xff] }
 0x35a   : > { %1658 = vmatpush1.bf16.msra.mxu1 %v4462_v4  ;;  %v4005_v4 = vcombine.high %v1744_v63, %v1748_v2 }
 0x35b   : > { %1659 = vmatprep.subr.bf16.mxu1 %v4467_v5  ;;  %v1755_v5 = vld [vmem:[%s6162_s8 + $0xa0] sm:$0xff] }
 0x35e   : > { %1660 = vmatpush1.bf16.msra.mxu1 %v4465_v6  ;;  %v1752_v6 = vld [vmem:[%s6162_s8 + $0x88] sm:$0xff] }
 0x35f   : > { %1661 = vmatprep.subr.bf16.mxu1 %v4470_v7  ;;  %v1756_v7 = vld [vmem:[%s6162_s8 + $0xa8] sm:$0xff] }
 0x362   : > { %1662 = vmatpush1.bf16.msra.mxu1 %v4468_v8  ;;  %v4002_v8 = vcombine.low %v1743_v58, %v1747_v59  ;;  %v4053_v58 = vcombine.high %v1792_v44, %v1796_v54  ;;  %v1799_v59 = vld [vmem:[%s6162_s8 + $0x200] sm:$0xff] }
 0x363   : > { %1663 = vmatprep.subr.bf16.mxu1 %v4473_v9  ;;  %v4004_v9 = vcombine.low %v1744_v63, %v1748_v2  ;;  %v4052_v2 = vcombine.low %v1792_v44, %v1796_v54  ;;  %v1840_v44 = vld [vmem:[%s6162_s8 + $0x348] sm:$0xff] }
 0x364   : > { %2548 = vmatpush1.bf16.msra.mxu0 %v4002_v8  ;;  %v1812_v8 = vld [vmem:[%s6162_s8 + $0x268] sm:$0xff] }
 0x366   : > { %1664 = vmatpush1.bf16.msra.mxu1 %v4471_v10  ;;  %v4011_v10 = vcombine.high %v1751_v3, %v1755_v5 }
 0x367   : > { %1665 = vmatprep.subr.bf16.mxu1 %v4476_v11  ;;  %v4013_v11 = vcombine.high %v1752_v6, %v1756_v7 }
 0x368   : > { %2549 = vmatprep.subr.bf16.mxu0 %v4011_v10 }
 0x36a   : > { %1666 = vmatpush1.bf16.msra.mxu1 %v4474_v12  ;;  %v1759_v12 = vld [vmem:[%s6162_s8 + $0xc0] sm:$0xff] }
 0x36b   : > { %1667 = vmatprep.subr.bf16.mxu1 %v4479_v13  ;;  %v1763_v13 = vld [vmem:[%s6162_s8 + $0xe0] sm:$0xff] }
 0x36e   : > { %1668 = vmatpush1.bf16.msra.mxu1 %v4477_v14  ;;  %v1760_v14 = vld [vmem:[%s6162_s8 + $0xc8] sm:$0xff] }
 0x36f   : > { %1669 = vmatprep.subr.bf16.mxu1 %v4482_v15  ;;  %v1764_v15 = vld [vmem:[%s6162_s8 + $0xe8] sm:$0xff] }
 0x372   : > { %1670 = vmatpush1.bf16.msra.mxu1 %v4480_v16  ;;  %v4010_v16 = vcombine.low %v1751_v3, %v1755_v5  ;;  %v1807_v5 = vld [vmem:[%s6162_s8 + $0x240] sm:$0xff] }
 0x373   : > { %1671 = vmatprep.subr.bf16.mxu1 %v4485_v17  ;;  %v4012_v17 = vcombine.low %v1752_v6, %v1756_v7  ;;  %v1811_v6 = vld [vmem:[%s6162_s8 + $0x260] sm:$0xff]  ;;  %v1808_v7 = vld [vmem:[%s6162_s8 + $0x248] sm:$0xff] }
 0x374   : > { %2550 = vmatpush1.bf16.msra.mxu0 %v4010_v16  ;;  %v1820_v16 = vld [vmem:[%s6162_s8 + $0x2a8] sm:$0xff] }
 0x376   : > { %1672 = vmatpush1.bf16.msra.mxu1 %v4483_v18  ;;  %v4019_v18 = vcombine.high %v1759_v12, %v1763_v13 }
 0x377   : > { %1673 = vmatprep.subr.bf16.mxu1 %v4488_v20  ;;  %v1767_v20 = vld [vmem:[%s6162_s8 + $0x100] sm:$0xff] }
 0x378   : > { %2551 = vmatprep.subr.bf16.mxu0 %v4019_v18  ;;  %v4068_v18 = vcombine.low %v1808_v7, %v1812_v8 }
 0x37a   : > { %1674 = vmatpush1.bf16.msra.mxu1 %v4486_v19  ;;  %v4021_v19 = vcombine.high %v1760_v14, %v1764_v15 }
 0x37b   : > { %1675 = vmatprep.subr.bf16.mxu1 %v4491_v21  ;;  %v1771_v21 = vld [vmem:[%s6162_s8 + $0x120] sm:$0xff] }
 0x37e   : > { %1676 = vmatpush1.bf16.msra.mxu1 %v4489_v22  ;;  %v1768_v22 = vld [vmem:[%s6162_s8 + $0x108] sm:$0xff] }
 0x37f   : > { %2586 = vmatprep.subr.bf16.mxu1 %v3997_v61  ;;  %v1800_v61 = vld [vmem:[%s6162_s8 + $0x208] sm:$0xff] }
 0x380   : > { %v4060_v10 = vcombine.low %v1800_v61, %v1804_v62 }
 0x40c   : > { %v1387_v23 = vpop.f32.mrb[4].mxu1 }
 0x40d   : > { %v4280_v24 = vpop.f32.mrb[5].mxu1  ;;  %v1439_v30 = vpack.c.bf16 %v1387_v23, %v1387_v23  ;;  %v1772_v23 = vld [vmem:[%s6162_s8 + $0x128] sm:$0xff] }
 0x40e   : > { %v1390_v25 = vpop.f32.mrb[6].mxu1  ;;  %v4018_v24 = vcombine.low %v1759_v12, %v1763_v13  ;;  %v4028_v33 = vcombine.low %v1768_v22, %v1772_v23  ;;  %v4069_v12 = vcombine.high %v1808_v7, %v1812_v8  ;;  %v1815_v13 = vld [vmem:[%s6162_s8 + $0x280] sm:$0xff]  ;;  %v1856_v7 = vld [vmem:[%s6162_s8 + $0x3c8] sm:$0xff] }
 0x40f   : > { %v4281_v26 = vpop.f32.mrb[7].mxu1  ;;  %v4020_v25 = vcombine.low %v1760_v14, %v1764_v15  ;;  %v1819_v14 = vld [vmem:[%s6162_s8 + $0x2a0] sm:$0xff]  ;;  %v1816_v15 = vld [vmem:[%s6162_s8 + $0x288] sm:$0xff] }
 0x410   : > { %v4027_v26 = vcombine.high %v1767_v20, %v1771_v21  ;;  %2552 = vmatpush1.bf16.msra.mxu0 %v4018_v24 }
 0x412   : > { %2553 = vmatprep.subr.bf16.mxu0 %v4027_v26 }
 0x414   : > { %v1433_v27 = vpop.f32.mrb[8].mxu1 }
 0x415   : > { %v1440_v28 = vpack.c.bf16 %v1433_v27, %v1433_v27  ;;  %v4286_v29 = vpop.f32.mrb[9].mxu1  ;;  %v4029_v27 = vcombine.high %v1768_v22, %v1772_v23  ;;  %v4076_v22 = vcombine.low %v1816_v15, %v1820_v16 }
 0x416   : > { %v1436_v31 = vpop.f32.mrb[10].mxu1  ;;  %v1779_v29 = vld [vmem:[%s6162_s8 + $0x160] sm:$0xff] }
 0x417   : > { %v4287_v32 = vpop.f32.mrb[11].mxu1  ;;  %1677 = vmatprep.mubr.bf16.mxu1 %v1440_v28  ;;  %v1775_v28 = vld [vmem:[%s6162_s8 + $0x140] sm:$0xff]  ;;  %v1780_v31 = vld [vmem:[%s6162_s8 + $0x168] sm:$0xff] }
 0x418   : > { %1678 = vmatmul.mubr.bf16.vlgmr.msra.gmra.mrb[12].mxu1 %v1439_v30  ;;  %v1776_v30 = vld [vmem:[%s6162_s8 + $0x148] sm:$0xff]  ;;  %v4026_v32 = vcombine.low %v1767_v20, %v1771_v21  ;;  %v4077_v20 = vcombine.high %v1816_v15, %v1820_v16  ;;  %v4074_v21 = vcombine.low %v1815_v13, %v1819_v14  ;;  %v1738_v15 = vld [vmem:[%s6162_s8 + $0x18] sm:$0xff] }
 0x419   : > { %2587 = vmatpush1.bf16.msra.mxu1 %v3996_v60  ;;  %v1803_v60 = vld [vmem:[%s6162_s8 + $0x220] sm:$0xff] }
 0x41a   : > { %2588 = vmatprep.subr.bf16.mxu1 %v4005_v4  ;;  %2554 = vmatpush1.bf16.msra.mxu0 %v4026_v32  ;;  %v4059_v3 = vcombine.high %v1799_v59, %v1803_v60  ;;  %v4061_v4 = vcombine.high %v1800_v61, %v1804_v62  ;;  %v1828_v32 = vld [vmem:[%s6162_s8 + $0x2e8] sm:$0xff] }
 0x41b   : > { %v1848_v61 = vld [vmem:[%s6162_s8 + $0x388] sm:$0xff] }
 0x41d   : > { %2589 = vmatpush1.bf16.msra.mxu1 %v4004_v9  ;;  %v4058_v9 = vcombine.low %v1799_v59, %v1803_v60  ;;  %v1847_v59 = vld [vmem:[%s6162_s8 + $0x380] sm:$0xff] }
 0x41e   : > { %2590 = vmatprep.subr.bf16.mxu1 %v4013_v11  ;;  %v4067_v11 = vcombine.high %v1807_v5, %v1811_v6  ;;  %v1851_v60 = vld [vmem:[%s6162_s8 + $0x3a0] sm:$0xff] }
 0x41f   : > { %v4107_v62 = vcombine.high %v1847_v59, %v1851_v60 }
 0x421   : > { %2591 = vmatpush1.bf16.msra.mxu1 %v4012_v17  ;;  %v4066_v17 = vcombine.low %v1807_v5, %v1811_v6  ;;  %v1855_v5 = vld [vmem:[%s6162_s8 + $0x3c0] sm:$0xff] }
 0x422   : > { %2592 = vmatprep.subr.bf16.mxu1 %v4021_v19  ;;  %v4075_v19 = vcombine.high %v1815_v13, %v1819_v14  ;;  %v1859_v6 = vld [vmem:[%s6162_s8 + $0x3e0] sm:$0xff]  ;;  %v1737_v13 = vld [vmem:[%s6162_s8 + $0x10] sm:$0xff] }
 0x423   : > { %v4115_v8 = vcombine.high %v1855_v5, %v1859_v6  ;;  %v1741_v14 = vld [vmem:[%s6162_s8 + $0x30] sm:$0xff] }
 0x424   : > { %v3999_v16 = vcombine.high %v1737_v13, %v1741_v14 }
 0x425   : > { %2593 = vmatpush1.bf16.msra.mxu1 %v4020_v25 }
 0x426   : > { %2594 = vmatprep.subr.bf16.mxu1 %v4029_v27 }
 0x429   : > { %2595 = vmatpush1.bf16.msra.mxu1 %v4028_v33 }
 0x4eb   : > { %v1679_v41 = vpop.f32.mrb[12].mxu1 }
 0x4ec   : > { %v1680_v45 = vadd.f32 %v1679_v41, %v1478_v34  ;;  %v1681_v46 = vpop.f32.mrb[13].mxu1  ;;  %v4035_v34 = vcombine.high %v1775_v28, %v1779_v29  ;;  %v1787_v41 = vld [vmem:[%s6162_s8 + $0x1a0] sm:$0xff] }
 0x4ed   : > { %v1682_v47 = vadd.f32 %v1681_v46, %v1482_v36  ;;  %v1683_v48 = vpop.f32.mrb[14].mxu1  ;;  %v4037_v36 = vcombine.high %v1776_v30, %v1780_v31  ;;  %v4034_v46 = vcombine.low %v1775_v28, %v1779_v29 }
 0x4ee   : > { %v5266_v49 = vadd.f32 %v1680_v45, %v484_v39  ;;  %v1684_v50 = vpop.f32.mrb[15].mxu1  ;;  %v1783_v39 = vld [vmem:[%s6162_s8 + $0x180] sm:$0xff]  ;;  %v1788_v45 = vld [vmem:[%s6162_s8 + $0x1a8] sm:$0xff]  ;;  %2555 = vmatprep.subr.bf16.mxu0 %v4035_v34 }
 0x4ef   : > { %v5268_v51 = vadd.f32 %v1682_v47, %v485_v43  ;;  %v1784_v43 = vld [vmem:[%s6162_s8 + $0x188] sm:$0xff]  ;;  %v4036_v47 = vcombine.low %v1776_v30, %v1780_v31  ;;  %v4043_v48 = vcombine.high %v1783_v39, %v1787_v41  ;;  %2596 = vmatprep.subr.bf16.mxu1 %v4037_v36  ;;  %2556 = vmatpush1.bf16.msra.mxu0 %v4034_v46  ;;  %v1823_v30 = vld [vmem:[%s6162_s8 + $0x2c0] sm:$0xff] }
 0x4f0   : > { %v4045_v50 = vcombine.high %v1784_v43, %v1788_v45  ;;  %v4042_v55 = vcombine.low %v1783_v39, %v1787_v41  ;;  %v4044_v57 = vcombine.low %v1784_v43, %v1788_v45  ;;  %v1831_v39 = vld [vmem:[%s6162_s8 + $0x300] sm:$0xff]  ;;  %v1832_v43 = vld [vmem:[%s6162_s8 + $0x308] sm:$0xff] }
 0x4f1   : > { %v1690_v52 = vadd.f32 %v5268_v51, %v5266_v49  ;;  %2597 = vmatpush1.bf16.msra.mxu1 %v4036_v47  ;;  %2557 = vmatprep.subr.bf16.mxu0 %v4043_v48  ;;  %v1835_v41 = vld [vmem:[%s6162_s8 + $0x320] sm:$0xff]  ;;  %v1836_v46 = vld [vmem:[%s6162_s8 + $0x328] sm:$0xff] }
 0x4f2   : > { %2598 = vmatprep.subr.bf16.mxu1 %v4045_v50  ;;  %v4091_v45 = vcombine.high %v1831_v39, %v1835_v41  ;;  %v4090_v47 = vcombine.low %v1831_v39, %v1835_v41  ;;  %v4092_v48 = vcombine.low %v1832_v43, %v1836_v46  ;;  %v4093_v50 = vcombine.high %v1832_v43, %v1836_v46  ;;  %v1745_v41 = vld [vmem:[%s6162_s8 + $0x50] sm:$0xff]  ;;  %v1750_v43 = vld [vmem:[%s6162_s8 + $0x78] sm:$0xff] }
 0x4f3   : > { %1691 = vadd.xlane.f32.xlu0 %v1690_v52  ;;  %v1791_v52 = vld [vmem:[%s6162_s8 + $0x1c0] sm:$0xff]  ;;  %2558 = vmatpush1.bf16.msra.mxu0 %v4042_v55  ;;  %v1844_v55 = vld [vmem:[%s6162_s8 + $0x368] sm:$0xff] }
 0x4f4   : > { %v4051_v35 = vcombine.high %v1791_v52, %v1795_v53  ;;  %v4050_v63 = vcombine.low %v1791_v52, %v1795_v53  ;;  %v1839_v52 = vld [vmem:[%s6162_s8 + $0x340] sm:$0xff] }
 0x4f5   : > { %2599 = vmatpush1.bf16.msra.mxu1 %v4044_v57  ;;  %v1843_v53 = vld [vmem:[%s6162_s8 + $0x360] sm:$0xff] }
 0x4f6   : > { %2559 = vmatprep.subr.bf16.mxu0 %v4051_v35  ;;  %2600 = vmatprep.subr.bf16.mxu1 %v4053_v58  ;;  %v4099_v54 = vcombine.high %v1839_v52, %v1843_v53  ;;  %v4098_v57 = vcombine.low %v1839_v52, %v1843_v53  ;;  %v4100_v35 = vcombine.low %v1840_v44, %v1844_v55  ;;  %v1757_v52 = vld [vmem:[%s6162_s8 + $0xb0] sm:$0xff]  ;;  %v1754_v53 = vld [vmem:[%s6162_s8 + $0x98] sm:$0xff] }
 0x4f7   : > { %2560 = vmatpush1.bf16.msra.mxu0 %v4050_v63  ;;  %v4101_v58 = vcombine.high %v1840_v44, %v1844_v55  ;;  %v1852_v63 = vld [vmem:[%s6162_s8 + $0x3a8] sm:$0xff]  ;;  %v1758_v44 = vld [vmem:[%s6162_s8 + $0xb8] sm:$0xff] }
 0x4f8   : > { %2561 = vmatprep.subr.bf16.mxu0 %v4059_v3  ;;  %v4108_v3 = vcombine.low %v1848_v61, %v1852_v63 }
 0x4f9   : > { %2601 = vmatpush1.bf16.msra.mxu1 %v4052_v2  ;;  %v4106_v2 = vcombine.low %v1847_v59, %v1851_v60  ;;  %v1765_v59 = vld [vmem:[%s6162_s8 + $0xf0] sm:$0xff]  ;;  %v1762_v60 = vld [vmem:[%s6162_s8 + $0xd8] sm:$0xff] }
 0x4fa   : > { %2602 = vmatprep.subr.bf16.mxu1 %v4061_v4  ;;  %v4109_v4 = vcombine.high %v1848_v61, %v1852_v63  ;;  %v1766_v61 = vld [vmem:[%s6162_s8 + $0xf8] sm:$0xff]  ;;  %v4016_v63 = vcombine.low %v1754_v53, %v1758_v44 }
 0x4fb   : > { %2562 = vmatpush1.bf16.msra.mxu0 %v4058_v9  ;;  %v1860_v9 = vld [vmem:[%s6162_s8 + $0x3e8] sm:$0xff] }
 0x4fc   : > { %2563 = vmatprep.subr.bf16.mxu0 %v4067_v11  ;;  %v4117_v11 = vcombine.high %v1856_v7, %v1860_v9 }
 0x4fd   : > { %2603 = vmatpush1.bf16.msra.mxu1 %v4060_v10  ;;  %v4114_v10 = vcombine.low %v1855_v5, %v1859_v6  ;;  %v1773_v5 = vld [vmem:[%s6162_s8 + $0x130] sm:$0xff]  ;;  %v1770_v6 = vld [vmem:[%s6162_s8 + $0x118] sm:$0xff] }
 0x4fe   : > { %2604 = vmatprep.subr.bf16.mxu1 %v4069_v12  ;;  %v4116_v12 = vcombine.low %v1856_v7, %v1860_v9  ;;  %v1774_v7 = vld [vmem:[%s6162_s8 + $0x138] sm:$0xff]  ;;  %v4024_v9 = vcombine.low %v1762_v60, %v1766_v61 }
 0x4ff   : > { %2564 = vmatpush1.bf16.msra.mxu0 %v4066_v17  ;;  %v1742_v17 = vld [vmem:[%s6162_s8 + $0x38] sm:$0xff] }
 0x500   : > { %2565 = vmatprep.subr.bf16.mxu0 %v4075_v19  ;;  %v4000_v19 = vcombine.low %v1738_v15, %v1742_v17 }
 0x501   : > { %2605 = vmatpush1.bf16.msra.mxu1 %v4068_v18  ;;  %v3998_v18 = vcombine.low %v1737_v13, %v1741_v14  ;;  %v1781_v13 = vld [vmem:[%s6162_s8 + $0x170] sm:$0xff]  ;;  %v1778_v14 = vld [vmem:[%s6162_s8 + $0x158] sm:$0xff] }
 0x502   : > { %2606 = vmatprep.subr.bf16.mxu1 %v4077_v20  ;;  %v4001_v20 = vcombine.high %v1738_v15, %v1742_v17  ;;  %v1782_v15 = vld [vmem:[%s6162_s8 + $0x178] sm:$0xff]  ;;  %v4032_v17 = vcombine.low %v1770_v6, %v1774_v7 }
 0x503   : > { %2566 = vmatpush1.bf16.msra.mxu0 %v4074_v21 }
 0x505   : > { %2607 = vmatpush1.bf16.msra.mxu1 %v4076_v22 }
 0x580   : > { %v1692_v23 = vpop.xlane.xlu0 %1691 }
 0x581   : > { %v1694_v24 = vmul.f32 0.00390625, %v1692_v23 }
 0x583   : > { %v5405_v25 = vsub.f32 %v5266_v49, %v1694_v24  ;;  %v5408_v26 = vsub.f32 %v5268_v51, %v1694_v24  ;;  %v1827_v49 = vld [vmem:[%s6162_s8 + $0x2e0] sm:$0xff]  ;;  %v1824_v51 = vld [vmem:[%s6162_s8 + $0x2c8] sm:$0xff] }
 0x584   : > { %v4083_v31 = vcombine.high %v1823_v30, %v1827_v49  ;;  %v4082_v33 = vcombine.low %v1823_v30, %v1827_v49  ;;  %v4084_v34 = vcombine.low %v1824_v51, %v1828_v32  ;;  %v4085_v36 = vcombine.high %v1824_v51, %v1828_v32  ;;  %v1688_v24 = vld [vmem:[%s6160_s6] sm:$0x3] }
 0x585   : > { %v1697_v27 = vmul.f32 %v5405_v25, %v5405_v25  ;;  %v1698_v28 = vmul.f32 %v5408_v26, %v5408_v26 }
 0x586   : > { %2567 = vmatprep.subr.bf16.mxu0 %v4083_v31  ;;  %2608 = vmatprep.subr.bf16.mxu1 %v4085_v36 }
 0x587   : > { %v1699_v29 = vadd.f32 %v1698_v28, %v1697_v27  ;;  %2568 = vmatpush1.bf16.msra.mxu0 %v4082_v33  ;;  %2609 = vmatpush1.bf16.msra.mxu1 %v4084_v34  ;;  %v1689_v27 = vld [vmem:[%s6161_s7] sm:$0x3]  ;;  %v1715_v28 = vrot.slane %v1688_v24, %v5138_v56 }
 0x588   : > { %2569 = vmatprep.subr.bf16.mxu0 %v4091_v45  ;;  %2610 = vmatprep.subr.bf16.mxu1 %v4093_v50  ;;  %v1728_v31 = vrot.slane %v1689_v27, %v5138_v56  ;;  %v1724_v32 = vrot.slane %v1689_v27, %v5129_v40  ;;  %v4040_v27 = vcombine.low %v1778_v14, %v1782_v15 }
 0x589   : > { %1700 = vadd.xlane.f32.xlu1 %v1699_v29  ;;  %v1711_v29 = vrot.slane %v1688_v24, %v5129_v40 }
 0x58b   : > { %2570 = vmatpush1.bf16.msra.mxu0 %v4090_v47  ;;  %2611 = vmatpush1.bf16.msra.mxu1 %v4092_v48  ;;  %v1753_v47 = vld [vmem:[%s6162_s8 + $0x90] sm:$0xff] }
 0x58c   : > { %2571 = vmatprep.subr.bf16.mxu0 %v4099_v54  ;;  %2612 = vmatprep.subr.bf16.mxu1 %v4101_v58  ;;  %v1761_v58 = vld [vmem:[%s6162_s8 + $0xd0] sm:$0xff] }
 0x58f   : > { %2572 = vmatpush1.bf16.msra.mxu0 %v4098_v57  ;;  %2613 = vmatpush1.bf16.msra.mxu1 %v4100_v35  ;;  %v4015_v57 = vcombine.high %v1753_v47, %v1757_v52  ;;  %v4017_v35 = vcombine.high %v1754_v53, %v1758_v44  ;;  %v1809_v53 = vld [vmem:[%s6162_s8 + $0x250] sm:$0xff] }
 0x590   : > { %2573 = vmatprep.subr.bf16.mxu0 %v4107_v62  ;;  %2614 = vmatprep.subr.bf16.mxu1 %v4109_v4  ;;  %v4014_v62 = vcombine.low %v1753_v47, %v1757_v52  ;;  %v1769_v4 = vld [vmem:[%s6162_s8 + $0x110] sm:$0xff] }
 0x591   : > { %v1813_v44 = vld [vmem:[%s6162_s8 + $0x270] sm:$0xff] }
 0x593   : > { %2574 = vmatpush1.bf16.msra.mxu0 %v4106_v2  ;;  %2615 = vmatpush1.bf16.msra.mxu1 %v4108_v3  ;;  %v4023_v2 = vcombine.high %v1761_v58, %v1765_v59  ;;  %v4025_v3 = vcombine.high %v1762_v60, %v1766_v61  ;;  %v1817_v60 = vld [vmem:[%s6162_s8 + $0x290] sm:$0xff] }
 0x594   : > { %2575 = vmatprep.subr.bf16.mxu0 %v4115_v8  ;;  %2616 = vmatprep.subr.bf16.mxu1 %v4117_v11  ;;  %v4022_v8 = vcombine.low %v1761_v58, %v1765_v59  ;;  %v4033_v11 = vcombine.high %v1770_v6, %v1774_v7  ;;  %v4071_v58 = vcombine.high %v1809_v53, %v1813_v44  ;;  %v1821_v61 = vld [vmem:[%s6162_s8 + $0x2b0] sm:$0xff] }
 0x595   : > { %v1825_v6 = vld [vmem:[%s6162_s8 + $0x2d0] sm:$0xff] }
 0x596   : > { %v1829_v7 = vld [vmem:[%s6162_s8 + $0x2f0] sm:$0xff] }
 0x597   : > { %2576 = vmatpush1.bf16.msra.mxu0 %v4114_v10  ;;  %2617 = vmatpush1.bf16.msra.mxu1 %v4116_v12  ;;  %v4031_v10 = vcombine.high %v1769_v4, %v1773_v5  ;;  %v1777_v12 = vld [vmem:[%s6162_s8 + $0x150] sm:$0xff] }
 0x598   : > { %2627 = vmatprep.subr.bf16.mxu0 %v3999_v16  ;;  %2668 = vmatprep.subr.bf16.mxu1 %v4001_v20  ;;  %v4030_v16 = vcombine.low %v1769_v4, %v1773_v5  ;;  %v1785_v20 = vld [vmem:[%s6162_s8 + $0x190] sm:$0xff]  ;;  %v4038_v24 = vcombine.low %v1777_v12, %v1781_v13  ;;  %v4079_v4 = vcombine.high %v1817_v60, %v1821_v61 }
 0x616   : > { %v1701_v21 = vpop.xlane.xlu1 %1700 }
 0x617   : > { %v1702_v22 = vmul.f32 0.00390625, %v1701_v21  ;;  %v1789_v21 = vld [vmem:[%s6162_s8 + $0x1b0] sm:$0xff] }
 0x619   : > { %v1703_v23 = vadd.f32 1e-05, %v1702_v22  ;;  %v1786_v22 = vld [vmem:[%s6162_s8 + $0x198] sm:$0xff] }
 0x61b   : > { %4692 = vrsqrt.f32 %v1703_v23  ;;  %v1790_v23 = vld [vmem:[%s6162_s8 + $0x1b8] sm:$0xff] }
 0x625   : > { %v4693_v30 = vpop.eup %4692 }
 0x626   : > { %v1705_v49 = vmul.f32 %v4693_v30, %v5405_v25  ;;  %v1706_v51 = vmul.f32 %v4693_v30, %v5408_v26  ;;  %v1749_v25 = vld [vmem:[%s6162_s8 + $0x70] sm:$0xff]  ;;  %v1746_v26 = vld [vmem:[%s6162_s8 + $0x58] sm:$0xff] }
 0x627   : > { %v4007_v48 = vcombine.high %v1745_v41, %v1749_v25  ;;  %v4009_v50 = vcombine.high %v1746_v26, %v1750_v43  ;;  %v4006_v54 = vcombine.low %v1745_v41, %v1749_v25  ;;  %v4008_v55 = vcombine.low %v1746_v26, %v1750_v43  ;;  %v1793_v30 = vld [vmem:[%s6162_s8 + $0x1d0] sm:$0xff]  ;;  %v1802_v43 = vld [vmem:[%s6162_s8 + $0x218] sm:$0xff] }
 0x628   : > { %v1719_v33 = vmul.f32 %v1715_v28, %v1706_v51  ;;  %v1718_v34 = vmul.f32 %v1711_v29, %v1705_v49  ;;  %v4047_v28 = vcombine.high %v1785_v20, %v1789_v21  ;;  %v4049_v29 = vcombine.high %v1786_v22, %v1790_v23  ;;  %v1797_v49 = vld [vmem:[%s6162_s8 + $0x1f0] sm:$0xff]  ;;  %v1794_v51 = vld [vmem:[%s6162_s8 + $0x1d8] sm:$0xff] }
 0x629   : > { %v1801_v25 = vld [vmem:[%s6162_s8 + $0x210] sm:$0xff]  ;;  %v4054_v47 = vcombine.low %v1793_v30, %v1797_v49 }
 0x62a   : > { %v5498_v36 = vadd.f32 %v1728_v31, %v1719_v33  ;;  %v5500_v39 = vadd.f32 %v1724_v32, %v1718_v34  ;;  %v1798_v31 = vld [vmem:[%s6162_s8 + $0x1f8] sm:$0xff]  ;;  %v4046_v32 = vcombine.low %v1785_v20, %v1789_v21  ;;  %v4048_v33 = vcombine.low %v1786_v22, %v1790_v23  ;;  %v1805_v26 = vld [vmem:[%s6162_s8 + $0x230] sm:$0xff] }
 0x62b   : > { %v4055_v34 = vcombine.high %v1793_v30, %v1797_v49  ;;  %v4057_v41 = vcombine.high %v1794_v51, %v1798_v31  ;;  %v1841_v22 = vld [vmem:[%s6162_s8 + $0x350] sm:$0xff] }
 0x62c   : > { %v1734_v45 = vpack.c.bf16 %v5498_v36, %v5498_v36  ;;  %v5518_v46 = vpack.c.bf16 %v5500_v39, %v5500_v39  ;;  %v1845_v23 = vld [vmem:[%s6162_s8 + $0x370] sm:$0xff] }
 0x62d   : > { %v4103_v30 = vcombine.high %v1841_v22, %v1845_v23 }
 0x62e   : > { %2577 = vmatprep.mubr.bf16.mxu0 %v1734_v45  ;;  %2618 = vmatprep.mubr.bf16.mxu1 %v1734_v45 }
 0x62f   : > { %2578 = vmatmul.mubr.bf16.vlgmr.msra.gmra.mrb[16].mxu0 %v5518_v46  ;;  %2619 = vmatmul.mubr.bf16.vlgmr.msra.gmra.mrb[16].mxu1 %v5518_v46 }
 0x630   : > { %2628 = vmatpush1.bf16.msra.mxu0 %v3998_v18  ;;  %2669 = vmatpush1.bf16.msra.mxu1 %v4000_v19  ;;  %v4039_v18 = vcombine.high %v1777_v12, %v1781_v13  ;;  %v4041_v19 = vcombine.high %v1778_v14, %v1782_v15  ;;  %v4087_v12 = vcombine.high %v1825_v6, %v1829_v7  ;;  %v1833_v14 = vld [vmem:[%s6162_s8 + $0x310] sm:$0xff] }
 0x631   : > { %2659 = vmatprep.mubr.bf16.mxu0 %v1734_v45  ;;  %2700 = vmatprep.mubr.bf16.mxu1 %v1734_v45  ;;  %v1806_v45 = vld [vmem:[%s6162_s8 + $0x238] sm:$0xff]  ;;  %v1837_v15 = vld [vmem:[%s6162_s8 + $0x330] sm:$0xff] }
 0x632   : > { %2629 = vmatprep.subr.bf16.mxu0 %v4007_v48  ;;  %2670 = vmatprep.subr.bf16.mxu1 %v4009_v50  ;;  %v4056_v48 = vcombine.low %v1794_v51, %v1798_v31  ;;  %v4063_v50 = vcombine.high %v1801_v25, %v1805_v26  ;;  %v4065_v52 = vcombine.high %v1802_v43, %v1806_v45  ;;  %v1849_v51 = vld [vmem:[%s6162_s8 + $0x390] sm:$0xff] }
 0x633   : > { %v4095_v20 = vcombine.high %v1833_v14, %v1837_v15  ;;  %v1853_v31 = vld [vmem:[%s6162_s8 + $0x3b0] sm:$0xff] }
 0x634   : > { %2630 = vmatpush1.bf16.msra.mxu0 %v4006_v54  ;;  %2671 = vmatpush1.bf16.msra.mxu1 %v4008_v55  ;;  %v1810_v54 = vld [vmem:[%s6162_s8 + $0x258] sm:$0xff] }
 0x635   : > { %2631 = vmatprep.subr.bf16.mxu0 %v4015_v57  ;;  %2672 = vmatprep.subr.bf16.mxu1 %v4017_v35  ;;  %v1814_v55 = vld [vmem:[%s6162_s8 + $0x278] sm:$0xff]  ;;  %v4062_v57 = vcombine.low %v1801_v25, %v1805_v26  ;;  %v4064_v35 = vcombine.low %v1802_v43, %v1806_v45  ;;  %v4111_v25 = vcombine.high %v1849_v51, %v1853_v31  ;;  %v1857_v43 = vld [vmem:[%s6162_s8 + $0x3d0] sm:$0xff] }
 0x636   : > { %v4073_v59 = vcombine.high %v1810_v54, %v1814_v55  ;;  %v1861_v45 = vld [vmem:[%s6162_s8 + $0x3f0] sm:$0xff] }
 0x638   : > { %2632 = vmatpush1.bf16.msra.mxu0 %v4014_v62  ;;  %2673 = vmatpush1.bf16.msra.mxu1 %v4016_v63  ;;  %v1818_v62 = vld [vmem:[%s6162_s8 + $0x298] sm:$0xff] }
 0x639   : > { %2633 = vmatprep.subr.bf16.mxu0 %v4023_v2  ;;  %2674 = vmatprep.subr.bf16.mxu1 %v4025_v3  ;;  %v1822_v63 = vld [vmem:[%s6162_s8 + $0x2b8] sm:$0xff]  ;;  %v4070_v2 = vcombine.low %v1809_v53, %v1813_v44  ;;  %v4072_v3 = vcombine.low %v1810_v54, %v1814_v55  ;;  %v4119_v53 = vcombine.high %v1857_v43, %v1861_v45 }
 0x63a   : > { %v4081_v5 = vcombine.high %v1818_v62, %v1822_v63  ;;  %v4118_v54 = vcombine.low %v1857_v43, %v1861_v45  ;;  %v4563_v43 = vld [vmem:[%s6164_s10 + $0x1b4] ss:$8 sps:$4 sm:$0xff]   ;;  %v4558_v45 = vld [vmem:[%s6164_s10 + $0xb0] ss:$8 sps:$4 sm:$0xff]  }
 0x63c   : > { %2634 = vmatpush1.bf16.msra.mxu0 %v4022_v8  ;;  %2675 = vmatpush1.bf16.msra.mxu1 %v4024_v9  ;;  %v1826_v8 = vld [vmem:[%s6162_s8 + $0x2d8] sm:$0xff] }
 0x63d   : > { %2635 = vmatprep.subr.bf16.mxu0 %v4031_v10  ;;  %2676 = vmatprep.subr.bf16.mxu1 %v4033_v11  ;;  %v1830_v9 = vld [vmem:[%s6162_s8 + $0x2f8] sm:$0xff]  ;;  %v4078_v10 = vcombine.low %v1817_v60, %v1821_v61  ;;  %v4080_v11 = vcombine.low %v1818_v62, %v1822_v63 }
 0x63e   : > { %v4089_v13 = vcombine.high %v1826_v8, %v1830_v9  ;;  %v4500_v60 = vld [vmem:[%s6164_s10 + $0x14] ss:$8 sps:$4 sm:$0xff]   ;;  %v4498_v62 = vld [vmem:[%s6164_s10 + $0x10] ss:$8 sps:$4 sm:$0xff]  }
 0x63f   : > { %v4503_v61 = vld [vmem:[%s6164_s10 + $0x114] ss:$8 sps:$4 sm:$0xff]   ;;  %v4501_v63 = vld [vmem:[%s6164_s10 + $0x110] ss:$8 sps:$4 sm:$0xff]  }
 0x640   : > { %2636 = vmatpush1.bf16.msra.mxu0 %v4030_v16  ;;  %2677 = vmatpush1.bf16.msra.mxu1 %v4032_v17  ;;  %v1834_v16 = vld [vmem:[%s6162_s8 + $0x318] sm:$0xff] }
 0x641   : > { %2637 = vmatprep.subr.bf16.mxu0 %v4039_v18  ;;  %2678 = vmatprep.subr.bf16.mxu1 %v4041_v19  ;;  %v1838_v17 = vld [vmem:[%s6162_s8 + $0x338] sm:$0xff]  ;;  %v4086_v18 = vcombine.low %v1825_v6, %v1829_v7  ;;  %v4088_v19 = vcombine.low %v1826_v8, %v1830_v9  ;;  %v4518_v9 = vld [vmem:[%s6164_s10 + $0x44] ss:$8 sps:$4 sm:$0xff]  }
 0x642   : > { %v4097_v21 = vcombine.high %v1834_v16, %v1838_v17  ;;  %v4515_v6 = vld [vmem:[%s6164_s10 + $0x134] ss:$8 sps:$4 sm:$0xff]   ;;  %v4510_v7 = vld [vmem:[%s6164_s10 + $0x30] ss:$8 sps:$4 sm:$0xff]  }
 0x643   : > { %v4513_v8 = vld [vmem:[%s6164_s10 + $0x130] ss:$8 sps:$4 sm:$0xff]  }
 0x644   : > { %2638 = vmatpush1.bf16.msra.mxu0 %v4038_v24  ;;  %2679 = vmatpush1.bf16.msra.mxu1 %v4040_v27  ;;  %v1842_v24 = vld [vmem:[%s6162_s8 + $0x358] sm:$0xff] }
 0x645   : > { %2639 = vmatprep.subr.bf16.mxu0 %v4047_v28  ;;  %2680 = vmatprep.subr.bf16.mxu1 %v4049_v29  ;;  %v1846_v27 = vld [vmem:[%s6162_s8 + $0x378] sm:$0xff]  ;;  %v4094_v28 = vcombine.low %v1833_v14, %v1837_v15  ;;  %v4096_v29 = vcombine.low %v1834_v16, %v1838_v17  ;;  %v4530_v17 = vld [vmem:[%s6164_s10 + $0x64] ss:$8 sps:$4 sm:$0xff]  }
 0x646   : > { %v4105_v49 = vcombine.high %v1842_v24, %v1846_v27  ;;  %v4527_v14 = vld [vmem:[%s6164_s10 + $0x154] ss:$8 sps:$4 sm:$0xff]   ;;  %v4522_v15 = vld [vmem:[%s6164_s10 + $0x50] ss:$8 sps:$4 sm:$0xff]  }
 0x647   : > { %v4525_v16 = vld [vmem:[%s6164_s10 + $0x150] ss:$8 sps:$4 sm:$0xff]  }
 0x648   : > { %2640 = vmatpush1.bf16.msra.mxu0 %v4046_v32  ;;  %2681 = vmatpush1.bf16.msra.mxu1 %v4048_v33  ;;  %v1850_v32 = vld [vmem:[%s6162_s8 + $0x398] sm:$0xff] }
 0x649   : > { %2641 = vmatprep.subr.bf16.mxu0 %v4055_v34  ;;  %2682 = vmatprep.subr.bf16.mxu1 %v4057_v41  ;;  %v1854_v33 = vld [vmem:[%s6162_s8 + $0x3b8] sm:$0xff]  ;;  %v4102_v34 = vcombine.low %v1841_v22, %v1845_v23  ;;  %v4104_v41 = vcombine.low %v1842_v24, %v1846_v27  ;;  %v4542_v27 = vld [vmem:[%s6164_s10 + $0x84] ss:$8 sps:$4 sm:$0xff]  }
 0x64a   : > { %v4113_v26 = vcombine.high %v1850_v32, %v1854_v33  ;;  %v4539_v22 = vld [vmem:[%s6164_s10 + $0x174] ss:$8 sps:$4 sm:$0xff]   ;;  %v4534_v23 = vld [vmem:[%s6164_s10 + $0x70] ss:$8 sps:$4 sm:$0xff]  }
 0x64b   : > { %v4537_v24 = vld [vmem:[%s6164_s10 + $0x170] ss:$8 sps:$4 sm:$0xff]  }
 0x64c   : > { %2642 = vmatpush1.bf16.msra.mxu0 %v4054_v47  ;;  %2683 = vmatpush1.bf16.msra.mxu1 %v4056_v48  ;;  %v1858_v47 = vld [vmem:[%s6162_s8 + $0x3d8] sm:$0xff] }
 0x64d   : > { %2643 = vmatprep.subr.bf16.mxu0 %v4063_v50  ;;  %2684 = vmatprep.subr.bf16.mxu1 %v4065_v52  ;;  %v1862_v48 = vld [vmem:[%s6162_s8 + $0x3f8] sm:$0xff]  ;;  %v4110_v50 = vcombine.low %v1849_v51, %v1853_v31  ;;  %v4112_v52 = vcombine.low %v1850_v32, %v1854_v33  ;;  %v4554_v33 = vld [vmem:[%s6164_s10 + $0xa4] ss:$8 sps:$4 sm:$0xff]  }
 0x64e   : > { %v4121_v44 = vcombine.high %v1858_v47, %v1862_v48  ;;  %v4120_v55 = vcombine.low %v1858_v47, %v1862_v48  ;;  %v4551_v51 = vld [vmem:[%s6164_s10 + $0x194] ss:$8 sps:$4 sm:$0xff]   ;;  %v4546_v31 = vld [vmem:[%s6164_s10 + $0x90] ss:$8 sps:$4 sm:$0xff]   ;;  %v4566_v48 = vld [vmem:[%s6164_s10 + $0xc4] ss:$8 sps:$4 sm:$0xff]  }
 0x64f   : > { %v4549_v32 = vld [vmem:[%s6164_s10 + $0x190] ss:$8 sps:$4 sm:$0xff]  }
 0x650   : > { %2644 = vmatpush1.bf16.msra.mxu0 %v4062_v57  ;;  %2685 = vmatpush1.bf16.msra.mxu1 %v4064_v35  ;;  %v4494_v57 = vld [vmem:[%s6164_s10 + $0x4] ss:$8 sps:$4 sm:$0xff]   ;;  %v4561_v47 = vld [vmem:[%s6164_s10 + $0x1b0] ss:$8 sps:$4 sm:$0xff]  }
 0x651   : > { %2645 = vmatprep.subr.bf16.mxu0 %v4071_v58  ;;  %2686 = vmatprep.subr.bf16.mxu1 %v4073_v59  ;;  %v4497_v35 = vld [vmem:[%s6164_s10 + $0x104] ss:$8 sps:$4 sm:$0xff]   ;;  %v4492_v58 = vld [vmem:[%s6164_s10] ss:$8 sps:$4 sm:$0xff]  }
 0x652   : > { %v4495_v59 = vld [vmem:[%s6164_s10 + $0x100] ss:$8 sps:$4 sm:$0xff]  }
 0x654   : > { %2646 = vmatpush1.bf16.msra.mxu0 %v4070_v2  ;;  %2687 = vmatpush1.bf16.msra.mxu1 %v4072_v3  ;;  %v4506_v2 = vld [vmem:[%s6164_s10 + $0x24] ss:$8 sps:$4 sm:$0xff]   ;;  %v4504_v3 = vld [vmem:[%s6164_s10 + $0x20] ss:$8 sps:$4 sm:$0xff]  }
 0x655   : > { %2647 = vmatprep.subr.bf16.mxu0 %v4079_v4  ;;  %2688 = vmatprep.subr.bf16.mxu1 %v4081_v5  ;;  %v4507_v4 = vld [vmem:[%s6164_s10 + $0x120] ss:$8 sps:$4 sm:$0xff]   ;;  %v4512_v5 = vld [vmem:[%s6164_s10 + $0x34] ss:$8 sps:$4 sm:$0xff]  }
 0x658   : > { %2648 = vmatpush1.bf16.msra.mxu0 %v4078_v10  ;;  %2689 = vmatpush1.bf16.msra.mxu1 %v4080_v11  ;;  %v4521_v10 = vld [vmem:[%s6164_s10 + $0x144] ss:$8 sps:$4 sm:$0xff]   ;;  %v4516_v11 = vld [vmem:[%s6164_s10 + $0x40] ss:$8 sps:$4 sm:$0xff]  }
 0x659   : > { %2649 = vmatprep.subr.bf16.mxu0 %v4087_v12  ;;  %2690 = vmatprep.subr.bf16.mxu1 %v4089_v13  ;;  %v4519_v12 = vld [vmem:[%s6164_s10 + $0x140] ss:$8 sps:$4 sm:$0xff]   ;;  %v4524_v13 = vld [vmem:[%s6164_s10 + $0x54] ss:$8 sps:$4 sm:$0xff]  }
 0x65c   : > { %2650 = vmatpush1.bf16.msra.mxu0 %v4086_v18  ;;  %2691 = vmatpush1.bf16.msra.mxu1 %v4088_v19  ;;  %v4533_v18 = vld [vmem:[%s6164_s10 + $0x164] ss:$8 sps:$4 sm:$0xff]   ;;  %v4528_v19 = vld [vmem:[%s6164_s10 + $0x60] ss:$8 sps:$4 sm:$0xff]  }
 0x65d   : > { %2651 = vmatprep.subr.bf16.mxu0 %v4095_v20  ;;  %2692 = vmatprep.subr.bf16.mxu1 %v4097_v21  ;;  %v4531_v20 = vld [vmem:[%s6164_s10 + $0x160] ss:$8 sps:$4 sm:$0xff]   ;;  %v4536_v21 = vld [vmem:[%s6164_s10 + $0x74] ss:$8 sps:$4 sm:$0xff]  }
 0x660   : > { %2652 = vmatpush1.bf16.msra.mxu0 %v4094_v28  ;;  %2693 = vmatpush1.bf16.msra.mxu1 %v4096_v29  ;;  %v4545_v28 = vld [vmem:[%s6164_s10 + $0x184] ss:$8 sps:$4 sm:$0xff]   ;;  %v4540_v29 = vld [vmem:[%s6164_s10 + $0x80] ss:$8 sps:$4 sm:$0xff]  }
 0x661   : > { %2653 = vmatprep.subr.bf16.mxu0 %v4103_v30  ;;  %2694 = vmatprep.subr.bf16.mxu1 %v4105_v49  ;;  %v4543_v30 = vld [vmem:[%s6164_s10 + $0x180] ss:$8 sps:$4 sm:$0xff]   ;;  %v4548_v49 = vld [vmem:[%s6164_s10 + $0x94] ss:$8 sps:$4 sm:$0xff]  }
 0x664   : > { %2654 = vmatpush1.bf16.msra.mxu0 %v4102_v34  ;;  %2695 = vmatpush1.bf16.msra.mxu1 %v4104_v41  ;;  %v4557_v34 = vld [vmem:[%s6164_s10 + $0x1a4] ss:$8 sps:$4 sm:$0xff]   ;;  %v4552_v41 = vld [vmem:[%s6164_s10 + $0xa0] ss:$8 sps:$4 sm:$0xff]  }
 0x665   : > { %2655 = vmatprep.subr.bf16.mxu0 %v4111_v25  ;;  %2696 = vmatprep.subr.bf16.mxu1 %v4113_v26  ;;  %v4555_v25 = vld [vmem:[%s6164_s10 + $0x1a0] ss:$8 sps:$4 sm:$0xff]   ;;  %v4560_v26 = vld [vmem:[%s6164_s10 + $0xb4] ss:$8 sps:$4 sm:$0xff]  }
 0x668   : > { %2656 = vmatpush1.bf16.msra.mxu0 %v4110_v50  ;;  %2697 = vmatpush1.bf16.msra.mxu1 %v4112_v52  ;;  %v4569_v50 = vld [vmem:[%s6164_s10 + $0x1c4] ss:$8 sps:$4 sm:$0xff]   ;;  %v4564_v52 = vld [vmem:[%s6164_s10 + $0xc0] ss:$8 sps:$4 sm:$0xff]  }
 0x669   : > { %2657 = vmatprep.subr.bf16.mxu0 %v4119_v53  ;;  %2698 = vmatprep.subr.bf16.mxu1 %v4121_v44  ;;  %v4567_v53 = vld [vmem:[%s6164_s10 + $0x1c0] ss:$8 sps:$4 sm:$0xff]   ;;  %v4572_v44 = vld [vmem:[%s6164_s10 + $0xd4] ss:$8 sps:$4 sm:$0xff]  }
 0x66c   : > { %2658 = vmatpush1.bf16.msra.mxu0 %v4118_v54  ;;  %2699 = vmatpush1.bf16.msra.mxu1 %v4120_v55  ;;  %v4575_v54 = vld [vmem:[%s6164_s10 + $0x1d4] ss:$8 sps:$4 sm:$0xff]   ;;  %v4570_v55 = vld [vmem:[%s6164_s10 + $0xd0] ss:$8 sps:$4 sm:$0xff]  }
 0x66d   : > { %3569 = vmatprep.subr.bf16.mxu0 %v4494_v57  ;;  %3610 = vmatprep.subr.bf16.mxu1 %v4497_v35  ;;  %v4573_v57 = vld [vmem:[%s6164_s10 + $0x1d0] ss:$8 sps:$4 sm:$0xff]   ;;  %v4578_v35 = vld [vmem:[%s6164_s10 + $0xe4] ss:$8 sps:$4 sm:$0xff]  }
 0x66f   : > { %2660 = vmatmul.mubr.bf16.vlgmr.msra.gmra.mrb[20].mxu0 %v5518_v46  ;;  %2701 = vmatmul.mubr.bf16.vlgmr.msra.gmra.mrb[20].mxu1 %v5518_v46  ;;  %v4509_v46 = vld [vmem:[%s6164_s10 + $0x124] ss:$8 sps:$4 sm:$0xff]  }
 0x670   : > { %3570 = vmatpush1.bf16.msra.mxu0 %v4492_v58  ;;  %3611 = vmatpush1.bf16.msra.mxu1 %v4495_v59  ;;  %v4581_v58 = vld [vmem:[%s6164_s10 + $0x1e4] ss:$8 sps:$4 sm:$0xff]   ;;  %v4576_v59 = vld [vmem:[%s6164_s10 + $0xe0] ss:$8 sps:$4 sm:$0xff]  }
 0x671   : > { %3571 = vmatprep.subr.bf16.mxu0 %v4500_v60  ;;  %3612 = vmatprep.subr.bf16.mxu1 %v4503_v61  ;;  %v4579_v60 = vld [vmem:[%s6164_s10 + $0x1e0] ss:$8 sps:$4 sm:$0xff]   ;;  %v4584_v61 = vld [vmem:[%s6164_s10 + $0xf4] ss:$8 sps:$4 sm:$0xff]  }
 0x674   : > { %3572 = vmatpush1.bf16.msra.mxu0 %v4498_v62  ;;  %3613 = vmatpush1.bf16.msra.mxu1 %v4501_v63  ;;  %v4587_v62 = vld [vmem:[%s6164_s10 + $0x1f4] ss:$8 sps:$4 sm:$0xff]   ;;  %v4582_v63 = vld [vmem:[%s6164_s10 + $0xf0] ss:$8 sps:$4 sm:$0xff]  }
 0x675   : > { %3573 = vmatprep.subr.bf16.mxu0 %v4506_v2  ;;  %3614 = vmatprep.subr.bf16.mxu1 %v4509_v46  ;;  %v4585_v2 = vld [vmem:[%s6164_s10 + $0x1f0] ss:$8 sps:$4 sm:$0xff]   ;;  %v4590_v46 = vld [vmem:[%s6164_s10 + $0x204] ss:$8 sps:$4 sm:$0xff]  }
 0x678   : > { %3574 = vmatpush1.bf16.msra.mxu0 %v4504_v3  ;;  %3615 = vmatpush1.bf16.msra.mxu1 %v4507_v4  ;;  %v4593_v3 = vld [vmem:[%s6164_s10 + $0x304] ss:$8 sps:$4 sm:$0xff]  }
 0x679   : > { %3575 = vmatprep.subr.bf16.mxu0 %v4512_v5  ;;  %3616 = vmatprep.subr.bf16.mxu1 %v4515_v6  ;;  %v5893_v4 = vld [vmem:[%s6163_s9] sm:$0xff] }
 0x67a   : > { %v1868_v5 = vrot.slane %v5893_v4, %v5129_v40  ;;  %v1876_v6 = vrot.slane %v5893_v4, %v595_v38 }
 0x67c   : > { %3576 = vmatpush1.bf16.msra.mxu0 %v4510_v7  ;;  %3617 = vmatpush1.bf16.msra.mxu1 %v4513_v8  ;;  %v1872_v7 = vrot.slane %v5893_v4, %v5138_v56  ;;  %v1880_v8 = vrot.slane %v5893_v4, %v599_v42 }
 0x67d   : > { %3577 = vmatprep.subr.bf16.mxu0 %v4518_v9  ;;  %3618 = vmatprep.subr.bf16.mxu1 %v4521_v10 }
 0x680   : > { %3578 = vmatpush1.bf16.msra.mxu0 %v4516_v11  ;;  %3619 = vmatpush1.bf16.msra.mxu1 %v4519_v12 }
 0x681   : > { %3579 = vmatprep.subr.bf16.mxu0 %v4524_v13  ;;  %3620 = vmatprep.subr.bf16.mxu1 %v4527_v14 }
 0x684   : > { %3580 = vmatpush1.bf16.msra.mxu0 %v4522_v15  ;;  %3621 = vmatpush1.bf16.msra.mxu1 %v4525_v16 }
 0x685   : > { %3581 = vmatprep.subr.bf16.mxu0 %v4530_v17  ;;  %3622 = vmatprep.subr.bf16.mxu1 %v4533_v18 }
 0x688   : > { %3582 = vmatpush1.bf16.msra.mxu0 %v4528_v19  ;;  %3623 = vmatpush1.bf16.msra.mxu1 %v4531_v20 }
 0x689   : > { %3583 = vmatprep.subr.bf16.mxu0 %v4536_v21  ;;  %3624 = vmatprep.subr.bf16.mxu1 %v4539_v22 }
 0x68c   : > { %3584 = vmatpush1.bf16.msra.mxu0 %v4534_v23  ;;  %3625 = vmatpush1.bf16.msra.mxu1 %v4537_v24 }
 0x68d   : > { %3585 = vmatprep.subr.bf16.mxu0 %v4542_v27  ;;  %3626 = vmatprep.subr.bf16.mxu1 %v4545_v28 }
 0x690   : > { %3586 = vmatpush1.bf16.msra.mxu0 %v4540_v29  ;;  %3627 = vmatpush1.bf16.msra.mxu1 %v4543_v30 }
 0x691   : > { %3587 = vmatprep.subr.bf16.mxu0 %v4548_v49  ;;  %3628 = vmatprep.subr.bf16.mxu1 %v4551_v51 }
 0x694   : > { %3588 = vmatpush1.bf16.msra.mxu0 %v4546_v31  ;;  %3629 = vmatpush1.bf16.msra.mxu1 %v4549_v32 }
 0x695   : > { %3589 = vmatprep.subr.bf16.mxu0 %v4554_v33  ;;  %3630 = vmatprep.subr.bf16.mxu1 %v4557_v34 }
 0x698   : > { %3590 = vmatpush1.bf16.msra.mxu0 %v4552_v41  ;;  %3631 = vmatpush1.bf16.msra.mxu1 %v4555_v25 }
 0x699   : > { %3591 = vmatprep.subr.bf16.mxu0 %v4560_v26  ;;  %3632 = vmatprep.subr.bf16.mxu1 %v4563_v43 }
 0x69c   : > { %3592 = vmatpush1.bf16.msra.mxu0 %v4558_v45  ;;  %3633 = vmatpush1.bf16.msra.mxu1 %v4561_v47 }
 0x69d   : > { %3593 = vmatprep.subr.bf16.mxu0 %v4566_v48  ;;  %3634 = vmatprep.subr.bf16.mxu1 %v4569_v50 }
 0x6a0   : > { %3594 = vmatpush1.bf16.msra.mxu0 %v4564_v52  ;;  %3635 = vmatpush1.bf16.msra.mxu1 %v4567_v53 }
 0x6a1   : > { %3595 = vmatprep.subr.bf16.mxu0 %v4572_v44  ;;  %3636 = vmatprep.subr.bf16.mxu1 %v4575_v54 }
 0x6a4   : > { %3596 = vmatpush1.bf16.msra.mxu0 %v4570_v55  ;;  %3637 = vmatpush1.bf16.msra.mxu1 %v4573_v57 }
 0x6a5   : > { %3597 = vmatprep.subr.bf16.mxu0 %v4578_v35  ;;  %3638 = vmatprep.subr.bf16.mxu1 %v4581_v58 }
 0x6a8   : > { %3598 = vmatpush1.bf16.msra.mxu0 %v4576_v59  ;;  %3639 = vmatpush1.bf16.msra.mxu1 %v4579_v60 }
 0x6a9   : > { %3599 = vmatprep.subr.bf16.mxu0 %v4584_v61  ;;  %3640 = vmatprep.subr.bf16.mxu1 %v4587_v62 }
 0x6ac   : > { %3600 = vmatpush1.bf16.msra.mxu0 %v4582_v63  ;;  %3641 = vmatpush1.bf16.msra.mxu1 %v4585_v2  ;;  %v4588_v63 = vld [vmem:[%s6164_s10 + $0x200] ss:$8 sps:$4 sm:$0xff]  }
 0x6ad   : > { %3651 = vmatprep.subr.bf16.mxu0 %v4590_v46  ;;  %3692 = vmatprep.subr.bf16.mxu1 %v4593_v3  ;;  %v4591_v3 = vld [vmem:[%s6164_s10 + $0x300] ss:$8 sps:$4 sm:$0xff]  }
 0x702   : > { %v2579_v9 = vpop.f32.mrb[16].mxu0  ;;  %v2620_v10 = vpop.f32.mrb[16].mxu1 }
 0x703   : > { %v2580_v11 = vadd.f32 %v2579_v9, %v1868_v5  ;;  %v2621_v12 = vadd.f32 %v2620_v10, %v1876_v6  ;;  %v2581_v13 = vpop.f32.mrb[17].mxu0  ;;  %v2622_v14 = vpop.f32.mrb[17].mxu1  ;;  %v4596_v6 = vld [vmem:[%s6164_s10 + $0x214] ss:$8 sps:$4 sm:$0xff]   ;;  %v4594_v9 = vld [vmem:[%s6164_s10 + $0x210] ss:$8 sps:$4 sm:$0xff]  }
 0x704   : > { %v2582_v15 = vadd.f32 %v2581_v13, %v1872_v7  ;;  %v2623_v16 = vadd.f32 %v2622_v14, %v1880_v8  ;;  %v2583_v17 = vpop.f32.mrb[18].mxu0  ;;  %v2624_v18 = vpop.f32.mrb[18].mxu1  ;;  %v4599_v8 = vld [vmem:[%s6164_s10 + $0x314] ss:$8 sps:$4 sm:$0xff]   ;;  %v4597_v10 = vld [vmem:[%s6164_s10 + $0x310] ss:$8 sps:$4 sm:$0xff]  }
 0x705   : > { %v2717_v19 = vmul.f32 0.044715, %v2580_v11  ;;  %v2719_v20 = vmul.f32 0.044715, %v2621_v12  ;;  %v2584_v38 = vpop.f32.mrb[19].mxu0  ;;  %v2625_v21 = vpop.f32.mrb[19].mxu1 }
 0x706   : > { %v2718_v22 = vmul.f32 0.044715, %v2582_v15  ;;  %v2720_v23 = vmul.f32 0.044715, %v2623_v16  ;;  %v2709_v48 = vmul.f32 0.5, %v2580_v11  ;;  %v2710_v53 = vmul.f32 0.5, %v2582_v15 }
 0x707   : > { %v2725_v24 = vmul.f32 %v2717_v19, %v2580_v11  ;;  %v2727_v27 = vmul.f32 %v2719_v20, %v2621_v12  ;;  %v2712_v55 = vmul.f32 0.5, %v2623_v16  ;;  %v2711_v59 = vmul.f32 0.5, %v2621_v12  ;;  %v4600_v13 = vld [vmem:[%s6164_s10 + $0x220] ss:$8 sps:$4 sm:$0xff]   ;;  %v4606_v17 = vld [vmem:[%s6164_s10 + $0x230] ss:$8 sps:$4 sm:$0xff]  }
 0x708   : > { %v2726_v28 = vmul.f32 %v2718_v22, %v2582_v15  ;;  %v2728_v42 = vmul.f32 %v2720_v23, %v2623_v16  ;;  %v4603_v14 = vld [vmem:[%s6164_s10 + $0x320] ss:$8 sps:$4 sm:$0xff]   ;;  %v4609_v18 = vld [vmem:[%s6164_s10 + $0x330] ss:$8 sps:$4 sm:$0xff]   ;;  %v4614_v19 = vld [vmem:[%s6164_s10 + $0x244] ss:$8 sps:$4 sm:$0xff]  }
 0x709   : > { %v2733_v29 = vmul.f32 %v2725_v24, %v2580_v11  ;;  %v2735_v30 = vmul.f32 %v2727_v27, %v2621_v12  ;;  %v4617_v20 = vld [vmem:[%s6164_s10 + $0x344] ss:$8 sps:$4 sm:$0xff]   ;;  %v4612_v38 = vld [vmem:[%s6164_s10 + $0x240] ss:$8 sps:$4 sm:$0xff]   ;;  %v4620_v22 = vld [vmem:[%s6164_s10 + $0x254] ss:$8 sps:$4 sm:$0xff]  }
 0x70a   : > { %v2734_v49 = vmul.f32 %v2726_v28, %v2582_v15  ;;  %v2736_v51 = vmul.f32 %v2728_v42, %v2623_v16  ;;  %v4615_v21 = vld [vmem:[%s6164_s10 + $0x340] ss:$8 sps:$4 sm:$0xff]   ;;  %v4623_v23 = vld [vmem:[%s6164_s10 + $0x354] ss:$8 sps:$4 sm:$0xff]   ;;  %v4618_v24 = vld [vmem:[%s6164_s10 + $0x250] ss:$8 sps:$4 sm:$0xff]  }
 0x70b   : > { %v2741_v31 = vadd.f32 %v2733_v29, %v2580_v11  ;;  %v2743_v32 = vadd.f32 %v2735_v30, %v2621_v12  ;;  %v4602_v11 = vld [vmem:[%s6164_s10 + $0x224] ss:$8 sps:$4 sm:$0xff]   ;;  %v4621_v27 = vld [vmem:[%s6164_s10 + $0x350] ss:$8 sps:$4 sm:$0xff]   ;;  %v4624_v29 = vld [vmem:[%s6164_s10 + $0x260] ss:$8 sps:$4 sm:$0xff]  }
 0x70c   : > { %v2742_v33 = vadd.f32 %v2734_v49, %v2582_v15  ;;  %v2744_v34 = vadd.f32 %v2736_v51, %v2623_v16  ;;  %v4605_v12 = vld [vmem:[%s6164_s10 + $0x324] ss:$8 sps:$4 sm:$0xff]   ;;  %v4608_v15 = vld [vmem:[%s6164_s10 + $0x234] ss:$8 sps:$4 sm:$0xff]   ;;  %v4627_v30 = vld [vmem:[%s6164_s10 + $0x360] ss:$8 sps:$4 sm:$0xff]  }
 0x70d   : > { %v2749_v41 = vmul.f32 0.7978846, %v2741_v31  ;;  %v2751_v43 = vmul.f32 0.7978846, %v2743_v32  ;;  %v4611_v16 = vld [vmem:[%s6164_s10 + $0x334] ss:$8 sps:$4 sm:$0xff]  }
 0x70e   : > { %v2750_v25 = vmul.f32 0.7978846, %v2742_v33  ;;  %v2752_v26 = vmul.f32 0.7978846, %v2744_v34  ;;  %v4626_v28 = vld [vmem:[%s6164_s10 + $0x264] ss:$8 sps:$4 sm:$0xff]  }
 0x70f   : > { %4694 = vtanh.f32 %v2749_v41  ;;  %v4629_v42 = vld [vmem:[%s6164_s10 + $0x364] ss:$8 sps:$4 sm:$0xff]   ;;  %v4632_v49 = vld [vmem:[%s6164_s10 + $0x274] ss:$8 sps:$4 sm:$0xff]   ;;  %v4630_v31 = vld [vmem:[%s6164_s10 + $0x270] ss:$8 sps:$4 sm:$0xff]  }
 0x710   : > { %4696 = vtanh.f32 %v2750_v25  ;;  %v4635_v51 = vld [vmem:[%s6164_s10 + $0x374] ss:$8 sps:$4 sm:$0xff]   ;;  %v1891_v32 = vsub.s32 6, %v5122_v37  ;;  %v4633_v33 = vld [vmem:[%s6164_s10 + $0x370] ss:$8 sps:$4 sm:$0xff]   ;;  %v1895_v41 = vsub.s32 7, %v5122_v37 }
 0x711   : > { %4698 = vtanh.f32 %v2752_v26  ;;  %v4638_v34 = vld [vmem:[%s6164_s10 + $0x284] ss:$8 sps:$4 sm:$0xff]   ;;  %v1884_v26 = vrot.slane %v5893_v4, %v603_v0  ;;  %v4644_v0 = vld [vmem:[%s6164_s10 + $0x294] ss:$8 sps:$4 sm:$0xff]  }
 0x712   : > { %4700 = vtanh.f32 %v2751_v43  ;;  %v4641_v25 = vld [vmem:[%s6164_s10 + $0x384] ss:$8 sps:$4 sm:$0xff]   ;;  %v1892_v43 = vrot.slane %v5893_v4, %v1891_v32  ;;  %v4671_v32 = vld [vmem:[%s6164_s10 + $0x3d4] ss:$8 sps:$4 sm:$0xff]  }
 0x719   : > { %v4695_v45 = vpop.eup %4694 }
 0x71a   : > { %v4697_v47 = vpop.eup %4696  ;;  %v2765_v50 = vadd.f32 1.0, %v4695_v45  ;;  %v4636_v45 = vld [vmem:[%s6164_s10 + $0x280] ss:$8 sps:$4 sm:$0xff]  }
 0x71b   : > { %v4699_v52 = vpop.eup %4698  ;;  %v2766_v44 = vadd.f32 1.0, %v4697_v47  ;;  %v4639_v47 = vld [vmem:[%s6164_s10 + $0x380] ss:$8 sps:$4 sm:$0xff]  }
 0x71c   : > { %v4701_v54 = vpop.eup %4700  ;;  %v2768_v57 = vadd.f32 1.0, %v4699_v52  ;;  %v2773_v35 = vmul.f32 %v2765_v50, %v2709_v48  ;;  %v1888_v48 = vrot.slane %v5893_v4, %v607_v1  ;;  %v1896_v50 = vrot.slane %v5893_v4, %v1895_v41  ;;  %v4647_v52 = vld [vmem:[%s6164_s10 + $0x394] ss:$8 sps:$4 sm:$0xff]   ;;  %v4642_v1 = vld [vmem:[%s6164_s10 + $0x290] ss:$8 sps:$4 sm:$0xff]  }
 0x71d   : > { %v2774_v58 = vmul.f32 %v2766_v44, %v2710_v53  ;;  %v2767_v60 = vadd.f32 1.0, %v4701_v54  ;;  %v4645_v4 = vld [vmem:[%s6164_s10 + $0x390] ss:$8 sps:$4 sm:$0xff]   ;;  %v4674_v41 = vld [vmem:[%s6164_s10 + $0x2e4] ss:$8 sps:$4 sm:$0xff]  }
 0x71e   : > { %v2776_v61 = vmul.f32 %v2768_v57, %v2712_v55  ;;  %v2781_v5 = vpack.c.bf16 %v2773_v35, %v2773_v35 }
 0x71f   : > { %v2782_v62 = vpack.c.bf16 %v2774_v58, %v2774_v58  ;;  %v2775_v2 = vmul.f32 %v2767_v60, %v2711_v59 }
 0x720   : > { %v2784_v46 = vpack.c.bf16 %v2776_v61, %v2776_v61  ;;  %v4650_v61 = vld [vmem:[%s6164_s10 + $0x2a4] ss:$8 sps:$4 sm:$0xff]  }
 0x721   : > { %3601 = vmatprep.mubr.bf16.mxu0 %v2782_v62  ;;  %v2783_v7 = vpack.c.bf16 %v2775_v2, %v2775_v2  ;;  %v4653_v62 = vld [vmem:[%s6164_s10 + $0x3a4] ss:$8 sps:$4 sm:$0xff]  }
 0x722   : > { %3642 = vmatprep.mubr.bf16.mxu1 %v2784_v46  ;;  %3602 = vmatmul.mubr.bf16.vlgmr.msra.gmra.mrb[24].mxu0 %v2781_v5 }
 0x723   : > { %3643 = vmatmul.mubr.bf16.vlgmr.msra.gmra.mrb[24].mxu1 %v2783_v7  ;;  %3652 = vmatpush1.bf16.msra.mxu0 %v4588_v63 }
 0x724   : > { %3693 = vmatpush1.bf16.msra.mxu1 %v4591_v3  ;;  %3653 = vmatprep.subr.bf16.mxu0 %v4596_v6 }
 0x725   : > { %3694 = vmatprep.subr.bf16.mxu1 %v4599_v8 }
 0x727   : > { %3654 = vmatpush1.bf16.msra.mxu0 %v4594_v9  ;;  %v4648_v9 = vld [vmem:[%s6164_s10 + $0x2a0] ss:$8 sps:$4 sm:$0xff]  }
 0x728   : > { %3695 = vmatpush1.bf16.msra.mxu1 %v4597_v10  ;;  %3655 = vmatprep.subr.bf16.mxu0 %v4602_v11 }
 0x729   : > { %3696 = vmatprep.subr.bf16.mxu1 %v4605_v12  ;;  %v4651_v12 = vld [vmem:[%s6164_s10 + $0x3a0] ss:$8 sps:$4 sm:$0xff]  }
 0x72b   : > { %3656 = vmatpush1.bf16.msra.mxu0 %v4600_v13  ;;  %v4656_v13 = vld [vmem:[%s6164_s10 + $0x2b4] ss:$8 sps:$4 sm:$0xff]  }
 0x72c   : > { %3697 = vmatpush1.bf16.msra.mxu1 %v4603_v14  ;;  %3657 = vmatprep.subr.bf16.mxu0 %v4608_v15 }
 0x72d   : > { %3698 = vmatprep.subr.bf16.mxu1 %v4611_v16  ;;  %v4659_v16 = vld [vmem:[%s6164_s10 + $0x3b4] ss:$8 sps:$4 sm:$0xff]  }
 0x72f   : > { %3658 = vmatpush1.bf16.msra.mxu0 %v4606_v17 }
 0x730   : > { %3699 = vmatpush1.bf16.msra.mxu1 %v4609_v18  ;;  %3659 = vmatprep.subr.bf16.mxu0 %v4614_v19 }
 0x731   : > { %3700 = vmatprep.subr.bf16.mxu1 %v4617_v20 }
 0x733   : > { %3660 = vmatpush1.bf16.msra.mxu0 %v4612_v38  ;;  %v4654_v38 = vld [vmem:[%s6164_s10 + $0x2b0] ss:$8 sps:$4 sm:$0xff]  }
 0x734   : > { %3701 = vmatpush1.bf16.msra.mxu1 %v4615_v21  ;;  %3661 = vmatprep.subr.bf16.mxu0 %v4620_v22  ;;  %v4657_v21 = vld [vmem:[%s6164_s10 + $0x3b0] ss:$8 sps:$4 sm:$0xff]   ;;  %v4662_v22 = vld [vmem:[%s6164_s10 + $0x2c4] ss:$8 sps:$4 sm:$0xff]  }
 0x735   : > { %3702 = vmatprep.subr.bf16.mxu1 %v4623_v23 }
 0x737   : > { %3662 = vmatpush1.bf16.msra.mxu0 %v4618_v24 }
 0x738   : > { %3703 = vmatpush1.bf16.msra.mxu1 %v4621_v27  ;;  %3663 = vmatprep.subr.bf16.mxu0 %v4626_v28  ;;  %v4665_v27 = vld [vmem:[%s6164_s10 + $0x3c4] ss:$8 sps:$4 sm:$0xff]  }
 0x739   : > { %3704 = vmatprep.subr.bf16.mxu1 %v4629_v42 }
 0x73b   : > { %3664 = vmatpush1.bf16.msra.mxu0 %v4624_v29 }
 0x73c   : > { %3705 = vmatpush1.bf16.msra.mxu1 %v4627_v30  ;;  %3665 = vmatprep.subr.bf16.mxu0 %v4632_v49  ;;  %v4660_v49 = vld [vmem:[%s6164_s10 + $0x2c0] ss:$8 sps:$4 sm:$0xff]  }
 0x73d   : > { %3706 = vmatprep.subr.bf16.mxu1 %v4635_v51  ;;  %v4663_v51 = vld [vmem:[%s6164_s10 + $0x3c0] ss:$8 sps:$4 sm:$0xff]  }
 0x73f   : > { %3666 = vmatpush1.bf16.msra.mxu0 %v4630_v31  ;;  %v4668_v31 = vld [vmem:[%s6164_s10 + $0x2d4] ss:$8 sps:$4 sm:$0xff]  }
 0x740   : > { %3707 = vmatpush1.bf16.msra.mxu1 %v4633_v33  ;;  %3667 = vmatprep.subr.bf16.mxu0 %v4638_v34  ;;  %v4666_v33 = vld [vmem:[%s6164_s10 + $0x2d0] ss:$8 sps:$4 sm:$0xff]  }
 0x741   : > { %3708 = vmatprep.subr.bf16.mxu1 %v4641_v25  ;;  %v4669_v34 = vld [vmem:[%s6164_s10 + $0x3d0] ss:$8 sps:$4 sm:$0xff]   ;;  %v4677_v25 = vld [vmem:[%s6164_s10 + $0x3e4] ss:$8 sps:$4 sm:$0xff]  }
 0x742   : > { %v2661_v53 = vpop.f32.mrb[20].mxu0  ;;  %v2702_v44 = vpop.f32.mrb[20].mxu1 }
 0x743   : > { %v6023_v54 = vadd.f32 %v2661_v53, %v1884_v26  ;;  %v6025_v55 = vadd.f32 %v2702_v44, %v1892_v43  ;;  %v2663_v37 = vpop.f32.mrb[21].mxu0  ;;  %v2704_v57 = vpop.f32.mrb[21].mxu1  ;;  %3668 = vmatpush1.bf16.msra.mxu0 %v4636_v45  ;;  %v4672_v26 = vld [vmem:[%s6164_s10 + $0x2e0] ss:$8 sps:$4 sm:$0xff]   ;;  %v4680_v45 = vld [vmem:[%s6164_s10 + $0x2f4] ss:$8 sps:$4 sm:$0xff]  }
 0x744   : > { %v6033_v35 = vadd.f32 %v2663_v37, %v1888_v48  ;;  %v6035_v58 = vadd.f32 %v2704_v57, %v1896_v50  ;;  %3709 = vmatpush1.bf16.msra.mxu1 %v4639_v47  ;;  %v2665_v59 = vpop.f32.mrb[22].mxu0  ;;  %v2706_v60 = vpop.f32.mrb[22].mxu1  ;;  %3669 = vmatprep.subr.bf16.mxu0 %v4644_v0  ;;  %v4675_v43 = vld [vmem:[%s6164_s10 + $0x3e0] ss:$8 sps:$4 sm:$0xff]   ;;  %v4683_v48 = vld [vmem:[%s6164_s10 + $0x3f4] ss:$8 sps:$4 sm:$0xff]  }
 0x745   : > { %v2721_v63 = vmul.f32 0.044715, %v6023_v54  ;;  %v2723_v2 = vmul.f32 0.044715, %v6025_v55  ;;  %v2666_v46 = vpop.f32.mrb[23].mxu0  ;;  %v2707_v3 = vpop.f32.mrb[23].mxu1  ;;  %3710 = vmatprep.subr.bf16.mxu1 %v4647_v52 }
 0x746   : > { %v2722_v5 = vmul.f32 0.044715, %v6033_v35  ;;  %v2724_v6 = vmul.f32 0.044715, %v6035_v58  ;;  %v2713_v0 = vmul.f32 0.5, %v6023_v54  ;;  %v2714_v37 = vmul.f32 0.5, %v6033_v35 }
 0x747   : > { %v2729_v7 = vmul.f32 %v2721_v63, %v6023_v54  ;;  %v2731_v8 = vmul.f32 %v2723_v2, %v6025_v55  ;;  %3670 = vmatpush1.bf16.msra.mxu0 %v4642_v1  ;;  %v4678_v44 = vld [vmem:[%s6164_s10 + $0x2f0] ss:$8 sps:$4 sm:$0xff]   ;;  %v2716_v59 = vmul.f32 0.5, %v6035_v58 }
 0x748   : > { %v2730_v10 = vmul.f32 %v2722_v5, %v6033_v35  ;;  %v2732_v11 = vmul.f32 %v2724_v6, %v6035_v58  ;;  %3711 = vmatpush1.bf16.msra.mxu1 %v4645_v4  ;;  %3671 = vmatprep.subr.bf16.mxu0 %v4650_v61  ;;  %v4681_v4 = vld [vmem:[%s6164_s10 + $0x3f0] ss:$8 sps:$4 sm:$0xff]  }
 0x749   : > { %v2737_v14 = vmul.f32 %v2729_v7, %v6023_v54  ;;  %v2739_v15 = vmul.f32 %v2731_v8, %v6025_v55  ;;  %3712 = vmatprep.subr.bf16.mxu1 %v4653_v62  ;;  %v2715_v62 = vmul.f32 0.5, %v6025_v55 }
 0x74a   : > { %v2738_v17 = vmul.f32 %v2730_v10, %v6033_v35  ;;  %v2740_v18 = vmul.f32 %v2732_v11, %v6035_v58 }
 0x74b   : > { %v2745_v19 = vadd.f32 %v2737_v14, %v6023_v54  ;;  %v2747_v20 = vadd.f32 %v2739_v15, %v6025_v55  ;;  %3672 = vmatpush1.bf16.msra.mxu0 %v4648_v9 }
 0x74c   : > { %3713 = vmatpush1.bf16.msra.mxu1 %v4651_v12  ;;  %3673 = vmatprep.subr.bf16.mxu0 %v4656_v13  ;;  %v2746_v23 = vadd.f32 %v2738_v17, %v6033_v35  ;;  %v2748_v24 = vadd.f32 %v2740_v18, %v6035_v58  ;;  %v2917_v58 = vld [vmem:[%s6165_s11] sm:$0x3] }
 0x74d   : > { %3714 = vmatprep.subr.bf16.mxu1 %v4659_v16  ;;  %v2753_v28 = vmul.f32 0.7978846, %v2745_v19  ;;  %v2755_v30 = vmul.f32 0.7978846, %v2747_v20  ;;  %v2922_v7 = vrot.slane %v2917_v58, %v5129_v40  ;;  %v2926_v55 = vrot.slane %v2917_v58, %v5138_v56 }
 0x74e   : > { %v2754_v42 = vmul.f32 0.7978846, %v2746_v23  ;;  %v2756_v29 = vmul.f32 0.7978846, %v2748_v24 }
 0x74f   : > { %3674 = vmatpush1.bf16.msra.mxu0 %v4654_v38  ;;  %4702 = vtanh.f32 %v2753_v28 }
 0x750   : > { %3715 = vmatpush1.bf16.msra.mxu1 %v4657_v21  ;;  %3675 = vmatprep.subr.bf16.mxu0 %v4662_v22  ;;  %4704 = vtanh.f32 %v2754_v42 }
 0x751   : > { %3716 = vmatprep.subr.bf16.mxu1 %v4665_v27  ;;  %4706 = vtanh.f32 %v2756_v29 }
 0x752   : > { %4708 = vtanh.f32 %v2755_v30 }
 0x753   : > { %3676 = vmatpush1.bf16.msra.mxu0 %v4660_v49 }
 0x754   : > { %3717 = vmatpush1.bf16.msra.mxu1 %v4663_v51  ;;  %3677 = vmatprep.subr.bf16.mxu0 %v4668_v31 }
 0x755   : > { %3718 = vmatprep.subr.bf16.mxu1 %v4671_v32 }
 0x757   : > { %3678 = vmatpush1.bf16.msra.mxu0 %v4666_v33 }
 0x758   : > { %3719 = vmatpush1.bf16.msra.mxu1 %v4669_v34  ;;  %3679 = vmatprep.subr.bf16.mxu0 %v4674_v41 }
 0x759   : > { %v4703_v47 = vpop.eup %4702  ;;  %3720 = vmatprep.subr.bf16.mxu1 %v4677_v25 }
 0x75a   : > { %v4705_v50 = vpop.eup %4704  ;;  %v2769_v52 = vadd.f32 1.0, %v4703_v47 }
 0x75b   : > { %v4707_v53 = vpop.eup %4706  ;;  %3680 = vmatpush1.bf16.msra.mxu0 %v4672_v26  ;;  %v2770_v57 = vadd.f32 1.0, %v4705_v50 }
 0x75c   : > { %v4709_v1 = vpop.eup %4708  ;;  %3721 = vmatpush1.bf16.msra.mxu1 %v4675_v43  ;;  %3681 = vmatprep.subr.bf16.mxu0 %v4680_v45  ;;  %v2772_v54 = vadd.f32 1.0, %v4707_v53  ;;  %v2777_v60 = vmul.f32 %v2769_v52, %v2713_v0 }
 0x75d   : > { %3722 = vmatprep.subr.bf16.mxu1 %v4683_v48  ;;  %v2778_v61 = vmul.f32 %v2770_v57, %v2714_v37  ;;  %v2771_v63 = vadd.f32 1.0, %v4709_v1 }
 0x75e   : > { %v2780_v2 = vmul.f32 %v2772_v54, %v2716_v59  ;;  %v2785_v5 = vpack.c.bf16 %v2777_v60, %v2777_v60 }
 0x75f   : > { %3682 = vmatpush1.bf16.msra.mxu0 %v4678_v44  ;;  %v2786_v35 = vpack.c.bf16 %v2778_v61, %v2778_v61  ;;  %v2779_v46 = vmul.f32 %v2771_v63, %v2715_v62 }
 0x760   : > { %3723 = vmatpush1.bf16.msra.mxu1 %v4681_v4  ;;  %v2788_v3 = vpack.c.bf16 %v2780_v2, %v2780_v2 }
 0x761   : > { %3683 = vmatprep.mubr.bf16.mxu0 %v2786_v35  ;;  %v2787_v6 = vpack.c.bf16 %v2779_v46, %v2779_v46 }
 0x762   : > { %3724 = vmatprep.mubr.bf16.mxu1 %v2788_v3  ;;  %3684 = vmatmul.mubr.bf16.vlgmr.msra.gmra.mrb[28].mxu0 %v2785_v5 }
 0x763   : > { %3725 = vmatmul.mubr.bf16.vlgmr.msra.gmra.mrb[28].mxu1 %v2787_v6 }
 0x7f5   : > { %v3603_v8 = vpop.f32.mrb[24].mxu0 }
 0x7f6   : > { %v3604_v9 = vadd.f32 %v3603_v8, %v2922_v7  ;;  %v3644_v10 = vpop.f32.mrb[24].mxu1  ;;  %v3605_v11 = vpop.f32.mrb[25].mxu0 }
 0x7f7   : > { %v3606_v12 = vadd.f32 %v3605_v11, %v2926_v55  ;;  %v3646_v13 = vpop.f32.mrb[25].mxu1  ;;  %v3607_v14 = vpop.f32.mrb[26].mxu0 }
 0x7f8   : > { %v3645_v15 = vadd.f32 %v3644_v10, %v3604_v9  ;;  %v3648_v16 = vpop.f32.mrb[26].mxu1  ;;  %v3608_v17 = vpop.f32.mrb[27].mxu0 }
 0x7f9   : > { %v3647_v18 = vadd.f32 %v3646_v13, %v3606_v12  ;;  %v3649_v19 = vpop.f32.mrb[27].mxu1 }
 0x835   : > { %v3685_v20 = vpop.f32.mrb[28].mxu0 }
 0x836   : > { %v3686_v38 = vadd.f32 %v3685_v20, %v3645_v15  ;;  %v3726_v21 = vpop.f32.mrb[28].mxu1  ;;  %v3687_v22 = vpop.f32.mrb[29].mxu0 }
 0x837   : > { %v3688_v23 = vadd.f32 %v3687_v22, %v3647_v18  ;;  %v3728_v24 = vpop.f32.mrb[29].mxu1  ;;  %v3689_v27 = vpop.f32.mrb[30].mxu0 }
 0x838   : > { %v3727_v28 = vadd.f32 %v3726_v21, %v3686_v38  ;;  %v3730_v42 = vpop.f32.mrb[30].mxu1  ;;  %v3690_v29 = vpop.f32.mrb[31].mxu0 }
 0x839   : > { %v3729_v30 = vadd.f32 %v3728_v24, %v3688_v23  ;;  %v3731_v49 = vpop.f32.mrb[31].mxu1 }
 0x83a   : > { %v3733_v51 = vadd.f32 %v3727_v28, %v5500_v39  ;;  %v3735_v39 = vld [vmem:[%s6166_s12] sm:$0x3] }
 0x83b   : > { %v3734_v31 = vadd.f32 %v3729_v30, %v5498_v36  ;;  %v3736_v36 = vld [vmem:[%s6167_s13] sm:$0x3]  ;;  %v3757_v0 = vrot.slane %v3735_v39, %v5129_v40  ;;  %v3761_v52 = vrot.slane %v3735_v39, %v5138_v56 }
 0x83c   : > { %v3770_v44 = vrot.slane %v3736_v36, %v5129_v40  ;;  %v3774_v37 = vrot.slane %v3736_v36, %v5138_v56 }
 0x83d   : > { %v3737_v32 = vadd.f32 %v3734_v31, %v3733_v51 }
 0x83f   : > { %3738 = vadd.xlane.f32.xlu0 %v3737_v32 }
 0x8cc   : > { %v3739_v33 = vpop.xlane.xlu0 %3738 }
 0x8cd   : > { %v3740_v34 = vmul.f32 0.00390625, %v3739_v33 }
 0x8cf   : > { %v3741_v41 = vsub.f32 %v3733_v51, %v3740_v34  ;;  %v3742_v25 = vsub.f32 %v3734_v31, %v3740_v34 }
 0x8d1   : > { %v3743_v26 = vmul.f32 %v3741_v41, %v3741_v41  ;;  %v3744_v43 = vmul.f32 %v3742_v25, %v3742_v25 }
 0x8d3   : > { %v3745_v45 = vadd.f32 %v3744_v43, %v3743_v26 }
 0x8d5   : > { %3746 = vadd.xlane.f32.xlu1 %v3745_v45 }
 0x962   : > { %v3747_v47 = vpop.xlane.xlu1 %3746 }
 0x963   : > { %v3748_v48 = vmul.f32 0.00390625, %v3747_v47 }
 0x965   : > { %v3749_v50 = vadd.f32 1e-05, %v3748_v48 }
 0x967   : > { %4710 = vrsqrt.f32 %v3749_v50 }
 0x971   : > { %v4711_v53 = vpop.eup %4710 }
 0x972   : > { %v3751_v57 = vmul.f32 %v4711_v53, %v3741_v41  ;;  %v3752_v1 = vmul.f32 %v4711_v53, %v3742_v25 }
 0x974   : > { %v3764_v4 = vmul.f32 %v3757_v0, %v3751_v57  ;;  %v3765_v59 = vmul.f32 %v3761_v52, %v3752_v1 }
 0x976   : > { %v3777_v54 = vadd.f32 %v3770_v44, %v3764_v4  ;;  %v3778_v60 = vadd.f32 %v3774_v37, %v3765_v59 }
 0x978   : > { %v4255_v61 = vpack.c.bf16 %v3778_v60, %v3777_v54 }
 0x97a   : > { %3787 = vst [vmem:[%s481_s22] sm:$0xff] %v4255_v61 }
 0x97b PF: > { %s24_s29 = sadd.s32 1, %s4718_s29  }
 0x97c   : > { %p21_p4 = scmp.ge.s32.totalorder %s24_s29, 4  }
 0x97e   :  { %23 = sbr.rel (!%p21_p4) target bundleno = 1 (0x1), region = 109 }

// kernel: forward.4
= control target key start
LH: loop header
LB: loop body
LE: loop exit
PB: predicated region body
PF: predicated region fallthrough
CT: control target
= control target key end

     0   :  { %s5417_s0 = inlined_call_operand.vmem [shape: bf16[16,256], index: 0, kind: input, shape index: {}]   ;;  %s5418_s1 = inlined_call_operand.vmem [shape: f32[2,1,8], index: 1, kind: input, shape index: {}]   ;;  %s5419_s2 = inlined_call_operand.hbm [shape: bf16[256,768], index: 2, kind: input, shape index: {}]   ;;  %s5420_s3 = inlined_call_operand.vmem [shape: f32[1,768], index: 3, kind: input, shape index: {}]   ;;  %s5421_s4 = inlined_call_operand.vmem [shape: bf16[256,256], index: 4, kind: input, shape index: {}]   ;;  %s5422_s5 = inlined_call_operand.vmem [shape: f32[1,256], index: 5, kind: input, shape index: {}]   ;;  %s5423_s6 = inlined_call_operand.vmem [shape: f32[1,256], index: 6, kind: input, shape index: {}]   ;;  %s5424_s7 = inlined_call_operand.vmem [shape: f32[1,256], index: 7, kind: input, shape index: {}]   ;;  %s5425_s8 = inlined_call_operand.hbm [shape: bf16[256,1024], index: 8, kind: input, shape index: {}]   ;;  %s5426_s9 = inlined_call_operand.vmem [shape: f32[1,1024], index: 9, kind: input, shape index: {}]   ;;  %s5427_s10 = inlined_call_operand.hbm [shape: bf16[1024,256], index: 10, kind: input, shape index: {}]   ;;  %s5428_s11 = inlined_call_operand.vmem [shape: f32[1,256], index: 11, kind: input, shape index: {}]   ;;  %s5429_s12 = inlined_call_operand.vmem [shape: f32[1,256], index: 12, kind: input, shape index: {}]   ;;  %s5430_s13 = inlined_call_operand.vmem [shape: f32[1,256], index: 13, kind: input, shape index: {}]   ;;  %s5431_s14 = inlined_call_operand.vmem [shape: bf16[16,256], index: 14, kind: output, shape index: {}]  }
   0x1   :  { %5435 = sst [smem:[#allocation10_spill]] %s5430_s13 }
   0x2   :  { %5436 = sst [smem:[#allocation11_spill]] %s5431_s14 }
   0x3   :  { %19 = vsyncpa [#allocation3], 0 }
   0x4   :  { %20 = vsyncpa [#allocation5], 0  ;;  %s5016_s29 = smov 0  }
   0x5 LB: > { %5437 = sst [smem:[#allocation9_spill]] %s4928_s29  ;;  %s4930_s30 = smov [#allocation4]   ;;  %s4928_s29 = sphi %s5016_s29, %s26_s29  }
   0x6   : > { %s401_s15 = sshll.u32 %s4930_s30, 4  ;;  %s5022_s16 = sadd.s32 4294967295, %s4928_s29   ;;  %s5027_s15 = int_to_ptr.vmem [resolvable:$true] %s401_s15 }
   0x7   : > { %p3929_p0 = scmp.ge.s32.totalorder %s4928_s29, 1  ;;  %p361_p1 = scmp.lt.s32.totalorder %s4928_s29, 3 }
   0x8   : > { %p5433_p2 = scmp.eq.s32.totalorder %s5022_s16, 0  ;;  %s4931_s18 = smov [#allocation2]  }
   0x9   : > { %p5029_p3 = pnand %p3929_p0, %p361_p1  ;;  %s373_s19 = sshll.u32 %s4931_s18, 4  ;;  %s5035_s19 = int_to_ptr.vmem [resolvable:$true] %s373_s19 }
   0xa   : > { %s4932_s21 = smov [#allocation6]   ;;  %s4830_s25 = scalar_lea.hbm %s5425_s8, 16384 }
   0xb   : > { %s5438_s17 = scalar_select %p5029_p3, 1, 0 }
   0xc   : > { %p4381_p4 = pneg %p5029_p3  ;;  %s5043_s22 = sshll.u32 %s4932_s21, 4  ;;  %s418_s22 = int_to_ptr.vmem [resolvable:$true] %s5043_s22 }
   0xd   : > { %p4831_p6 = scmp.ne.s32.totalorder %s5425_s8, %s4830_s25  ;;  %p4837_p10 = scmp.lt.u32.totalorder %s4830_s25, %s5425_s8 }
   0xe   : > { %p5039_p5 = pnand %p5433_p2, %p4381_p4 }
  0x10   : > { %p5053_p7 = pneg %p5039_p5 }
  0x12   : > { %p4833_p8 = pnand %p5053_p7, %p4831_p6 }
  0x14   : > { %p4834_p9 = pneg %p4833_p8 }
  0x16   : > { %p4839_p11 = pnand %p4837_p10, %p4834_p9 }
  0x18   : > { %4842 = shalt.err (!%p4839_p11)
}
  0x19   : > { %s4843_s21 = scalar_lea.vmem %s5027_s15, 16384  ;;  %p4851_p1 = scmp.lt.s32.totalorder %s5027_s15, %s5027_s15 }
  0x1a   : > { %p4844_p12 = scmp.ne.s32.totalorder %s5027_s15, %s4843_s21  ;;  %p4852_p4 = scmp.lt.s32.totalorder %s4843_s21, %s4843_s21 }
  0x1c   : > { %p4846_p13 = pnand %p4844_p12, %p5053_p7  ;;  %p4853_p6 = por %p4852_p4, %p4851_p1 }
  0x1e   : > { %p4847_p0 = pneg %p4846_p13 }
  0x20   : > { %p4854_p8 = pnand %p4853_p6, %p4847_p0 }
  0x22   : > { %4857 = shalt.err (!%p4854_p8)
}
  0x23   : > { %s4933_s23 = smov 512   ;;  %s4934_s24 = smov 32  }
  0x24   : > { %4387 = dma.hbm_to_vmem [thread:$0]  (!%p5039_p5), %s5425_s8, 16384, %s5027_s15, [#allocation5], %s4933_s23, %s4933_s23, %s4934_s24  }
  0x25   : > { %s4858_s18 = scalar_lea.hbm %s5419_s2, 12288 }
  0x26   : > { %p4859_p9 = scmp.ne.s32.totalorder %s5419_s2, %s4858_s18  ;;  %p4865_p12 = scmp.lt.u32.totalorder %s4858_s18, %s5419_s2 }
  0x28   : > { %p4861_p10 = pnand %p4859_p9, %p5053_p7 }
  0x2a   : > { %p4862_p11 = pneg %p4861_p10 }
  0x2c   : > { %p4867_p13 = pnand %p4865_p12, %p4862_p11 }
  0x2e   : > { %4870 = shalt.err (!%p4867_p13)
}
  0x2f   : > { %s4871_s15 = scalar_lea.vmem %s5035_s19, 12288  ;;  %p4879_p6 = scmp.lt.s32.totalorder %s5035_s19, %s5035_s19 }
  0x30   : > { %p4872_p0 = scmp.ne.s32.totalorder %s5035_s19, %s4871_s15  ;;  %p4880_p8 = scmp.lt.s32.totalorder %s4871_s15, %s4871_s15 }
  0x32   : > { %p4874_p1 = pnand %p4872_p0, %p5053_p7  ;;  %p4881_p9 = por %p4880_p8, %p4879_p6 }
  0x34   : > { %p4875_p4 = pneg %p4874_p1 }
  0x36   : > { %p4882_p10 = pnand %p4881_p9, %p4875_p4 }
  0x38   : > { %4885 = shalt.err (!%p4882_p10)
}
  0x39   : > { %s4935_s14 = smov 384   ;;  %s4936_s13 = smov 24  }
  0x3a   : > { %4384 = dma.hbm_to_vmem [thread:$0]  (!%p5039_p5), %s5419_s2, 12288, %s5035_s19, [#allocation3], %s4935_s14, %s4935_s14, %s4936_s13  }
  0x3b   : > { %s4886_s26 = scalar_lea.hbm %s5427_s10, 16384 }
  0x3c   : > { %p4887_p11 = scmp.ne.s32.totalorder %s5427_s10, %s4886_s26  ;;  %p4893_p0 = scmp.lt.u32.totalorder %s4886_s26, %s5427_s10 }
  0x3e   : > { %p4889_p12 = pnand %p4887_p11, %p5053_p7 }
  0x40   : > { %p4890_p13 = pneg %p4889_p12 }
  0x42   : > { %p4895_p1 = pnand %p4893_p0, %p4890_p13 }
  0x44   : > { %4898 = shalt.err (!%p4895_p1)
}
  0x45   : > { %s4899_s15 = scalar_lea.vmem %s418_s22, 16384  ;;  %p4907_p9 = scmp.lt.s32.totalorder %s418_s22, %s418_s22 }
  0x46   : > { %p4900_p4 = scmp.ne.s32.totalorder %s418_s22, %s4899_s15  ;;  %p4908_p10 = scmp.lt.s32.totalorder %s4899_s15, %s4899_s15 }
  0x48   : > { %p4902_p6 = pnand %p4900_p4, %p5053_p7  ;;  %p4909_p2 = por %p4908_p10, %p4907_p9 }
  0x4a   : > { %p4903_p8 = pneg %p4902_p6 }
  0x4c   : > { %p4910_p3 = pnand %p4909_p2, %p4903_p8 }
  0x4e   : > { %4913 = shalt.err (!%p4910_p3)
}
  0x4f   : > { %s4937_s19 = smov 128   ;;  %s4938_s14 = smov 8  }
  0x50   : > { %4390 = dma.hbm_to_vmem [thread:$0]  (!%p5039_p5), %s5427_s10, 16384, %s418_s22, [#allocation5], %s4937_s19, %s4937_s19, %s4938_s14  }
  0x51   : > { %p5441_p11 = scmp.ne.s32.totalorder %s5438_s17, 0 }
  0x52   : > { %p5442_p12 = scmp.eq.s32.totalorder (!%p5441_p11), %s5022_s16, 0 }
  0x53   : > { %456 = sbr.rel (%p5441_p11) target bundleno = 2517 (0x9d5), region = 76 }
  0x5a   : > { %4919 = dma.done.wait (%p5442_p12), [#allocation3], 12288   ;;  %p5443_p7 = pmov %p5442_p12 }
  0x5c   : > { %4921 = vsyncadd (%p5443_p7), [#allocation3], 4294955008  ;;  %p5444_p2 = pmov %p5443_p7 }
  0x5e   : > { %4923 = dma.done.wait (%p5444_p2), [#allocation5], 32768   ;;  %p5445_p3 = pmov %p5444_p2 }
  0x5f   : > { %v4416_v0 = vld [vmem:[#allocation2 + $0xc] ss:$24 sps:$4 sm:$0xff]   ;;  %v4418_v1 = vld [vmem:[#allocation2 + $0x8] ss:$24 sps:$4 sm:$0xff]   ;;  %v4419_v2 = vld [vmem:[#allocation2 + $0x3c] ss:$24 sps:$4 sm:$0xff]  }
  0x60   : > { %4925 = vsyncadd (%p5445_p3), [#allocation5], 4294934528  ;;  %1187 = vmatprep.subr.bf16.mxu1 %v4416_v0  ;;  %v4421_v3 = vld [vmem:[#allocation2 + $0x4] ss:$24 sps:$4 sm:$0xff]   ;;  %v4423_v4 = vld [vmem:[#allocation2 + $0x38] ss:$24 sps:$4 sm:$0xff]  }
  0x61   : > { %1188 = vmatpush1.bf16.msra.mxu1 %v4418_v1  ;;  %v4424_v5 = vld [vmem:[#allocation2] ss:$24 sps:$4 sm:$0xff]   ;;  %v4425_v6 = vld [vmem:[#allocation2 + $0x6c] ss:$24 sps:$4 sm:$0xff]   ;;  %1146 = vmatprep.subr.bf16.mxu0 %v4421_v3  ;;  %v4430_v8 = vld [vmem:[#allocation2 + $0x30] ss:$24 sps:$4 sm:$0xff]  }
  0x62   : > { %1189 = vmatprep.subr.bf16.mxu1 %v4419_v2  ;;  %v4427_v7 = vld [vmem:[#allocation2 + $0x34] ss:$24 sps:$4 sm:$0xff]   ;;  %1147 = vmatpush1.bf16.msra.mxu0 %v4424_v5  ;;  %v4429_v9 = vld [vmem:[#allocation2 + $0x68] ss:$24 sps:$4 sm:$0xff]   ;;  %v4433_v11 = vld [vmem:[#allocation2 + $0x64] ss:$24 sps:$4 sm:$0xff]  }
  0x63   : > { %1148 = vmatprep.subr.bf16.mxu0 %v4427_v7  ;;  %v4431_v10 = vld [vmem:[#allocation2 + $0x9c] ss:$24 sps:$4 sm:$0xff]   ;;  %v4436_v12 = vld [vmem:[#allocation2 + $0x60] ss:$24 sps:$4 sm:$0xff]   ;;  %v4437_v15 = vld [vmem:[#allocation2 + $0xcc] ss:$24 sps:$4 sm:$0xff]  }
  0x64   : > { %v4435_v13 = vld [vmem:[#allocation2 + $0x98] ss:$24 sps:$4 sm:$0xff]   ;;  %v4439_v14 = vld [vmem:[#allocation2 + $0x94] ss:$24 sps:$4 sm:$0xff]   ;;  %v4441_v16 = vld [vmem:[#allocation2 + $0xc8] ss:$24 sps:$4 sm:$0xff]  }
  0x65   : > { %1190 = vmatpush1.bf16.msra.mxu1 %v4423_v4  ;;  %v4442_v17 = vld [vmem:[#allocation2 + $0x90] ss:$24 sps:$4 sm:$0xff]   ;;  %v4445_v18 = vld [vmem:[#allocation2 + $0xc4] ss:$24 sps:$4 sm:$0xff]   ;;  %v4448_v20 = vld [vmem:[#allocation2 + $0xc0] ss:$24 sps:$4 sm:$0xff]  }
  0x66   : > { %1191 = vmatprep.subr.bf16.mxu1 %v4425_v6  ;;  %1149 = vmatpush1.bf16.msra.mxu0 %v4430_v8  ;;  %v4443_v19 = vld [vmem:[#allocation2 + $0xfc] ss:$24 sps:$4 sm:$0xff]   ;;  %v4447_v21 = vld [vmem:[#allocation2 + $0xf8] ss:$24 sps:$4 sm:$0xff]   ;;  %v4449_v23 = vld [vmem:[#allocation2 + $0x12c] ss:$24 sps:$4 sm:$0xff]  }
  0x67   : > { %1150 = vmatprep.subr.bf16.mxu0 %v4433_v11  ;;  %v4451_v22 = vld [vmem:[#allocation2 + $0xf4] ss:$24 sps:$4 sm:$0xff]   ;;  %v4453_v24 = vld [vmem:[#allocation2 + $0x128] ss:$24 sps:$4 sm:$0xff]   ;;  %v4457_v26 = vld [vmem:[#allocation2 + $0x124] ss:$24 sps:$4 sm:$0xff]  }
  0x68   : > { %v4454_v25 = vld [vmem:[#allocation2 + $0xf0] ss:$24 sps:$4 sm:$0xff]   ;;  %v4455_v27 = vld [vmem:[#allocation2 + $0x15c] ss:$24 sps:$4 sm:$0xff]   ;;  %v4460_v28 = vld [vmem:[#allocation2 + $0x120] ss:$24 sps:$4 sm:$0xff]  }
  0x69   : > { %1192 = vmatpush1.bf16.msra.mxu1 %v4429_v9  ;;  %v4459_v29 = vld [vmem:[#allocation2 + $0x158] ss:$24 sps:$4 sm:$0xff]   ;;  %v4463_v30 = vld [vmem:[#allocation2 + $0x154] ss:$24 sps:$4 sm:$0xff]   ;;  %p513_p5 = scmp.lt.s32.totalorder %s5022_s16, 1  ;;  %vm4940_vm0 = vmmov 0  }
  0x6a   : > { %1193 = vmatprep.subr.bf16.mxu1 %v4431_v10  ;;  %1151 = vmatpush1.bf16.msra.mxu0 %v4436_v12  ;;  %v4461_v31 = vld [vmem:[#allocation2 + $0x18c] ss:$24 sps:$4 sm:$0xff]   ;;  %v4465_v32 = vld [vmem:[#allocation2 + $0x188] ss:$24 sps:$4 sm:$0xff]   ;;  %v4467_v35 = vld [vmem:[#allocation2 + $0x1bc] ss:$24 sps:$4 sm:$0xff]  }
  0x6b   : > { %1152 = vmatprep.subr.bf16.mxu0 %v4439_v14  ;;  %v4466_v33 = vld [vmem:[#allocation2 + $0x150] ss:$24 sps:$4 sm:$0xff]   ;;  %v4469_v34 = vld [vmem:[#allocation2 + $0x184] ss:$24 sps:$4 sm:$0xff]   ;;  %s5450_s16 = smov (!%p513_p5, %s5022_s16), 1  ;;  %vm1393_vm1 = vcmask 1043456  }
  0x6c   : > { %v4472_v36 = vld [vmem:[#allocation2 + $0x180] ss:$24 sps:$4 sm:$0xff]   ;;  %v4475_v38 = vld [vmem:[#allocation2 + $0x1b4] ss:$24 sps:$4 sm:$0xff]   ;;  %s4334_s17 = sshll.u32 %s5450_s16, 3  ;;  %s520_s27 = scalar_lea.vmem %s5418_s1, %s5450_s16  ;;  %vm1365_vm2 = vcmask 64512  }
  0x6d   : > { %1194 = vmatpush1.bf16.msra.mxu1 %v4435_v13  ;;  %v4471_v37 = vld [vmem:[#allocation2 + $0x1b8] ss:$24 sps:$4 sm:$0xff]   ;;  %v4473_v39 = vld [vmem:[#allocation2 + $0x1ec] ss:$24 sps:$4 sm:$0xff]   ;;  %v4477_v40 = vld [vmem:[#allocation2 + $0x1e8] ss:$24 sps:$4 sm:$0xff]   ;;  %s517_s28 = scalar_lea.vmem %s5417_s0, %s4334_s17 }
  0x6e   : > { %1195 = vmatprep.subr.bf16.mxu1 %v4437_v15  ;;  %1153 = vmatpush1.bf16.msra.mxu0 %v4442_v17  ;;  %v4478_v41 = vld [vmem:[#allocation2 + $0x1b0] ss:$24 sps:$4 sm:$0xff]   ;;  %v4481_v42 = vld [vmem:[#allocation2 + $0x1e4] ss:$24 sps:$4 sm:$0xff]   ;;  %v4484_v46 = vld [vmem:[#allocation2 + $0x1e0] ss:$24 sps:$4 sm:$0xff]  }
  0x6f   : > { %1154 = vmatprep.subr.bf16.mxu0 %v4445_v18  ;;  %v4479_v43 = vld [vmem:[#allocation2 + $0x21c] ss:$24 sps:$4 sm:$0xff]   ;;  %v5136_v44 = vld [vmem:[%s517_s28] sm:$0xff]  ;;  %v4483_v45 = vld [vmem:[#allocation2 + $0x218] ss:$24 sps:$4 sm:$0xff]   ;;  %s5446_s26 = sld [smem:[#allocation10_spill]] }
  0x70   : > { %v3943_v47 = vcombine.high %v5136_v44, %v5136_v44  ;;  %v4487_v48 = vld [vmem:[#allocation2 + $0x214] ss:$24 sps:$4 sm:$0xff]   ;;  %v4489_v50 = vld [vmem:[#allocation2 + $0x248] ss:$24 sps:$4 sm:$0xff]   ;;  %v4493_v52 = vld [vmem:[#allocation2 + $0x244] ss:$24 sps:$4 sm:$0xff]   ;;  %v5142_v1 = vcombine.low %v5136_v44, %v5136_v44 }
  0x71   : > { %1196 = vmatpush1.bf16.msra.mxu1 %v4441_v16  ;;  %v4485_v49 = vld [vmem:[#allocation2 + $0x24c] ss:$24 sps:$4 sm:$0xff]   ;;  %v4490_v51 = vld [vmem:[#allocation2 + $0x210] ss:$24 sps:$4 sm:$0xff]   ;;  %v4491_v53 = vld [vmem:[#allocation2 + $0x27c] ss:$24 sps:$4 sm:$0xff]  }
  0x72   : > { %1197 = vmatprep.subr.bf16.mxu1 %v4443_v19  ;;  %1155 = vmatpush1.bf16.msra.mxu0 %v4448_v20  ;;  %v4495_v54 = vld [vmem:[#allocation2 + $0x278] ss:$24 sps:$4 sm:$0xff]   ;;  %v4499_v56 = vld [vmem:[#allocation2 + $0x274] ss:$24 sps:$4 sm:$0xff]   ;;  %v4501_v58 = vld [vmem:[#allocation2 + $0x2a8] ss:$24 sps:$4 sm:$0xff]  }
  0x73   : > { %1156 = vmatprep.subr.bf16.mxu0 %v4451_v22  ;;  %1219 = vmatprep.mubr.bf16.mxu1 %v3943_v47  ;;  %v4496_v55 = vld [vmem:[#allocation2 + $0x240] ss:$24 sps:$4 sm:$0xff]   ;;  %v4497_v57 = vld [vmem:[#allocation2 + $0x2ac] ss:$24 sps:$4 sm:$0xff]   ;;  %v4502_v59 = vld [vmem:[#allocation2 + $0x270] ss:$24 sps:$4 sm:$0xff]  }
  0x74   : > { %1178 = vmatprep.mubr.bf16.mxu0 %v3943_v47  ;;  %v4505_v60 = vld [vmem:[#allocation2 + $0x2a4] ss:$24 sps:$4 sm:$0xff]   ;;  %v4507_v62 = vld [vmem:[#allocation2 + $0x2d8] ss:$24 sps:$4 sm:$0xff]   ;;  %v4511_v0 = vld [vmem:[#allocation2 + $0x2d4] ss:$24 sps:$4 sm:$0xff]  }
  0x75   : > { %1198 = vmatpush1.bf16.msra.mxu1 %v4447_v21  ;;  %v4503_v61 = vld [vmem:[#allocation2 + $0x2dc] ss:$24 sps:$4 sm:$0xff]   ;;  %v4508_v63 = vld [vmem:[#allocation2 + $0x2a0] ss:$24 sps:$4 sm:$0xff]   ;;  %v4513_v2 = vld [vmem:[#allocation2 + $0x2d0] ss:$24 sps:$4 sm:$0xff]  }
  0x76   : > { %1199 = vmatprep.subr.bf16.mxu1 %v4449_v23  ;;  %1157 = vmatpush1.bf16.msra.mxu0 %v4454_v25  ;;  %v4516_v3 = vld [vmem:[#allocation2 + $0x14] ss:$24 sps:$4 sm:$0xff]   ;;  %v4514_v4 = vld [vmem:[#allocation2 + $0x10] ss:$24 sps:$4 sm:$0xff]   ;;  %v4519_v5 = vld [vmem:[#allocation2 + $0x44] ss:$24 sps:$4 sm:$0xff]  }
  0x77   : > { %1158 = vmatprep.subr.bf16.mxu0 %v4457_v26  ;;  %v4517_v6 = vld [vmem:[#allocation2 + $0x40] ss:$24 sps:$4 sm:$0xff]   ;;  %v4522_v7 = vld [vmem:[#allocation2 + $0x74] ss:$24 sps:$4 sm:$0xff]   ;;  %v4520_v8 = vld [vmem:[#allocation2 + $0x70] ss:$24 sps:$4 sm:$0xff]  }
  0x78   : > { %v4525_v9 = vld [vmem:[#allocation2 + $0xa4] ss:$24 sps:$4 sm:$0xff]   ;;  %v4523_v10 = vld [vmem:[#allocation2 + $0xa0] ss:$24 sps:$4 sm:$0xff]   ;;  %v4528_v11 = vld [vmem:[#allocation2 + $0xd4] ss:$24 sps:$4 sm:$0xff]  }
  0x79   : > { %1200 = vmatpush1.bf16.msra.mxu1 %v4453_v24  ;;  %v4526_v12 = vld [vmem:[#allocation2 + $0xd0] ss:$24 sps:$4 sm:$0xff]   ;;  %v4531_v13 = vld [vmem:[#allocation2 + $0x104] ss:$24 sps:$4 sm:$0xff]   ;;  %v4529_v14 = vld [vmem:[#allocation2 + $0x100] ss:$24 sps:$4 sm:$0xff]  }
  0x7a   : > { %1201 = vmatprep.subr.bf16.mxu1 %v4455_v27  ;;  %1159 = vmatpush1.bf16.msra.mxu0 %v4460_v28  ;;  %v4534_v15 = vld [vmem:[#allocation2 + $0x134] ss:$24 sps:$4 sm:$0xff]   ;;  %v4532_v16 = vld [vmem:[#allocation2 + $0x130] ss:$24 sps:$4 sm:$0xff]   ;;  %v4537_v17 = vld [vmem:[#allocation2 + $0x164] ss:$24 sps:$4 sm:$0xff]  }
  0x7b   : > { %1160 = vmatprep.subr.bf16.mxu0 %v4463_v30  ;;  %v4535_v18 = vld [vmem:[#allocation2 + $0x160] ss:$24 sps:$4 sm:$0xff]   ;;  %v4540_v19 = vld [vmem:[#allocation2 + $0x194] ss:$24 sps:$4 sm:$0xff]   ;;  %v4538_v20 = vld [vmem:[#allocation2 + $0x190] ss:$24 sps:$4 sm:$0xff]  }
  0x7c   : > { %v4543_v21 = vld [vmem:[#allocation2 + $0x1c4] ss:$24 sps:$4 sm:$0xff]   ;;  %v4541_v22 = vld [vmem:[#allocation2 + $0x1c0] ss:$24 sps:$4 sm:$0xff]   ;;  %v4546_v23 = vld [vmem:[#allocation2 + $0x1f4] ss:$24 sps:$4 sm:$0xff]  }
  0x7d   : > { %1202 = vmatpush1.bf16.msra.mxu1 %v4459_v29  ;;  %v4544_v24 = vld [vmem:[#allocation2 + $0x1f0] ss:$24 sps:$4 sm:$0xff]   ;;  %v4549_v25 = vld [vmem:[#allocation2 + $0x224] ss:$24 sps:$4 sm:$0xff]   ;;  %v4547_v26 = vld [vmem:[#allocation2 + $0x220] ss:$24 sps:$4 sm:$0xff]  }
  0x7e   : > { %1203 = vmatprep.subr.bf16.mxu1 %v4461_v31  ;;  %1161 = vmatpush1.bf16.msra.mxu0 %v4466_v33  ;;  %v4552_v27 = vld [vmem:[#allocation2 + $0x254] ss:$24 sps:$4 sm:$0xff]   ;;  %v4550_v28 = vld [vmem:[#allocation2 + $0x250] ss:$24 sps:$4 sm:$0xff]   ;;  %v4555_v29 = vld [vmem:[#allocation2 + $0x284] ss:$24 sps:$4 sm:$0xff]  }
  0x7f   : > { %1162 = vmatprep.subr.bf16.mxu0 %v4469_v34  ;;  %v4553_v30 = vld [vmem:[#allocation2 + $0x280] ss:$24 sps:$4 sm:$0xff]   ;;  %v4558_v31 = vld [vmem:[#allocation2 + $0x2b4] ss:$24 sps:$4 sm:$0xff]   ;;  %v4561_v33 = vld [vmem:[#allocation2 + $0x2e4] ss:$24 sps:$4 sm:$0xff]  }
  0x80   : > { %v4559_v34 = vld [vmem:[#allocation2 + $0x2e0] ss:$24 sps:$4 sm:$0xff]   ;;  %s5447_s18 = sld [smem:[#allocation11_spill]] }
  0x81   : > { %1204 = vmatpush1.bf16.msra.mxu1 %v4465_v32  ;;  %v4556_v32 = vld [vmem:[#allocation2 + $0x2b0] ss:$24 sps:$4 sm:$0xff]  }
  0x82   : > { %1205 = vmatprep.subr.bf16.mxu1 %v4467_v35  ;;  %1163 = vmatpush1.bf16.msra.mxu0 %v4472_v36  ;;  %v4939_v35 = vmov 0.0   ;;  %v629_v36 = vlaneseq }
  0x83   : > { %1164 = vmatprep.subr.bf16.mxu0 %v4475_v38 }
  0x85   : > { %1206 = vmatpush1.bf16.msra.mxu1 %v4471_v37  ;;  %v5153_v37 = vshrl.u32 %v629_v36, 7 }
  0x86   : > { %1207 = vmatprep.subr.bf16.mxu1 %v4473_v39  ;;  %1165 = vmatpush1.bf16.msra.mxu0 %v4478_v41  ;;  %v627_v39 = vld [vmem:[%s5420_s3] sm:$0x3f]  ;;  %s525_s21 = scalar_lea.vmem %s5447_s18, %s4334_s17 }
  0x87   : > { %1166 = vmatprep.subr.bf16.mxu0 %v4481_v42  ;;  %v639_v38 = vsub.s32 2, %v5153_v37  ;;  %v643_v42 = vsub.s32 3, %v5153_v37 }
  0x89   : > { %1208 = vmatpush1.bf16.msra.mxu1 %v4477_v40  ;;  %v5160_v40 = vsub.s32 0, %v5153_v37  ;;  %v640_v41 = vrot.slane %v627_v39, %v639_v38 }
  0x8a   : > { %1209 = vmatprep.subr.bf16.mxu1 %v4479_v43  ;;  %1167 = vmatpush1.bf16.msra.mxu0 %v4484_v46 }
  0x8b   : > { %1168 = vmatprep.subr.bf16.mxu0 %v4487_v48 }
  0x8d   : > { %1210 = vmatpush1.bf16.msra.mxu1 %v4483_v45  ;;  %v632_v45 = vrot.slane %v627_v39, %v5160_v40 }
  0x8e   : > { %1211 = vmatprep.subr.bf16.mxu1 %v4485_v49  ;;  %1169 = vmatpush1.bf16.msra.mxu0 %v4490_v51 }
  0x8f   : > { %1170 = vmatprep.subr.bf16.mxu0 %v4493_v52 }
  0x91   : > { %1212 = vmatpush1.bf16.msra.mxu1 %v4489_v50  ;;  %v644_v50 = vrot.slane %v627_v39, %v643_v42 }
  0x92   : > { %1213 = vmatprep.subr.bf16.mxu1 %v4491_v53  ;;  %1171 = vmatpush1.bf16.msra.mxu0 %v4496_v55 }
  0x93   : > { %1172 = vmatprep.subr.bf16.mxu0 %v4499_v56  ;;  %v5169_v56 = vsub.s32 1, %v5153_v37 }
  0x95   : > { %1214 = vmatpush1.bf16.msra.mxu1 %v4495_v54 }
  0x96   : > { %1215 = vmatprep.subr.bf16.mxu1 %v4497_v57  ;;  %1173 = vmatpush1.bf16.msra.mxu0 %v4502_v59 }
  0x97   : > { %1174 = vmatprep.subr.bf16.mxu0 %v4505_v60  ;;  %v636_v60 = vrot.slane %v627_v39, %v5169_v56 }
  0x99   : > { %1216 = vmatpush1.bf16.msra.mxu1 %v4501_v58 }
  0x9a   : > { %1217 = vmatprep.subr.bf16.mxu1 %v4503_v61  ;;  %1175 = vmatpush1.bf16.msra.mxu0 %v4508_v63 }
  0x9b   : > { %1176 = vmatprep.subr.bf16.mxu0 %v4511_v0  ;;  %v647_v0 = vsub.s32 4, %v5153_v37 }
  0x9d   : > { %1218 = vmatpush1.bf16.msra.mxu1 %v4507_v62 }
  0x9e   : > { %1177 = vmatpush1.bf16.msra.mxu0 %v4513_v2  ;;  %4357 = vmatprep.subr.bf16.mxu1 %v4939_v35  ;;  %v648_v2 = vrot.slane %v627_v39, %v647_v0 }
  0x9f   : > { %1228 = vmatprep.subr.bf16.mxu0 %v4516_v3 }
  0xa0   : > { %1220 = vmatmul.mubr.bf16.vlgmr.msra.gmra.mrb[0].mxu1 %v5142_v1 }
  0xa1   : > { %1179 = vmatmul.mubr.bf16.vlgmr.msra.gmra.mrb[0].mxu0 %v5142_v1  ;;  %4359 = vmatprep.mubr.msk.bf16.mxu1 %vm4940_vm0, %v4939_v35 }
  0xa2   : > { %1229 = vmatpush1.bf16.msra.mxu0 %v4514_v4  ;;  %1260 = vmatprep.mubr.bf16.mxu0 %v3943_v47 }
  0xa3   : > { %1230 = vmatprep.subr.bf16.mxu0 %v4519_v5 }
  0xa6   : > { %1231 = vmatpush1.bf16.msra.mxu0 %v4517_v6 }
  0xa7   : > { %1232 = vmatprep.subr.bf16.mxu0 %v4522_v7 }
  0xaa   : > { %1233 = vmatpush1.bf16.msra.mxu0 %v4520_v8 }
  0xab   : > { %1234 = vmatprep.subr.bf16.mxu0 %v4525_v9 }
  0xae   : > { %1235 = vmatpush1.bf16.msra.mxu0 %v4523_v10 }
  0xaf   : > { %1236 = vmatprep.subr.bf16.mxu0 %v4528_v11 }
  0xb2   : > { %1237 = vmatpush1.bf16.msra.mxu0 %v4526_v12 }
  0xb3   : > { %1238 = vmatprep.subr.bf16.mxu0 %v4531_v13 }
  0xb6   : > { %1239 = vmatpush1.bf16.msra.mxu0 %v4529_v14 }
  0xb7   : > { %1240 = vmatprep.subr.bf16.mxu0 %v4534_v15  ;;  %v4040_v15 = vld [vmem:[%s520_s27] ss:$0 sm:$0xff] }
  0xba   : > { %1241 = vmatpush1.bf16.msra.mxu0 %v4532_v16 }
  0xbb   : > { %1242 = vmatprep.subr.bf16.mxu0 %v4537_v17 }
  0xbe   : > { %1243 = vmatpush1.bf16.msra.mxu0 %v4535_v18 }
  0xbf   : > { %1244 = vmatprep.subr.bf16.mxu0 %v4540_v19 }
  0xc2   : > { %1245 = vmatpush1.bf16.msra.mxu0 %v4538_v20 }
  0xc3   : > { %1246 = vmatprep.subr.bf16.mxu0 %v4543_v21 }
  0xc6   : > { %1247 = vmatpush1.bf16.msra.mxu0 %v4541_v22 }
  0xc7   : > { %1248 = vmatprep.subr.bf16.mxu0 %v4546_v23 }
  0xca   : > { %1249 = vmatpush1.bf16.msra.mxu0 %v4544_v24 }
  0xcb   : > { %1250 = vmatprep.subr.bf16.mxu0 %v4549_v25 }
  0xce   : > { %1251 = vmatpush1.bf16.msra.mxu0 %v4547_v26 }
  0xcf   : > { %1252 = vmatprep.subr.bf16.mxu0 %v4552_v27 }
  0xd2   : > { %1253 = vmatpush1.bf16.msra.mxu0 %v4550_v28 }
  0xd3   : > { %1254 = vmatprep.subr.bf16.mxu0 %v4555_v29 }
  0xd6   : > { %1255 = vmatpush1.bf16.msra.mxu0 %v4553_v30 }
  0xd7   : > { %1256 = vmatprep.subr.bf16.mxu0 %v4558_v31 }
  0xda   : > { %1257 = vmatpush1.bf16.msra.mxu0 %v4556_v32 }
  0xdb   : > { %1258 = vmatprep.subr.bf16.mxu0 %v4561_v33 }
  0xde   : > { %1259 = vmatpush1.bf16.msra.mxu0 %v4559_v34 }
  0xdf   : > { %4345 = vmatprep.subr.bf16.mxu0 %v4939_v35 }
  0xe1   : > { %1261 = vmatmul.mubr.bf16.vlgmr.msra.gmra.mrb[4].mxu0 %v5142_v1  ;;  %v651_v1 = vsub.s32 5, %v5153_v37 }
  0xe2   : > { %4347 = vmatprep.mubr.msk.bf16.mxu0 %vm4940_vm0, %v4939_v35 }
  0xe3   : > { %v652_v3 = vrot.slane %v627_v39, %v651_v1 }
 0x173   : > { %v1221_v43 = vpop.f32.mrb[0].mxu1 }
 0x174   : > { %v1222_v46 = vadd.f32 %v1221_v43, %v640_v41  ;;  %v1223_v47 = vpop.f32.mrb[1].mxu1  ;;  %v1180_v52 = vpop.f32.mrb[0].mxu0 }
 0x175   : > { %v1225_v48 = vpop.f32.mrb[2].mxu1  ;;  %v1181_v53 = vadd.f32 %v1180_v52, %v632_v45  ;;  %v1182_v54 = vpop.f32.mrb[1].mxu0  ;;  %v1224_v58 = vadd.f32 %v1223_v47, %v644_v50  ;;  %v4564_v50 = vld [vmem:[%s5421_s4 + $0x4] ss:$8 sps:$4 sm:$0xff]  }
 0x176   : > { %v1271_v49 = vpack.c.bf16 %v1222_v46, %v1222_v46  ;;  %v1226_v51 = vpop.f32.mrb[3].mxu1  ;;  %v1184_v55 = vpop.f32.mrb[2].mxu0  ;;  %v1183_v62 = vadd.f32 %v1182_v54, %v636_v60  ;;  %v4571_v60 = vld [vmem:[%s5421_s4 + $0x30] ss:$8 sps:$4 sm:$0xff]  }
 0x177   : > { %v1185_v57 = vpop.f32.mrb[3].mxu0  ;;  %v1269_v59 = vpack.c.bf16 %v1181_v53, %v1181_v53  ;;  %v1272_v61 = vpack.c.bf16 %v1224_v58, %v1224_v58  ;;  %v4562_v53 = vld [vmem:[%s5421_s4] ss:$8 sps:$4 sm:$0xff]   ;;  %v4567_v55 = vld [vmem:[%s5421_s4 + $0x14] ss:$8 sps:$4 sm:$0xff]  }
 0x178   : > { %4346 = vmatpush3.bf16.xpose.msra.mxu0 %v1271_v49  ;;  %v1270_v63 = vpack.c.bf16 %v1183_v62, %v1183_v62  ;;  %v4565_v57 = vld [vmem:[%s5421_s4 + $0x10] ss:$8 sps:$4 sm:$0xff]   ;;  %v4568_v58 = vld [vmem:[%s5421_s4 + $0x20] ss:$8 sps:$4 sm:$0xff]  }
 0x179   : > { %4351 = vmatprep.subr.bf16.mxu0 %v4939_v35  ;;  %v4574_v62 = vld [vmem:[%s5421_s4 + $0x40] ss:$8 sps:$4 sm:$0xff]  }
 0x17f   : > { %4348 = vmatmul.mubr.bf16.vlgmr.msra.gmra.mrb[8].mxu0 %v1269_v59  ;;  %v4573_v59 = vld [vmem:[%s5421_s4 + $0x34] ss:$8 sps:$4 sm:$0xff]  }
 0x180   : > { %4352 = vmatpush3.bf16.xpose.msra.mxu0 %v1272_v61  ;;  %4353 = vmatprep.mubr.msk.bf16.mxu0 %vm4940_vm0, %v4939_v35  ;;  %v4576_v61 = vld [vmem:[%s5421_s4 + $0x44] ss:$8 sps:$4 sm:$0xff]  }
 0x187   : > { %4354 = vmatmul.mubr.bf16.vlgmr.msra.gmra.mrb[12].mxu0 %v1270_v63  ;;  %v4579_v63 = vld [vmem:[%s5421_s4 + $0x54] ss:$8 sps:$4 sm:$0xff]  }
 0x1b4   : > { %v1262_v4 = vpop.f32.mrb[4].mxu0 }
 0x1b5   : > { %v1263_v5 = vadd.f32 %v1262_v4, %v648_v2  ;;  %v1264_v6 = vpop.f32.mrb[5].mxu0  ;;  %v4577_v2 = vld [vmem:[%s5421_s4 + $0x50] ss:$8 sps:$4 sm:$0xff]   ;;  %v4580_v4 = vld [vmem:[%s5421_s4 + $0x60] ss:$8 sps:$4 sm:$0xff]  }
 0x1b6   : > { %v1265_v7 = vadd.f32 %v1264_v6, %v652_v3  ;;  %v1266_v8 = vpop.f32.mrb[6].mxu0  ;;  %v4582_v3 = vld [vmem:[%s5421_s4 + $0x64] ss:$8 sps:$4 sm:$0xff]   ;;  %v4583_v6 = vld [vmem:[%s5421_s4 + $0x70] ss:$8 sps:$4 sm:$0xff]  }
 0x1b7   : > { %v1273_v9 = vpack.c.bf16 %v1263_v5, %v1263_v5  ;;  %v1267_v10 = vpop.f32.mrb[7].mxu0  ;;  %v4585_v5 = vld [vmem:[%s5421_s4 + $0x74] ss:$8 sps:$4 sm:$0xff]   ;;  %v4586_v8 = vld [vmem:[%s5421_s4 + $0x80] ss:$8 sps:$4 sm:$0xff]  }
 0x1b8   : > { %v1274_v11 = vpack.c.bf16 %v1265_v7, %v1265_v7  ;;  %v4588_v7 = vld [vmem:[%s5421_s4 + $0x84] ss:$8 sps:$4 sm:$0xff]   ;;  %v4589_v10 = vld [vmem:[%s5421_s4 + $0x90] ss:$8 sps:$4 sm:$0xff]  }
 0x1b9   : > { %v1395_v12 = vsel %vm1393_vm1, %v1273_v9, 0  ;;  %v4591_v9 = vld [vmem:[%s5421_s4 + $0x94] ss:$8 sps:$4 sm:$0xff]  }
 0x1ba   : > { %v1441_v13 = vsel %vm1393_vm1, %v1274_v11, 0  ;;  %4358 = vmatpush3.bf16.msra.mxu1 %v1395_v12  ;;  %v4594_v11 = vld [vmem:[%s5421_s4 + $0xa4] ss:$8 sps:$4 sm:$0xff]   ;;  %v4592_v12 = vld [vmem:[%s5421_s4 + $0xa0] ss:$8 sps:$4 sm:$0xff]  }
 0x1bb   : > { %4363 = vmatprep.subr.bf16.mxu1 %v4939_v35 }
 0x252   : > { %v1309_v14 = vpop.f32.mrb[8].mxu0 }
 0x253   : > { %v1355_v16 = vmul.f32 0.088388346, %v1309_v14  ;;  %v4349_v17 = vpop.f32.mrb[9].mxu0  ;;  %v4595_v14 = vld [vmem:[%s5421_s4 + $0xb0] ss:$8 sps:$4 sm:$0xff]  }
 0x254   : > { %v1312_v18 = vpop.f32.mrb[10].mxu0  ;;  %v4603_v17 = vld [vmem:[%s5421_s4 + $0xd4] ss:$8 sps:$4 sm:$0xff]  }
 0x255   : > { %v4350_v19 = vpop.f32.mrb[11].mxu0  ;;  %v1363_v20 = vadd.f32 %v4040_v15, %v1355_v16  ;;  %v4598_v16 = vld [vmem:[%s5421_s4 + $0xc0] ss:$8 sps:$4 sm:$0xff]   ;;  %v4601_v18 = vld [vmem:[%s5421_s4 + $0xd0] ss:$8 sps:$4 sm:$0xff]  }
 0x256   : > { %v4604_v19 = vld [vmem:[%s5421_s4 + $0xe0] ss:$8 sps:$4 sm:$0xff]  }
 0x257   : > { %v1366_v21 = vsel %vm1365_vm2, %v1363_v20, -inf }
 0x258   : > { %1367 = vmax.xlane.f32.xlu0 %v1366_v21  ;;  %v4609_v21 = vld [vmem:[%s5421_s4 + $0xf4] ss:$8 sps:$4 sm:$0xff]  }
 0x25a   : > { %v1349_v22 = vpop.f32.mrb[12].mxu0 }
 0x25b   : > { %v1356_v23 = vmul.f32 0.088388346, %v1349_v22  ;;  %v4355_v24 = vpop.f32.mrb[13].mxu0  ;;  %v4607_v22 = vld [vmem:[%s5421_s4 + $0xf0] ss:$8 sps:$4 sm:$0xff]  }
 0x25c   : > { %v1352_v25 = vpop.f32.mrb[14].mxu0 }
 0x25d   : > { %v4356_v26 = vpop.f32.mrb[15].mxu0  ;;  %v1364_v27 = vadd.f32 %v4040_v15, %v1356_v23  ;;  %v4600_v15 = vld [vmem:[%s5421_s4 + $0xc4] ss:$8 sps:$4 sm:$0xff]  }
 0x25f   : > { %v1369_v28 = vsel %vm1365_vm2, %v1364_v27, -inf }
 0x260   : > { %1370 = vmax.xlane.f32.xlu0 %v1369_v28 }
 0x2e5   : > { %v1368_v29 = vpop.xlane.xlu0 %1367 }
 0x2e6   : > { %v1372_v30 = vsub.f32 %v1363_v20, %v1368_v29  ;;  %v4606_v20 = vld [vmem:[%s5421_s4 + $0xe4] ss:$8 sps:$4 sm:$0xff]  }
 0x2e8   : > { %v1374_v31 = vmul.f32 1.442695, %v1372_v30 }
 0x2ea   : > { %4802 = vpow2.f32 %v1374_v31 }
 0x2ed   : > { %v1371_v32 = vpop.xlane.xlu0 %1370 }
 0x2ee   : > { %v1373_v33 = vsub.f32 %v1364_v27, %v1371_v32 }
 0x2f0   : > { %v1376_v34 = vmul.f32 1.442695, %v1373_v33  ;;  %v1517_v33 = vld [vmem:[%s5422_s5] sm:$0x3] }
 0x2f2   : > { %4804 = vpow2.f32 %v1376_v34  ;;  %v1522_v34 = vrot.slane %v1517_v33, %v5160_v40 }
 0x2f4   : > { %v4803_v36 = vpop.eup %4802 }
 0x2f5   : > { %v1378_v39 = vsel %vm1365_vm2, %v4803_v36, 0.0 }
 0x2f6   : > { %1379 = vadd.xlane.f32.xlu1 %v1378_v39  ;;  %v528_v39 = vunpack.c.l.bf16 %v5136_v44 }
 0x2fc   : > { %v4805_v41 = vpop.eup %4804 }
 0x2fd   : > { %v1381_v43 = vsel %vm1365_vm2, %v4805_v41, 0.0 }
 0x2fe   : > { %1382 = vadd.xlane.f32.xlu1 %v1381_v43  ;;  %v529_v43 = vunpack.c.h.bf16 %v5136_v44  ;;  %v1787_v44 = vld [vmem:[#allocation4 + $0x40] sm:$0xff] }
 0x383   : > { %v1380_v45 = vpop.xlane.xlu1 %1379 }
 0x384   : > { %4806 = vrcp.f32 %v1380_v45 }
 0x38b   : > { %v1383_v46 = vpop.xlane.xlu1 %1382 }
 0x38c   : > { %4808 = vrcp.f32 %v1383_v46 }
 0x38e   : > { %v4807_v47 = vpop.eup %4806 }
 0x38f   : > { %v1386_v48 = vmul.f32 %v4807_v47, %v4803_v36  ;;  %v1526_v36 = vrot.slane %v1517_v33, %v5169_v56 }
 0x391   : > { %v1388_v49 = vpack.c.bf16 %v1386_v48, %v1386_v48 }
 0x393   : > { %4360 = vmatmul.mubr.msk.bf16.vlgmr.msra.gmra.mrb[4].mxu1 %vm1365_vm2, %v1388_v49 }
 0x394   : > { %4364 = vmatpush3.bf16.msra.mxu1 %v1441_v13  ;;  %4365 = vmatprep.mubr.msk.bf16.mxu1 %vm4940_vm0, %v4939_v35  ;;  %v4570_v35 = vld [vmem:[%s5421_s4 + $0x24] ss:$8 sps:$4 sm:$0xff]   ;;  %v4597_v13 = vld [vmem:[%s5421_s4 + $0xb4] ss:$8 sps:$4 sm:$0xff]  }
 0x395   : > { %1689 = vmatprep.subr.bf16.mxu1 %v4564_v50 }
 0x396   : > { %v4809_v51 = vpop.eup %4808 }
 0x397   : > { %v1387_v52 = vmul.f32 %v4809_v51, %v4805_v41 }
 0x399   : > { %v1389_v54 = vpack.c.bf16 %v1387_v52, %v1387_v52 }
 0x39b   : > { %4366 = vmatmul.mubr.msk.bf16.vlgmr.msra.gmra.mrb[8].mxu1 %vm1365_vm2, %v1389_v54  ;;  %v1783_v54 = vld [vmem:[#allocation4 + $0x20] sm:$0xff] }
 0x39c   : > { %1690 = vmatpush1.bf16.msra.mxu1 %v4562_v53  ;;  %v1779_v53 = vld [vmem:[#allocation4] sm:$0xff] }
 0x39d   : > { %1691 = vmatprep.subr.bf16.mxu1 %v4567_v55  ;;  %v1780_v55 = vld [vmem:[#allocation4 + $0x8] sm:$0xff] }
 0x3a0   : > { %1692 = vmatpush1.bf16.msra.mxu1 %v4565_v57  ;;  %v4075_v57 = vcombine.low %v1779_v53, %v1783_v54 }
 0x3a1   : > { %1693 = vmatprep.subr.bf16.mxu1 %v4570_v35  ;;  %v4076_v35 = vcombine.high %v1779_v53, %v1783_v54  ;;  %v1839_v53 = vld [vmem:[#allocation4 + $0x1e0] sm:$0xff]  ;;  %v1836_v54 = vld [vmem:[#allocation4 + $0x1c8] sm:$0xff] }
 0x3a3   : > { %2589 = vmatprep.subr.bf16.mxu0 %v4076_v35 }
 0x3a4   : > { %1694 = vmatpush1.bf16.msra.mxu1 %v4568_v58  ;;  %v1784_v58 = vld [vmem:[#allocation4 + $0x28] sm:$0xff]  ;;  %2590 = vmatpush1.bf16.msra.mxu0 %v4075_v57 }
 0x3a5   : > { %1695 = vmatprep.subr.bf16.mxu1 %v4573_v59  ;;  %v1791_v59 = vld [vmem:[#allocation4 + $0x60] sm:$0xff] }
 0x3a8   : > { %1696 = vmatpush1.bf16.msra.mxu1 %v4571_v60  ;;  %v4077_v60 = vcombine.low %v1780_v55, %v1784_v58 }
 0x3a9   : > { %1697 = vmatprep.subr.bf16.mxu1 %v4576_v61  ;;  %v4078_v61 = vcombine.high %v1780_v55, %v1784_v58  ;;  %v1840_v55 = vld [vmem:[#allocation4 + $0x1e8] sm:$0xff] }
 0x3ac   : > { %1698 = vmatpush1.bf16.msra.mxu1 %v4574_v62  ;;  %v4084_v62 = vcombine.high %v1787_v44, %v1791_v59 }
 0x3ad   : > { %1699 = vmatprep.subr.bf16.mxu1 %v4579_v63  ;;  %v1788_v63 = vld [vmem:[#allocation4 + $0x48] sm:$0xff] }
 0x3ae   : > { %2591 = vmatprep.subr.bf16.mxu0 %v4084_v62  ;;  %v1848_v62 = vld [vmem:[#allocation4 + $0x228] sm:$0xff] }
 0x3b0   : > { %1700 = vmatpush1.bf16.msra.mxu1 %v4577_v2  ;;  %v1792_v2 = vld [vmem:[#allocation4 + $0x68] sm:$0xff] }
 0x3b1   : > { %1701 = vmatprep.subr.bf16.mxu1 %v4582_v3  ;;  %v1795_v3 = vld [vmem:[#allocation4 + $0x80] sm:$0xff] }
 0x3b4   : > { %1702 = vmatpush1.bf16.msra.mxu1 %v4580_v4  ;;  %v4086_v4 = vcombine.high %v1788_v63, %v1792_v2 }
 0x3b5   : > { %1703 = vmatprep.subr.bf16.mxu1 %v4585_v5  ;;  %v1799_v5 = vld [vmem:[#allocation4 + $0xa0] sm:$0xff] }
 0x3b8   : > { %1704 = vmatpush1.bf16.msra.mxu1 %v4583_v6  ;;  %v1796_v6 = vld [vmem:[#allocation4 + $0x88] sm:$0xff] }
 0x3b9   : > { %1705 = vmatprep.subr.bf16.mxu1 %v4588_v7  ;;  %v1800_v7 = vld [vmem:[#allocation4 + $0xa8] sm:$0xff] }
 0x3bc   : > { %1706 = vmatpush1.bf16.msra.mxu1 %v4586_v8  ;;  %v4083_v8 = vcombine.low %v1787_v44, %v1791_v59  ;;  %v4134_v44 = vcombine.high %v1836_v54, %v1840_v55  ;;  %v1843_v59 = vld [vmem:[#allocation4 + $0x200] sm:$0xff] }
 0x3bd   : > { %1707 = vmatprep.subr.bf16.mxu1 %v4591_v9  ;;  %v4085_v9 = vcombine.low %v1788_v63, %v1792_v2  ;;  %v4133_v2 = vcombine.low %v1836_v54, %v1840_v55  ;;  %v1884_v54 = vld [vmem:[#allocation4 + $0x348] sm:$0xff] }
 0x3be   : > { %2592 = vmatpush1.bf16.msra.mxu0 %v4083_v8  ;;  %v1856_v8 = vld [vmem:[#allocation4 + $0x268] sm:$0xff] }
 0x3c0   : > { %1708 = vmatpush1.bf16.msra.mxu1 %v4589_v10  ;;  %v4092_v10 = vcombine.high %v1795_v3, %v1799_v5 }
 0x3c1   : > { %1709 = vmatprep.subr.bf16.mxu1 %v4594_v11  ;;  %v4094_v11 = vcombine.high %v1796_v6, %v1800_v7 }
 0x3c2   : > { %2593 = vmatprep.subr.bf16.mxu0 %v4092_v10 }
 0x3c4   : > { %1710 = vmatpush1.bf16.msra.mxu1 %v4592_v12  ;;  %v1803_v12 = vld [vmem:[#allocation4 + $0xc0] sm:$0xff] }
 0x3c5   : > { %1711 = vmatprep.subr.bf16.mxu1 %v4597_v13  ;;  %v1807_v13 = vld [vmem:[#allocation4 + $0xe0] sm:$0xff] }
 0x3c8   : > { %1712 = vmatpush1.bf16.msra.mxu1 %v4595_v14  ;;  %v1804_v14 = vld [vmem:[#allocation4 + $0xc8] sm:$0xff] }
 0x3c9   : > { %1713 = vmatprep.subr.bf16.mxu1 %v4600_v15  ;;  %v1808_v15 = vld [vmem:[#allocation4 + $0xe8] sm:$0xff] }
 0x3cc   : > { %1714 = vmatpush1.bf16.msra.mxu1 %v4598_v16  ;;  %v4091_v16 = vcombine.low %v1795_v3, %v1799_v5  ;;  %v1851_v5 = vld [vmem:[#allocation4 + $0x240] sm:$0xff] }
 0x3cd   : > { %1715 = vmatprep.subr.bf16.mxu1 %v4603_v17  ;;  %v4093_v17 = vcombine.low %v1796_v6, %v1800_v7  ;;  %v1855_v6 = vld [vmem:[#allocation4 + $0x260] sm:$0xff]  ;;  %v1852_v7 = vld [vmem:[#allocation4 + $0x248] sm:$0xff] }
 0x3ce   : > { %2594 = vmatpush1.bf16.msra.mxu0 %v4091_v16  ;;  %v1864_v16 = vld [vmem:[#allocation4 + $0x2a8] sm:$0xff] }
 0x3d0   : > { %1716 = vmatpush1.bf16.msra.mxu1 %v4601_v18  ;;  %v4100_v18 = vcombine.high %v1803_v12, %v1807_v13 }
 0x3d1   : > { %1717 = vmatprep.subr.bf16.mxu1 %v4606_v20  ;;  %v1811_v20 = vld [vmem:[#allocation4 + $0x100] sm:$0xff] }
 0x3d2   : > { %2595 = vmatprep.subr.bf16.mxu0 %v4100_v18  ;;  %v4149_v18 = vcombine.low %v1852_v7, %v1856_v8 }
 0x3d4   : > { %1718 = vmatpush1.bf16.msra.mxu1 %v4604_v19  ;;  %v4102_v19 = vcombine.high %v1804_v14, %v1808_v15 }
 0x3d5   : > { %1719 = vmatprep.subr.bf16.mxu1 %v4609_v21  ;;  %v1815_v21 = vld [vmem:[#allocation4 + $0x120] sm:$0xff] }
 0x3d8   : > { %1720 = vmatpush1.bf16.msra.mxu1 %v4607_v22  ;;  %v1812_v22 = vld [vmem:[#allocation4 + $0x108] sm:$0xff] }
 0x3d9   : > { %2630 = vmatprep.subr.bf16.mxu1 %v4078_v61  ;;  %v1844_v61 = vld [vmem:[#allocation4 + $0x208] sm:$0xff] }
 0x3da   : > { %v4141_v10 = vcombine.low %v1844_v61, %v1848_v62 }
 0x466   : > { %v1431_v23 = vpop.f32.mrb[4].mxu1 }
 0x467   : > { %v4361_v24 = vpop.f32.mrb[5].mxu1  ;;  %v1483_v30 = vpack.c.bf16 %v1431_v23, %v1431_v23  ;;  %v1816_v23 = vld [vmem:[#allocation4 + $0x128] sm:$0xff] }
 0x468   : > { %v1434_v25 = vpop.f32.mrb[6].mxu1  ;;  %v4099_v24 = vcombine.low %v1803_v12, %v1807_v13  ;;  %v4109_v33 = vcombine.low %v1812_v22, %v1816_v23  ;;  %v4150_v12 = vcombine.high %v1852_v7, %v1856_v8  ;;  %v1859_v13 = vld [vmem:[#allocation4 + $0x280] sm:$0xff]  ;;  %v1900_v7 = vld [vmem:[#allocation4 + $0x3c8] sm:$0xff] }
 0x469   : > { %v4362_v26 = vpop.f32.mrb[7].mxu1  ;;  %v4101_v25 = vcombine.low %v1804_v14, %v1808_v15  ;;  %v1863_v14 = vld [vmem:[#allocation4 + $0x2a0] sm:$0xff]  ;;  %v1860_v15 = vld [vmem:[#allocation4 + $0x288] sm:$0xff] }
 0x46a   : > { %v4108_v26 = vcombine.high %v1811_v20, %v1815_v21  ;;  %2596 = vmatpush1.bf16.msra.mxu0 %v4099_v24 }
 0x46c   : > { %2597 = vmatprep.subr.bf16.mxu0 %v4108_v26 }
 0x46e   : > { %v1477_v27 = vpop.f32.mrb[8].mxu1 }
 0x46f   : > { %v1484_v28 = vpack.c.bf16 %v1477_v27, %v1477_v27  ;;  %v4367_v29 = vpop.f32.mrb[9].mxu1  ;;  %v4110_v27 = vcombine.high %v1812_v22, %v1816_v23  ;;  %v4157_v22 = vcombine.low %v1860_v15, %v1864_v16 }
 0x470   : > { %v1480_v31 = vpop.f32.mrb[10].mxu1  ;;  %v1823_v29 = vld [vmem:[#allocation4 + $0x160] sm:$0xff] }
 0x471   : > { %v4368_v32 = vpop.f32.mrb[11].mxu1  ;;  %1721 = vmatprep.mubr.bf16.mxu1 %v1484_v28  ;;  %v1819_v28 = vld [vmem:[#allocation4 + $0x140] sm:$0xff]  ;;  %v1824_v31 = vld [vmem:[#allocation4 + $0x168] sm:$0xff] }
 0x472   : > { %1722 = vmatmul.mubr.bf16.vlgmr.msra.gmra.mrb[12].mxu1 %v1483_v30  ;;  %v1820_v30 = vld [vmem:[#allocation4 + $0x148] sm:$0xff]  ;;  %v4107_v32 = vcombine.low %v1811_v20, %v1815_v21  ;;  %v4158_v20 = vcombine.high %v1860_v15, %v1864_v16  ;;  %v4155_v21 = vcombine.low %v1859_v13, %v1863_v14  ;;  %v1782_v15 = vld [vmem:[#allocation4 + $0x18] sm:$0xff] }
 0x473   : > { %2631 = vmatpush1.bf16.msra.mxu1 %v4077_v60  ;;  %v1847_v60 = vld [vmem:[#allocation4 + $0x220] sm:$0xff] }
 0x474   : > { %2632 = vmatprep.subr.bf16.mxu1 %v4086_v4  ;;  %2598 = vmatpush1.bf16.msra.mxu0 %v4107_v32  ;;  %v4140_v3 = vcombine.high %v1843_v59, %v1847_v60  ;;  %v4142_v4 = vcombine.high %v1844_v61, %v1848_v62  ;;  %v1868_v32 = vld [vmem:[#allocation4 + $0x2c8] sm:$0xff] }
 0x475   : > { %v1892_v61 = vld [vmem:[#allocation4 + $0x388] sm:$0xff] }
 0x477   : > { %2633 = vmatpush1.bf16.msra.mxu1 %v4085_v9  ;;  %v4139_v9 = vcombine.low %v1843_v59, %v1847_v60  ;;  %v1891_v59 = vld [vmem:[#allocation4 + $0x380] sm:$0xff] }
 0x478   : > { %2634 = vmatprep.subr.bf16.mxu1 %v4094_v11  ;;  %v4148_v11 = vcombine.high %v1851_v5, %v1855_v6  ;;  %v1895_v60 = vld [vmem:[#allocation4 + $0x3a0] sm:$0xff] }
 0x479   : > { %v4188_v62 = vcombine.high %v1891_v59, %v1895_v60 }
 0x47b   : > { %2635 = vmatpush1.bf16.msra.mxu1 %v4093_v17  ;;  %v4147_v17 = vcombine.low %v1851_v5, %v1855_v6  ;;  %v1899_v5 = vld [vmem:[#allocation4 + $0x3c0] sm:$0xff] }
 0x47c   : > { %2636 = vmatprep.subr.bf16.mxu1 %v4102_v19  ;;  %v4156_v19 = vcombine.high %v1859_v13, %v1863_v14  ;;  %v1903_v6 = vld [vmem:[#allocation4 + $0x3e0] sm:$0xff]  ;;  %v1781_v13 = vld [vmem:[#allocation4 + $0x10] sm:$0xff] }
 0x47d   : > { %v4196_v8 = vcombine.high %v1899_v5, %v1903_v6  ;;  %v1785_v14 = vld [vmem:[#allocation4 + $0x30] sm:$0xff] }
 0x47e   : > { %v4080_v16 = vcombine.high %v1781_v13, %v1785_v14 }
 0x47f   : > { %2637 = vmatpush1.bf16.msra.mxu1 %v4101_v25 }
 0x480   : > { %2638 = vmatprep.subr.bf16.mxu1 %v4110_v27 }
 0x483   : > { %2639 = vmatpush1.bf16.msra.mxu1 %v4109_v33 }
 0x545   : > { %v1723_v41 = vpop.f32.mrb[12].mxu1 }
 0x546   : > { %v1724_v45 = vadd.f32 %v1723_v41, %v1522_v34  ;;  %v1725_v46 = vpop.f32.mrb[13].mxu1  ;;  %v4116_v34 = vcombine.high %v1819_v28, %v1823_v29  ;;  %v1831_v41 = vld [vmem:[#allocation4 + $0x1a0] sm:$0xff] }
 0x547   : > { %v1726_v47 = vadd.f32 %v1725_v46, %v1526_v36  ;;  %v1727_v48 = vpop.f32.mrb[14].mxu1  ;;  %v4118_v36 = vcombine.high %v1820_v30, %v1824_v31  ;;  %v4115_v46 = vcombine.low %v1819_v28, %v1823_v29 }
 0x548   : > { %v5297_v49 = vadd.f32 %v1724_v45, %v528_v39  ;;  %v1728_v50 = vpop.f32.mrb[15].mxu1  ;;  %v1827_v39 = vld [vmem:[#allocation4 + $0x180] sm:$0xff]  ;;  %v1832_v45 = vld [vmem:[#allocation4 + $0x1a8] sm:$0xff]  ;;  %2599 = vmatprep.subr.bf16.mxu0 %v4116_v34 }
 0x549   : > { %v5299_v51 = vadd.f32 %v1726_v47, %v529_v43  ;;  %v1828_v43 = vld [vmem:[#allocation4 + $0x188] sm:$0xff]  ;;  %v4117_v47 = vcombine.low %v1820_v30, %v1824_v31  ;;  %v4124_v48 = vcombine.high %v1827_v39, %v1831_v41  ;;  %2640 = vmatprep.subr.bf16.mxu1 %v4118_v36  ;;  %2600 = vmatpush1.bf16.msra.mxu0 %v4115_v46  ;;  %v1867_v30 = vld [vmem:[#allocation4 + $0x2c0] sm:$0xff] }
 0x54a   : > { %v4126_v50 = vcombine.high %v1828_v43, %v1832_v45  ;;  %v4123_v57 = vcombine.low %v1827_v39, %v1831_v41  ;;  %v4125_v35 = vcombine.low %v1828_v43, %v1832_v45  ;;  %v1871_v31 = vld [vmem:[#allocation4 + $0x2e0] sm:$0xff]  ;;  %v1872_v34 = vld [vmem:[#allocation4 + $0x2e8] sm:$0xff] }
 0x54b   : > { %v1734_v52 = vadd.f32 %v5299_v51, %v5297_v49  ;;  %2641 = vmatpush1.bf16.msra.mxu1 %v4117_v47  ;;  %2601 = vmatprep.subr.bf16.mxu0 %v4124_v48  ;;  %v4164_v33 = vcombine.high %v1867_v30, %v1871_v31  ;;  %v4163_v36 = vcombine.low %v1867_v30, %v1871_v31  ;;  %v1879_v41 = vld [vmem:[#allocation4 + $0x320] sm:$0xff]  ;;  %v1876_v43 = vld [vmem:[#allocation4 + $0x308] sm:$0xff] }
 0x54c   : > { %2642 = vmatprep.subr.bf16.mxu1 %v4126_v50  ;;  %v4165_v39 = vcombine.low %v1868_v32, %v1872_v34  ;;  %v1880_v46 = vld [vmem:[#allocation4 + $0x328] sm:$0xff] }
 0x54d   : > { %1735 = vadd.xlane.f32.xlu0 %v1734_v52  ;;  %v1835_v52 = vld [vmem:[#allocation4 + $0x1c0] sm:$0xff]  ;;  %2602 = vmatpush1.bf16.msra.mxu0 %v4123_v57  ;;  %v4173_v48 = vcombine.low %v1876_v43, %v1880_v46  ;;  %v4174_v50 = vcombine.high %v1876_v43, %v1880_v46  ;;  %v1888_v57 = vld [vmem:[#allocation4 + $0x368] sm:$0xff]  ;;  %v1793_v43 = vld [vmem:[#allocation4 + $0x70] sm:$0xff] }
 0x54e   : > { %v4132_v58 = vcombine.high %v1835_v52, %v1839_v53  ;;  %v4131_v63 = vcombine.low %v1835_v52, %v1839_v53  ;;  %v1883_v52 = vld [vmem:[#allocation4 + $0x340] sm:$0xff]  ;;  %v1794_v46 = vld [vmem:[#allocation4 + $0x78] sm:$0xff] }
 0x54f   : > { %2643 = vmatpush1.bf16.msra.mxu1 %v4125_v35  ;;  %v1887_v53 = vld [vmem:[#allocation4 + $0x360] sm:$0xff] }
 0x550   : > { %2603 = vmatprep.subr.bf16.mxu0 %v4132_v58  ;;  %2644 = vmatprep.subr.bf16.mxu1 %v4134_v44  ;;  %v4180_v55 = vcombine.high %v1883_v52, %v1887_v53  ;;  %v4179_v35 = vcombine.low %v1883_v52, %v1887_v53  ;;  %v4181_v58 = vcombine.low %v1884_v54, %v1888_v57  ;;  %v1801_v52 = vld [vmem:[#allocation4 + $0xb0] sm:$0xff]  ;;  %v1798_v53 = vld [vmem:[#allocation4 + $0x98] sm:$0xff] }
 0x551   : > { %2604 = vmatpush1.bf16.msra.mxu0 %v4131_v63  ;;  %v4182_v44 = vcombine.high %v1884_v54, %v1888_v57  ;;  %v1896_v63 = vld [vmem:[#allocation4 + $0x3a8] sm:$0xff]  ;;  %v1802_v54 = vld [vmem:[#allocation4 + $0xb8] sm:$0xff] }
 0x552   : > { %2605 = vmatprep.subr.bf16.mxu0 %v4140_v3  ;;  %v4189_v3 = vcombine.low %v1892_v61, %v1896_v63 }
 0x553   : > { %2645 = vmatpush1.bf16.msra.mxu1 %v4133_v2  ;;  %v4187_v2 = vcombine.low %v1891_v59, %v1895_v60  ;;  %v1809_v59 = vld [vmem:[#allocation4 + $0xf0] sm:$0xff]  ;;  %v1806_v60 = vld [vmem:[#allocation4 + $0xd8] sm:$0xff] }
 0x554   : > { %2646 = vmatprep.subr.bf16.mxu1 %v4142_v4  ;;  %v4190_v4 = vcombine.high %v1892_v61, %v1896_v63  ;;  %v1810_v61 = vld [vmem:[#allocation4 + $0xf8] sm:$0xff]  ;;  %v4097_v63 = vcombine.low %v1798_v53, %v1802_v54 }
 0x555   : > { %2606 = vmatpush1.bf16.msra.mxu0 %v4139_v9  ;;  %v1904_v9 = vld [vmem:[#allocation4 + $0x3e8] sm:$0xff] }
 0x556   : > { %2607 = vmatprep.subr.bf16.mxu0 %v4148_v11  ;;  %v4198_v11 = vcombine.high %v1900_v7, %v1904_v9 }
 0x557   : > { %2647 = vmatpush1.bf16.msra.mxu1 %v4141_v10  ;;  %v4195_v10 = vcombine.low %v1899_v5, %v1903_v6  ;;  %v1817_v5 = vld [vmem:[#allocation4 + $0x130] sm:$0xff]  ;;  %v1814_v6 = vld [vmem:[#allocation4 + $0x118] sm:$0xff] }
 0x558   : > { %2648 = vmatprep.subr.bf16.mxu1 %v4150_v12  ;;  %v4197_v12 = vcombine.low %v1900_v7, %v1904_v9  ;;  %v1818_v7 = vld [vmem:[#allocation4 + $0x138] sm:$0xff]  ;;  %v4105_v9 = vcombine.low %v1806_v60, %v1810_v61 }
 0x559   : > { %2608 = vmatpush1.bf16.msra.mxu0 %v4147_v17  ;;  %v1786_v17 = vld [vmem:[#allocation4 + $0x38] sm:$0xff] }
 0x55a   : > { %2609 = vmatprep.subr.bf16.mxu0 %v4156_v19  ;;  %v4081_v19 = vcombine.low %v1782_v15, %v1786_v17 }
 0x55b   : > { %2649 = vmatpush1.bf16.msra.mxu1 %v4149_v18  ;;  %v4079_v18 = vcombine.low %v1781_v13, %v1785_v14  ;;  %v1825_v13 = vld [vmem:[#allocation4 + $0x170] sm:$0xff]  ;;  %v1822_v14 = vld [vmem:[#allocation4 + $0x158] sm:$0xff] }
 0x55c   : > { %2650 = vmatprep.subr.bf16.mxu1 %v4158_v20  ;;  %v4082_v20 = vcombine.high %v1782_v15, %v1786_v17  ;;  %v1826_v15 = vld [vmem:[#allocation4 + $0x178] sm:$0xff]  ;;  %v4113_v17 = vcombine.low %v1814_v6, %v1818_v7 }
 0x55d   : > { %2610 = vmatpush1.bf16.msra.mxu0 %v4155_v21 }
 0x55e   : > { %2611 = vmatprep.subr.bf16.mxu0 %v4164_v33 }
 0x55f   : > { %2651 = vmatpush1.bf16.msra.mxu1 %v4157_v22 }
 0x561   : > { %2612 = vmatpush1.bf16.msra.mxu0 %v4163_v36 }
 0x5da   : > { %v1736_v23 = vpop.xlane.xlu0 %1735 }
 0x5db   : > { %v1738_v24 = vmul.f32 0.00390625, %v1736_v23 }
 0x5dd   : > { %v5304_v25 = vsub.f32 %v5297_v49, %v1738_v24  ;;  %v5307_v26 = vsub.f32 %v5299_v51, %v1738_v24  ;;  %v4166_v49 = vcombine.high %v1868_v32, %v1872_v34  ;;  %v1875_v51 = vld [vmem:[#allocation4 + $0x300] sm:$0xff] }
 0x5de   : > { %v4172_v45 = vcombine.high %v1875_v51, %v1879_v41  ;;  %v4171_v47 = vcombine.low %v1875_v51, %v1879_v41  ;;  %v1732_v24 = vld [vmem:[%s5423_s6] sm:$0x3]  ;;  %v1789_v41 = vld [vmem:[#allocation4 + $0x50] sm:$0xff] }
 0x5df   : > { %v1741_v27 = vmul.f32 %v5304_v25, %v5304_v25  ;;  %v1742_v28 = vmul.f32 %v5307_v26, %v5307_v26  ;;  %2652 = vmatprep.subr.bf16.mxu1 %v4166_v49 }
 0x5e0   : > { %2653 = vmatpush1.bf16.msra.mxu1 %v4165_v39  ;;  %2613 = vmatprep.subr.bf16.mxu0 %v4172_v45  ;;  %v1790_v45 = vld [vmem:[#allocation4 + $0x58] sm:$0xff] }
 0x5e1   : > { %v1743_v29 = vadd.f32 %v1742_v28, %v1741_v27  ;;  %2654 = vmatprep.subr.bf16.mxu1 %v4174_v50  ;;  %2614 = vmatpush1.bf16.msra.mxu0 %v4171_v47  ;;  %v1733_v27 = vld [vmem:[%s5424_s7] sm:$0x3]  ;;  %v1759_v28 = vrot.slane %v1732_v24, %v5169_v56  ;;  %v4090_v50 = vcombine.high %v1790_v45, %v1794_v46 }
 0x5e2   : > { %2615 = vmatprep.subr.bf16.mxu0 %v4180_v55  ;;  %v1772_v33 = vrot.slane %v1733_v27, %v5169_v56  ;;  %v1768_v34 = vrot.slane %v1733_v27, %v5160_v40  ;;  %v4087_v55 = vcombine.low %v1789_v41, %v1793_v43  ;;  %v4089_v57 = vcombine.low %v1790_v45, %v1794_v46  ;;  %v1849_v45 = vld [vmem:[#allocation4 + $0x230] sm:$0xff]  ;;  %v1846_v46 = vld [vmem:[#allocation4 + $0x218] sm:$0xff] }
 0x5e3   : > { %1744 = vadd.xlane.f32.xlu1 %v1743_v29  ;;  %v1755_v29 = vrot.slane %v1732_v24, %v5160_v40  ;;  %v4121_v27 = vcombine.low %v1822_v14, %v1826_v15 }
 0x5e4   : > { %2655 = vmatpush1.bf16.msra.mxu1 %v4173_v48  ;;  %v4088_v48 = vcombine.high %v1789_v41, %v1793_v43  ;;  %v1845_v43 = vld [vmem:[#allocation4 + $0x210] sm:$0xff] }
 0x5e5   : > { %2656 = vmatprep.subr.bf16.mxu1 %v4182_v44  ;;  %2616 = vmatpush1.bf16.msra.mxu0 %v4179_v35  ;;  %v1805_v44 = vld [vmem:[#allocation4 + $0xd0] sm:$0xff] }
 0x5e6   : > { %2617 = vmatprep.subr.bf16.mxu0 %v4188_v62 }
 0x5e8   : > { %2657 = vmatpush1.bf16.msra.mxu1 %v4181_v58  ;;  %v4098_v58 = vcombine.high %v1798_v53, %v1802_v54  ;;  %v1853_v53 = vld [vmem:[#allocation4 + $0x250] sm:$0xff] }
 0x5e9   : > { %2658 = vmatprep.subr.bf16.mxu1 %v4190_v4  ;;  %2618 = vmatpush1.bf16.msra.mxu0 %v4187_v2  ;;  %v4104_v2 = vcombine.high %v1805_v44, %v1809_v59  ;;  %v1813_v4 = vld [vmem:[#allocation4 + $0x110] sm:$0xff] }
 0x5ea   : > { %2619 = vmatprep.subr.bf16.mxu0 %v4196_v8  ;;  %v4103_v8 = vcombine.low %v1805_v44, %v1809_v59  ;;  %v1857_v54 = vld [vmem:[#allocation4 + $0x270] sm:$0xff] }
 0x5eb   : > { %v4152_v44 = vcombine.high %v1853_v53, %v1857_v54 }
 0x5ec   : > { %2659 = vmatpush1.bf16.msra.mxu1 %v4189_v3  ;;  %v4106_v3 = vcombine.high %v1806_v60, %v1810_v61  ;;  %v1861_v60 = vld [vmem:[#allocation4 + $0x290] sm:$0xff] }
 0x5ed   : > { %2660 = vmatprep.subr.bf16.mxu1 %v4198_v11  ;;  %2620 = vmatpush1.bf16.msra.mxu0 %v4195_v10  ;;  %v4112_v10 = vcombine.high %v1813_v4, %v1817_v5  ;;  %v4114_v11 = vcombine.high %v1814_v6, %v1818_v7  ;;  %v1865_v61 = vld [vmem:[#allocation4 + $0x2b0] sm:$0xff] }
 0x5ee   : > { %2671 = vmatprep.subr.bf16.mxu0 %v4080_v16  ;;  %v4111_v16 = vcombine.low %v1813_v4, %v1817_v5  ;;  %v4160_v4 = vcombine.high %v1861_v60, %v1865_v61  ;;  %v1869_v6 = vld [vmem:[#allocation4 + $0x2d0] sm:$0xff] }
 0x5ef   : > { %v1873_v7 = vld [vmem:[#allocation4 + $0x2f0] sm:$0xff] }
 0x5f0   : > { %2661 = vmatpush1.bf16.msra.mxu1 %v4197_v12  ;;  %v1821_v12 = vld [vmem:[#allocation4 + $0x150] sm:$0xff] }
 0x5f1   : > { %2712 = vmatprep.subr.bf16.mxu1 %v4082_v20  ;;  %v1829_v20 = vld [vmem:[#allocation4 + $0x190] sm:$0xff]  ;;  %v4119_v24 = vcombine.low %v1821_v12, %v1825_v13 }
 0x670   : > { %v1745_v21 = vpop.xlane.xlu1 %1744 }
 0x671   : > { %v1746_v22 = vmul.f32 0.00390625, %v1745_v21  ;;  %v1833_v21 = vld [vmem:[#allocation4 + $0x1b0] sm:$0xff] }
 0x673   : > { %v1747_v23 = vadd.f32 1e-05, %v1746_v22  ;;  %v1830_v22 = vld [vmem:[#allocation4 + $0x198] sm:$0xff] }
 0x675   : > { %4810 = vrsqrt.f32 %v1747_v23  ;;  %v1834_v23 = vld [vmem:[#allocation4 + $0x1b8] sm:$0xff] }
 0x67f   : > { %v4811_v30 = vpop.eup %4810 }
 0x680   : > { %v1749_v31 = vmul.f32 %v4811_v30, %v5304_v25  ;;  %v1750_v32 = vmul.f32 %v4811_v30, %v5307_v26  ;;  %v1797_v26 = vld [vmem:[#allocation4 + $0x90] sm:$0xff] }
 0x681   : > { %v4096_v35 = vcombine.high %v1797_v26, %v1801_v52  ;;  %v4095_v62 = vcombine.low %v1797_v26, %v1801_v52  ;;  %v1837_v30 = vld [vmem:[#allocation4 + $0x1d0] sm:$0xff] }
 0x682   : > { %v1763_v36 = vmul.f32 %v1759_v28, %v1750_v32  ;;  %v1762_v39 = vmul.f32 %v1755_v29, %v1749_v31  ;;  %v4128_v28 = vcombine.high %v1829_v20, %v1833_v21  ;;  %v4130_v29 = vcombine.high %v1830_v22, %v1834_v23  ;;  %v1841_v31 = vld [vmem:[#allocation4 + $0x1f0] sm:$0xff]  ;;  %v1838_v32 = vld [vmem:[#allocation4 + $0x1d8] sm:$0xff] }
 0x683   : > { %v4135_v26 = vcombine.low %v1837_v30, %v1841_v31 }
 0x684   : > { %v5325_v49 = vadd.f32 %v1772_v33, %v1763_v36  ;;  %v5327_v51 = vadd.f32 %v1768_v34, %v1762_v39  ;;  %v1842_v33 = vld [vmem:[#allocation4 + $0x1f8] sm:$0xff]  ;;  %v4127_v34 = vcombine.low %v1829_v20, %v1833_v21  ;;  %v4129_v36 = vcombine.low %v1830_v22, %v1834_v23  ;;  %v1885_v22 = vld [vmem:[#allocation4 + $0x350] sm:$0xff] }
 0x685   : > { %v4136_v39 = vcombine.high %v1837_v30, %v1841_v31  ;;  %v4138_v41 = vcombine.high %v1838_v32, %v1842_v33  ;;  %v1889_v23 = vld [vmem:[#allocation4 + $0x370] sm:$0xff] }
 0x686   : > { %v1778_v47 = vpack.c.bf16 %v5325_v49, %v5325_v49  ;;  %v5333_v25 = vpack.c.bf16 %v5327_v51, %v5327_v51  ;;  %v4184_v30 = vcombine.high %v1885_v22, %v1889_v23 }
 0x688   : > { %2621 = vmatprep.mubr.bf16.mxu0 %v1778_v47  ;;  %2662 = vmatprep.mubr.bf16.mxu1 %v1778_v47 }
 0x689   : > { %2622 = vmatmul.mubr.bf16.vlgmr.msra.gmra.mrb[16].mxu0 %v5333_v25  ;;  %2663 = vmatmul.mubr.bf16.vlgmr.msra.gmra.mrb[16].mxu1 %v5333_v25 }
 0x68a   : > { %2672 = vmatpush1.bf16.msra.mxu0 %v4079_v18  ;;  %2713 = vmatpush1.bf16.msra.mxu1 %v4081_v19  ;;  %v4120_v18 = vcombine.high %v1821_v12, %v1825_v13  ;;  %v4122_v19 = vcombine.high %v1822_v14, %v1826_v15  ;;  %v4168_v12 = vcombine.high %v1869_v6, %v1873_v7  ;;  %v1877_v14 = vld [vmem:[#allocation4 + $0x310] sm:$0xff] }
 0x68b   : > { %2703 = vmatprep.mubr.bf16.mxu0 %v1778_v47  ;;  %2744 = vmatprep.mubr.bf16.mxu1 %v1778_v47  ;;  %v1850_v47 = vld [vmem:[#allocation4 + $0x238] sm:$0xff]  ;;  %v1881_v15 = vld [vmem:[#allocation4 + $0x330] sm:$0xff] }
 0x68c   : > { %2673 = vmatprep.subr.bf16.mxu0 %v4088_v48  ;;  %2714 = vmatprep.subr.bf16.mxu1 %v4090_v50  ;;  %v4137_v48 = vcombine.low %v1838_v32, %v1842_v33  ;;  %v4144_v50 = vcombine.high %v1845_v43, %v1849_v45  ;;  %v4146_v52 = vcombine.high %v1846_v46, %v1850_v47  ;;  %v1893_v32 = vld [vmem:[#allocation4 + $0x390] sm:$0xff] }
 0x68d   : > { %v4176_v20 = vcombine.high %v1877_v14, %v1881_v15  ;;  %v1897_v33 = vld [vmem:[#allocation4 + $0x3b0] sm:$0xff] }
 0x68e   : > { %2674 = vmatpush1.bf16.msra.mxu0 %v4087_v55  ;;  %2715 = vmatpush1.bf16.msra.mxu1 %v4089_v57  ;;  %v1854_v55 = vld [vmem:[#allocation4 + $0x258] sm:$0xff] }
 0x68f   : > { %2675 = vmatprep.subr.bf16.mxu0 %v4096_v35  ;;  %2716 = vmatprep.subr.bf16.mxu1 %v4098_v58  ;;  %v1858_v57 = vld [vmem:[#allocation4 + $0x278] sm:$0xff]  ;;  %v4143_v35 = vcombine.low %v1845_v43, %v1849_v45  ;;  %v4145_v58 = vcombine.low %v1846_v46, %v1850_v47  ;;  %v4192_v43 = vcombine.high %v1893_v32, %v1897_v33  ;;  %v1901_v46 = vld [vmem:[#allocation4 + $0x3d0] sm:$0xff] }
 0x690   : > { %v4154_v59 = vcombine.high %v1854_v55, %v1858_v57  ;;  %v1905_v47 = vld [vmem:[#allocation4 + $0x3f0] sm:$0xff] }
 0x692   : > { %2676 = vmatpush1.bf16.msra.mxu0 %v4095_v62  ;;  %2717 = vmatpush1.bf16.msra.mxu1 %v4097_v63  ;;  %v1862_v62 = vld [vmem:[#allocation4 + $0x298] sm:$0xff] }
 0x693   : > { %2677 = vmatprep.subr.bf16.mxu0 %v4104_v2  ;;  %2718 = vmatprep.subr.bf16.mxu1 %v4106_v3  ;;  %v1866_v63 = vld [vmem:[#allocation4 + $0x2b8] sm:$0xff]  ;;  %v4151_v2 = vcombine.low %v1853_v53, %v1857_v54  ;;  %v4153_v3 = vcombine.low %v1854_v55, %v1858_v57  ;;  %v4200_v53 = vcombine.high %v1901_v46, %v1905_v47 }
 0x694   : > { %v4162_v5 = vcombine.high %v1862_v62, %v1866_v63  ;;  %v4199_v55 = vcombine.low %v1901_v46, %v1905_v47  ;;  %v4681_v46 = vld [vmem:[#allocation6 + $0x1b4] ss:$8 sps:$4 sm:$0xff]   ;;  %v4676_v47 = vld [vmem:[#allocation6 + $0xb0] ss:$8 sps:$4 sm:$0xff]  }
 0x696   : > { %2678 = vmatpush1.bf16.msra.mxu0 %v4103_v8  ;;  %2719 = vmatpush1.bf16.msra.mxu1 %v4105_v9  ;;  %v1870_v8 = vld [vmem:[#allocation4 + $0x2d8] sm:$0xff] }
 0x697   : > { %2679 = vmatprep.subr.bf16.mxu0 %v4112_v10  ;;  %2720 = vmatprep.subr.bf16.mxu1 %v4114_v11  ;;  %v1874_v9 = vld [vmem:[#allocation4 + $0x2f8] sm:$0xff]  ;;  %v4159_v10 = vcombine.low %v1861_v60, %v1865_v61  ;;  %v4161_v11 = vcombine.low %v1862_v62, %v1866_v63 }
 0x698   : > { %v4170_v13 = vcombine.high %v1870_v8, %v1874_v9  ;;  %v4618_v60 = vld [vmem:[#allocation6 + $0x14] ss:$8 sps:$4 sm:$0xff]   ;;  %v4616_v62 = vld [vmem:[#allocation6 + $0x10] ss:$8 sps:$4 sm:$0xff]  }
 0x699   : > { %v4621_v61 = vld [vmem:[#allocation6 + $0x114] ss:$8 sps:$4 sm:$0xff]   ;;  %v4619_v63 = vld [vmem:[#allocation6 + $0x110] ss:$8 sps:$4 sm:$0xff]  }
 0x69a   : > { %2680 = vmatpush1.bf16.msra.mxu0 %v4111_v16  ;;  %2721 = vmatpush1.bf16.msra.mxu1 %v4113_v17  ;;  %v1878_v16 = vld [vmem:[#allocation4 + $0x318] sm:$0xff] }
 0x69b   : > { %2681 = vmatprep.subr.bf16.mxu0 %v4120_v18  ;;  %2722 = vmatprep.subr.bf16.mxu1 %v4122_v19  ;;  %v1882_v17 = vld [vmem:[#allocation4 + $0x338] sm:$0xff]  ;;  %v4167_v18 = vcombine.low %v1869_v6, %v1873_v7  ;;  %v4169_v19 = vcombine.low %v1870_v8, %v1874_v9  ;;  %v4636_v9 = vld [vmem:[#allocation6 + $0x44] ss:$8 sps:$4 sm:$0xff]  }
 0x69c   : > { %v4178_v21 = vcombine.high %v1878_v16, %v1882_v17  ;;  %v4630_v6 = vld [vmem:[#allocation6 + $0x34] ss:$8 sps:$4 sm:$0xff]   ;;  %v4628_v8 = vld [vmem:[#allocation6 + $0x30] ss:$8 sps:$4 sm:$0xff]  }
 0x69d   : > { %v4633_v7 = vld [vmem:[#allocation6 + $0x134] ss:$8 sps:$4 sm:$0xff]  }
 0x69e   : > { %2682 = vmatpush1.bf16.msra.mxu0 %v4119_v24  ;;  %2723 = vmatpush1.bf16.msra.mxu1 %v4121_v27  ;;  %v1886_v24 = vld [vmem:[#allocation4 + $0x358] sm:$0xff] }
 0x69f   : > { %2683 = vmatprep.subr.bf16.mxu0 %v4128_v28  ;;  %2724 = vmatprep.subr.bf16.mxu1 %v4130_v29  ;;  %v1890_v27 = vld [vmem:[#allocation4 + $0x378] sm:$0xff]  ;;  %v4175_v28 = vcombine.low %v1877_v14, %v1881_v15  ;;  %v4177_v29 = vcombine.low %v1878_v16, %v1882_v17  ;;  %v4648_v17 = vld [vmem:[#allocation6 + $0x64] ss:$8 sps:$4 sm:$0xff]  }
 0x6a0   : > { %v4186_v31 = vcombine.high %v1886_v24, %v1890_v27  ;;  %v4645_v14 = vld [vmem:[#allocation6 + $0x154] ss:$8 sps:$4 sm:$0xff]   ;;  %v4640_v15 = vld [vmem:[#allocation6 + $0x50] ss:$8 sps:$4 sm:$0xff]  }
 0x6a1   : > { %v4643_v16 = vld [vmem:[#allocation6 + $0x150] ss:$8 sps:$4 sm:$0xff]  }
 0x6a2   : > { %2684 = vmatpush1.bf16.msra.mxu0 %v4127_v34  ;;  %2725 = vmatpush1.bf16.msra.mxu1 %v4129_v36  ;;  %v1894_v34 = vld [vmem:[#allocation4 + $0x398] sm:$0xff] }
 0x6a3   : > { %2685 = vmatprep.subr.bf16.mxu0 %v4136_v39  ;;  %2726 = vmatprep.subr.bf16.mxu1 %v4138_v41  ;;  %v1898_v36 = vld [vmem:[#allocation4 + $0x3b8] sm:$0xff]  ;;  %v4183_v39 = vcombine.low %v1885_v22, %v1889_v23  ;;  %v4185_v41 = vcombine.low %v1886_v24, %v1890_v27  ;;  %v4660_v27 = vld [vmem:[#allocation6 + $0x84] ss:$8 sps:$4 sm:$0xff]  }
 0x6a4   : > { %v4194_v45 = vcombine.high %v1894_v34, %v1898_v36  ;;  %v4657_v22 = vld [vmem:[#allocation6 + $0x174] ss:$8 sps:$4 sm:$0xff]   ;;  %v4652_v23 = vld [vmem:[#allocation6 + $0x70] ss:$8 sps:$4 sm:$0xff]  }
 0x6a5   : > { %v4655_v24 = vld [vmem:[#allocation6 + $0x170] ss:$8 sps:$4 sm:$0xff]  }
 0x6a6   : > { %2686 = vmatpush1.bf16.msra.mxu0 %v4135_v26  ;;  %2727 = vmatpush1.bf16.msra.mxu1 %v4137_v48  ;;  %v1902_v26 = vld [vmem:[#allocation4 + $0x3d8] sm:$0xff] }
 0x6a7   : > { %2687 = vmatprep.subr.bf16.mxu0 %v4144_v50  ;;  %2728 = vmatprep.subr.bf16.mxu1 %v4146_v52  ;;  %v1906_v48 = vld [vmem:[#allocation4 + $0x3f8] sm:$0xff]  ;;  %v4191_v50 = vcombine.low %v1893_v32, %v1897_v33  ;;  %v4193_v52 = vcombine.low %v1894_v34, %v1898_v36  ;;  %v4672_v36 = vld [vmem:[#allocation6 + $0xa4] ss:$8 sps:$4 sm:$0xff]  }
 0x6a8   : > { %v4202_v54 = vcombine.high %v1902_v26, %v1906_v48  ;;  %v4201_v57 = vcombine.low %v1902_v26, %v1906_v48  ;;  %v4669_v32 = vld [vmem:[#allocation6 + $0x194] ss:$8 sps:$4 sm:$0xff]   ;;  %v4664_v33 = vld [vmem:[#allocation6 + $0x90] ss:$8 sps:$4 sm:$0xff]   ;;  %v4684_v48 = vld [vmem:[#allocation6 + $0xc4] ss:$8 sps:$4 sm:$0xff]  }
 0x6a9   : > { %v4667_v34 = vld [vmem:[#allocation6 + $0x190] ss:$8 sps:$4 sm:$0xff]  }
 0x6aa   : > { %2688 = vmatpush1.bf16.msra.mxu0 %v4143_v35  ;;  %2729 = vmatpush1.bf16.msra.mxu1 %v4145_v58  ;;  %v4612_v35 = vld [vmem:[#allocation6 + $0x4] ss:$8 sps:$4 sm:$0xff]   ;;  %v4679_v26 = vld [vmem:[#allocation6 + $0x1b0] ss:$8 sps:$4 sm:$0xff]  }
 0x6ab   : > { %2689 = vmatprep.subr.bf16.mxu0 %v4152_v44  ;;  %2730 = vmatprep.subr.bf16.mxu1 %v4154_v59  ;;  %v4615_v58 = vld [vmem:[#allocation6 + $0x104] ss:$8 sps:$4 sm:$0xff]   ;;  %v4610_v44 = vld [vmem:[#allocation6] ss:$8 sps:$4 sm:$0xff]  }
 0x6ac   : > { %v4613_v59 = vld [vmem:[#allocation6 + $0x100] ss:$8 sps:$4 sm:$0xff]  }
 0x6ae   : > { %2690 = vmatpush1.bf16.msra.mxu0 %v4151_v2  ;;  %2731 = vmatpush1.bf16.msra.mxu1 %v4153_v3  ;;  %v4624_v2 = vld [vmem:[#allocation6 + $0x24] ss:$8 sps:$4 sm:$0xff]  }
 0x6af   : > { %2691 = vmatprep.subr.bf16.mxu0 %v4160_v4  ;;  %2732 = vmatprep.subr.bf16.mxu1 %v4162_v5  ;;  %v4627_v3 = vld [vmem:[#allocation6 + $0x124] ss:$8 sps:$4 sm:$0xff]   ;;  %v4622_v4 = vld [vmem:[#allocation6 + $0x20] ss:$8 sps:$4 sm:$0xff]  }
 0x6b0   : > { %v4625_v5 = vld [vmem:[#allocation6 + $0x120] ss:$8 sps:$4 sm:$0xff]  }
 0x6b2   : > { %2692 = vmatpush1.bf16.msra.mxu0 %v4159_v10  ;;  %2733 = vmatpush1.bf16.msra.mxu1 %v4161_v11  ;;  %v4639_v10 = vld [vmem:[#allocation6 + $0x144] ss:$8 sps:$4 sm:$0xff]   ;;  %v4634_v11 = vld [vmem:[#allocation6 + $0x40] ss:$8 sps:$4 sm:$0xff]  }
 0x6b3   : > { %2693 = vmatprep.subr.bf16.mxu0 %v4168_v12  ;;  %2734 = vmatprep.subr.bf16.mxu1 %v4170_v13  ;;  %v4637_v12 = vld [vmem:[#allocation6 + $0x140] ss:$8 sps:$4 sm:$0xff]   ;;  %v4642_v13 = vld [vmem:[#allocation6 + $0x54] ss:$8 sps:$4 sm:$0xff]  }
 0x6b6   : > { %2694 = vmatpush1.bf16.msra.mxu0 %v4167_v18  ;;  %2735 = vmatpush1.bf16.msra.mxu1 %v4169_v19  ;;  %v4651_v18 = vld [vmem:[#allocation6 + $0x164] ss:$8 sps:$4 sm:$0xff]   ;;  %v4646_v19 = vld [vmem:[#allocation6 + $0x60] ss:$8 sps:$4 sm:$0xff]  }
 0x6b7   : > { %2695 = vmatprep.subr.bf16.mxu0 %v4176_v20  ;;  %2736 = vmatprep.subr.bf16.mxu1 %v4178_v21  ;;  %v4649_v20 = vld [vmem:[#allocation6 + $0x160] ss:$8 sps:$4 sm:$0xff]   ;;  %v4654_v21 = vld [vmem:[#allocation6 + $0x74] ss:$8 sps:$4 sm:$0xff]  }
 0x6ba   : > { %2696 = vmatpush1.bf16.msra.mxu0 %v4175_v28  ;;  %2737 = vmatpush1.bf16.msra.mxu1 %v4177_v29  ;;  %v4663_v28 = vld [vmem:[#allocation6 + $0x184] ss:$8 sps:$4 sm:$0xff]   ;;  %v4658_v29 = vld [vmem:[#allocation6 + $0x80] ss:$8 sps:$4 sm:$0xff]  }
 0x6bb   : > { %2697 = vmatprep.subr.bf16.mxu0 %v4184_v30  ;;  %2738 = vmatprep.subr.bf16.mxu1 %v4186_v31  ;;  %v4661_v30 = vld [vmem:[#allocation6 + $0x180] ss:$8 sps:$4 sm:$0xff]   ;;  %v4666_v31 = vld [vmem:[#allocation6 + $0x94] ss:$8 sps:$4 sm:$0xff]  }
 0x6be   : > { %2698 = vmatpush1.bf16.msra.mxu0 %v4183_v39  ;;  %2739 = vmatpush1.bf16.msra.mxu1 %v4185_v41  ;;  %v4675_v39 = vld [vmem:[#allocation6 + $0x1a4] ss:$8 sps:$4 sm:$0xff]   ;;  %v4670_v41 = vld [vmem:[#allocation6 + $0xa0] ss:$8 sps:$4 sm:$0xff]  }
 0x6bf   : > { %2699 = vmatprep.subr.bf16.mxu0 %v4192_v43  ;;  %2740 = vmatprep.subr.bf16.mxu1 %v4194_v45  ;;  %v4673_v43 = vld [vmem:[#allocation6 + $0x1a0] ss:$8 sps:$4 sm:$0xff]   ;;  %v4678_v45 = vld [vmem:[#allocation6 + $0xb4] ss:$8 sps:$4 sm:$0xff]  }
 0x6c2   : > { %2700 = vmatpush1.bf16.msra.mxu0 %v4191_v50  ;;  %2741 = vmatpush1.bf16.msra.mxu1 %v4193_v52  ;;  %v4687_v50 = vld [vmem:[#allocation6 + $0x1c4] ss:$8 sps:$4 sm:$0xff]   ;;  %v4682_v52 = vld [vmem:[#allocation6 + $0xc0] ss:$8 sps:$4 sm:$0xff]  }
 0x6c3   : > { %2701 = vmatprep.subr.bf16.mxu0 %v4200_v53  ;;  %2742 = vmatprep.subr.bf16.mxu1 %v4202_v54  ;;  %v4685_v53 = vld [vmem:[#allocation6 + $0x1c0] ss:$8 sps:$4 sm:$0xff]   ;;  %v4690_v54 = vld [vmem:[#allocation6 + $0xd4] ss:$8 sps:$4 sm:$0xff]  }
 0x6c6   : > { %2702 = vmatpush1.bf16.msra.mxu0 %v4199_v55  ;;  %2743 = vmatpush1.bf16.msra.mxu1 %v4201_v57  ;;  %v4693_v55 = vld [vmem:[#allocation6 + $0x1d4] ss:$8 sps:$4 sm:$0xff]   ;;  %v4688_v57 = vld [vmem:[#allocation6 + $0xd0] ss:$8 sps:$4 sm:$0xff]  }
 0x6c7   : > { %3613 = vmatprep.subr.bf16.mxu0 %v4612_v35  ;;  %3654 = vmatprep.subr.bf16.mxu1 %v4615_v58  ;;  %v4691_v35 = vld [vmem:[#allocation6 + $0x1d0] ss:$8 sps:$4 sm:$0xff]   ;;  %v4696_v58 = vld [vmem:[#allocation6 + $0xe4] ss:$8 sps:$4 sm:$0xff]  }
 0x6c9   : > { %2704 = vmatmul.mubr.bf16.vlgmr.msra.gmra.mrb[20].mxu0 %v5333_v25  ;;  %2745 = vmatmul.mubr.bf16.vlgmr.msra.gmra.mrb[20].mxu1 %v5333_v25  ;;  %v4631_v25 = vld [vmem:[#allocation6 + $0x130] ss:$8 sps:$4 sm:$0xff]  }
 0x6ca   : > { %3614 = vmatpush1.bf16.msra.mxu0 %v4610_v44  ;;  %3655 = vmatpush1.bf16.msra.mxu1 %v4613_v59  ;;  %v4699_v44 = vld [vmem:[#allocation6 + $0x1e4] ss:$8 sps:$4 sm:$0xff]   ;;  %v4694_v59 = vld [vmem:[#allocation6 + $0xe0] ss:$8 sps:$4 sm:$0xff]  }
 0x6cb   : > { %3615 = vmatprep.subr.bf16.mxu0 %v4618_v60  ;;  %3656 = vmatprep.subr.bf16.mxu1 %v4621_v61  ;;  %v4697_v60 = vld [vmem:[#allocation6 + $0x1e0] ss:$8 sps:$4 sm:$0xff]   ;;  %v4702_v61 = vld [vmem:[#allocation6 + $0xf4] ss:$8 sps:$4 sm:$0xff]  }
 0x6ce   : > { %3616 = vmatpush1.bf16.msra.mxu0 %v4616_v62  ;;  %3657 = vmatpush1.bf16.msra.mxu1 %v4619_v63  ;;  %v4705_v62 = vld [vmem:[#allocation6 + $0x1f4] ss:$8 sps:$4 sm:$0xff]   ;;  %v4700_v63 = vld [vmem:[#allocation6 + $0xf0] ss:$8 sps:$4 sm:$0xff]  }
 0x6cf   : > { %3617 = vmatprep.subr.bf16.mxu0 %v4624_v2  ;;  %3658 = vmatprep.subr.bf16.mxu1 %v4627_v3  ;;  %v4703_v2 = vld [vmem:[#allocation6 + $0x1f0] ss:$8 sps:$4 sm:$0xff]   ;;  %v4708_v3 = vld [vmem:[#allocation6 + $0x204] ss:$8 sps:$4 sm:$0xff]  }
 0x6d2   : > { %3618 = vmatpush1.bf16.msra.mxu0 %v4622_v4  ;;  %3659 = vmatpush1.bf16.msra.mxu1 %v4625_v5  ;;  %v4711_v4 = vld [vmem:[#allocation6 + $0x304] ss:$8 sps:$4 sm:$0xff]  }
 0x6d3   : > { %3619 = vmatprep.subr.bf16.mxu0 %v4630_v6  ;;  %3660 = vmatprep.subr.bf16.mxu1 %v4633_v7  ;;  %v5342_v5 = vld [vmem:[%s5426_s9] sm:$0xff] }
 0x6d4   : > { %v1912_v6 = vrot.slane %v5342_v5, %v5160_v40  ;;  %v1920_v7 = vrot.slane %v5342_v5, %v639_v38 }
 0x6d6   : > { %3620 = vmatpush1.bf16.msra.mxu0 %v4628_v8  ;;  %3661 = vmatpush1.bf16.msra.mxu1 %v4631_v25  ;;  %v1916_v8 = vrot.slane %v5342_v5, %v5169_v56  ;;  %v1924_v25 = vrot.slane %v5342_v5, %v643_v42 }
 0x6d7   : > { %3621 = vmatprep.subr.bf16.mxu0 %v4636_v9  ;;  %3662 = vmatprep.subr.bf16.mxu1 %v4639_v10 }
 0x6da   : > { %3622 = vmatpush1.bf16.msra.mxu0 %v4634_v11  ;;  %3663 = vmatpush1.bf16.msra.mxu1 %v4637_v12 }
 0x6db   : > { %3623 = vmatprep.subr.bf16.mxu0 %v4642_v13  ;;  %3664 = vmatprep.subr.bf16.mxu1 %v4645_v14 }
 0x6de   : > { %3624 = vmatpush1.bf16.msra.mxu0 %v4640_v15  ;;  %3665 = vmatpush1.bf16.msra.mxu1 %v4643_v16 }
 0x6df   : > { %3625 = vmatprep.subr.bf16.mxu0 %v4648_v17  ;;  %3666 = vmatprep.subr.bf16.mxu1 %v4651_v18 }
 0x6e2   : > { %3626 = vmatpush1.bf16.msra.mxu0 %v4646_v19  ;;  %3667 = vmatpush1.bf16.msra.mxu1 %v4649_v20 }
 0x6e3   : > { %3627 = vmatprep.subr.bf16.mxu0 %v4654_v21  ;;  %3668 = vmatprep.subr.bf16.mxu1 %v4657_v22 }
 0x6e6   : > { %3628 = vmatpush1.bf16.msra.mxu0 %v4652_v23  ;;  %3669 = vmatpush1.bf16.msra.mxu1 %v4655_v24 }
 0x6e7   : > { %3629 = vmatprep.subr.bf16.mxu0 %v4660_v27  ;;  %3670 = vmatprep.subr.bf16.mxu1 %v4663_v28 }
 0x6ea   : > { %3630 = vmatpush1.bf16.msra.mxu0 %v4658_v29  ;;  %3671 = vmatpush1.bf16.msra.mxu1 %v4661_v30 }
 0x6eb   : > { %3631 = vmatprep.subr.bf16.mxu0 %v4666_v31  ;;  %3672 = vmatprep.subr.bf16.mxu1 %v4669_v32 }
 0x6ee   : > { %3632 = vmatpush1.bf16.msra.mxu0 %v4664_v33  ;;  %3673 = vmatpush1.bf16.msra.mxu1 %v4667_v34 }
 0x6ef   : > { %3633 = vmatprep.subr.bf16.mxu0 %v4672_v36  ;;  %3674 = vmatprep.subr.bf16.mxu1 %v4675_v39 }
 0x6f2   : > { %3634 = vmatpush1.bf16.msra.mxu0 %v4670_v41  ;;  %3675 = vmatpush1.bf16.msra.mxu1 %v4673_v43 }
 0x6f3   : > { %3635 = vmatprep.subr.bf16.mxu0 %v4678_v45  ;;  %3676 = vmatprep.subr.bf16.mxu1 %v4681_v46 }
 0x6f6   : > { %3636 = vmatpush1.bf16.msra.mxu0 %v4676_v47  ;;  %3677 = vmatpush1.bf16.msra.mxu1 %v4679_v26 }
 0x6f7   : > { %3637 = vmatprep.subr.bf16.mxu0 %v4684_v48  ;;  %3678 = vmatprep.subr.bf16.mxu1 %v4687_v50 }
 0x6fa   : > { %3638 = vmatpush1.bf16.msra.mxu0 %v4682_v52  ;;  %3679 = vmatpush1.bf16.msra.mxu1 %v4685_v53 }
 0x6fb   : > { %3639 = vmatprep.subr.bf16.mxu0 %v4690_v54  ;;  %3680 = vmatprep.subr.bf16.mxu1 %v4693_v55 }
 0x6fe   : > { %3640 = vmatpush1.bf16.msra.mxu0 %v4688_v57  ;;  %3681 = vmatpush1.bf16.msra.mxu1 %v4691_v35 }
 0x6ff   : > { %3641 = vmatprep.subr.bf16.mxu0 %v4696_v58  ;;  %3682 = vmatprep.subr.bf16.mxu1 %v4699_v44 }
 0x702   : > { %3642 = vmatpush1.bf16.msra.mxu0 %v4694_v59  ;;  %3683 = vmatpush1.bf16.msra.mxu1 %v4697_v60 }
 0x703   : > { %3643 = vmatprep.subr.bf16.mxu0 %v4702_v61  ;;  %3684 = vmatprep.subr.bf16.mxu1 %v4705_v62 }
 0x706   : > { %3644 = vmatpush1.bf16.msra.mxu0 %v4700_v63  ;;  %3685 = vmatpush1.bf16.msra.mxu1 %v4703_v2  ;;  %v4706_v63 = vld [vmem:[#allocation6 + $0x200] ss:$8 sps:$4 sm:$0xff]  }
 0x707   : > { %3695 = vmatprep.subr.bf16.mxu0 %v4708_v3  ;;  %3736 = vmatprep.subr.bf16.mxu1 %v4711_v4  ;;  %v4709_v4 = vld [vmem:[#allocation6 + $0x300] ss:$8 sps:$4 sm:$0xff]  }
 0x75c   : > { %v2623_v9 = vpop.f32.mrb[16].mxu0  ;;  %v2664_v10 = vpop.f32.mrb[16].mxu1 }
 0x75d   : > { %v2624_v11 = vadd.f32 %v2623_v9, %v1912_v6  ;;  %v2665_v12 = vadd.f32 %v2664_v10, %v1920_v7  ;;  %v2625_v13 = vpop.f32.mrb[17].mxu0  ;;  %v2666_v14 = vpop.f32.mrb[17].mxu1  ;;  %v4714_v7 = vld [vmem:[#allocation6 + $0x214] ss:$8 sps:$4 sm:$0xff]   ;;  %v4712_v9 = vld [vmem:[#allocation6 + $0x210] ss:$8 sps:$4 sm:$0xff]  }
 0x75e   : > { %v2626_v15 = vadd.f32 %v2625_v13, %v1916_v8  ;;  %v2667_v16 = vadd.f32 %v2666_v14, %v1924_v25  ;;  %v2627_v17 = vpop.f32.mrb[18].mxu0  ;;  %v2668_v18 = vpop.f32.mrb[18].mxu1  ;;  %v4717_v25 = vld [vmem:[#allocation6 + $0x314] ss:$8 sps:$4 sm:$0xff]   ;;  %v4715_v10 = vld [vmem:[#allocation6 + $0x310] ss:$8 sps:$4 sm:$0xff]  }
 0x75f   : > { %v2761_v19 = vmul.f32 0.044715, %v2624_v11  ;;  %v2763_v20 = vmul.f32 0.044715, %v2665_v12  ;;  %v2628_v38 = vpop.f32.mrb[19].mxu0  ;;  %v2669_v21 = vpop.f32.mrb[19].mxu1 }
 0x760   : > { %v2762_v22 = vmul.f32 0.044715, %v2626_v15  ;;  %v2764_v23 = vmul.f32 0.044715, %v2667_v16  ;;  %v2753_v48 = vmul.f32 0.5, %v2624_v11  ;;  %v2754_v53 = vmul.f32 0.5, %v2626_v15 }
 0x761   : > { %v2769_v24 = vmul.f32 %v2761_v19, %v2624_v11  ;;  %v2771_v27 = vmul.f32 %v2763_v20, %v2665_v12  ;;  %v2756_v57 = vmul.f32 0.5, %v2667_v16  ;;  %v2755_v59 = vmul.f32 0.5, %v2665_v12  ;;  %v4718_v13 = vld [vmem:[#allocation6 + $0x220] ss:$8 sps:$4 sm:$0xff]   ;;  %v4724_v17 = vld [vmem:[#allocation6 + $0x230] ss:$8 sps:$4 sm:$0xff]  }
 0x762   : > { %v2770_v28 = vmul.f32 %v2762_v22, %v2626_v15  ;;  %v2772_v42 = vmul.f32 %v2764_v23, %v2667_v16  ;;  %v4721_v14 = vld [vmem:[#allocation6 + $0x320] ss:$8 sps:$4 sm:$0xff]   ;;  %v4727_v18 = vld [vmem:[#allocation6 + $0x330] ss:$8 sps:$4 sm:$0xff]   ;;  %v4732_v19 = vld [vmem:[#allocation6 + $0x244] ss:$8 sps:$4 sm:$0xff]  }
 0x763   : > { %v2777_v29 = vmul.f32 %v2769_v24, %v2624_v11  ;;  %v2779_v30 = vmul.f32 %v2771_v27, %v2665_v12  ;;  %v4735_v20 = vld [vmem:[#allocation6 + $0x344] ss:$8 sps:$4 sm:$0xff]   ;;  %v4730_v38 = vld [vmem:[#allocation6 + $0x240] ss:$8 sps:$4 sm:$0xff]   ;;  %v4738_v22 = vld [vmem:[#allocation6 + $0x254] ss:$8 sps:$4 sm:$0xff]  }
 0x764   : > { %v2778_v31 = vmul.f32 %v2770_v28, %v2626_v15  ;;  %v2780_v32 = vmul.f32 %v2772_v42, %v2667_v16  ;;  %v4733_v21 = vld [vmem:[#allocation6 + $0x340] ss:$8 sps:$4 sm:$0xff]   ;;  %v4741_v23 = vld [vmem:[#allocation6 + $0x354] ss:$8 sps:$4 sm:$0xff]   ;;  %v4736_v24 = vld [vmem:[#allocation6 + $0x250] ss:$8 sps:$4 sm:$0xff]  }
 0x765   : > { %v2785_v33 = vadd.f32 %v2777_v29, %v2624_v11  ;;  %v2787_v34 = vadd.f32 %v2779_v30, %v2665_v12  ;;  %v4720_v11 = vld [vmem:[#allocation6 + $0x224] ss:$8 sps:$4 sm:$0xff]   ;;  %v4739_v27 = vld [vmem:[#allocation6 + $0x350] ss:$8 sps:$4 sm:$0xff]   ;;  %v4742_v29 = vld [vmem:[#allocation6 + $0x260] ss:$8 sps:$4 sm:$0xff]  }
 0x766   : > { %v2786_v36 = vadd.f32 %v2778_v31, %v2626_v15  ;;  %v2788_v39 = vadd.f32 %v2780_v32, %v2667_v16  ;;  %v4723_v12 = vld [vmem:[#allocation6 + $0x324] ss:$8 sps:$4 sm:$0xff]   ;;  %v4726_v15 = vld [vmem:[#allocation6 + $0x234] ss:$8 sps:$4 sm:$0xff]   ;;  %v4745_v30 = vld [vmem:[#allocation6 + $0x360] ss:$8 sps:$4 sm:$0xff]  }
 0x767   : > { %v2793_v41 = vmul.f32 0.7978846, %v2785_v33  ;;  %v2795_v46 = vmul.f32 0.7978846, %v2787_v34  ;;  %v4729_v16 = vld [vmem:[#allocation6 + $0x334] ss:$8 sps:$4 sm:$0xff]  }
 0x768   : > { %v2794_v43 = vmul.f32 0.7978846, %v2786_v36  ;;  %v2796_v45 = vmul.f32 0.7978846, %v2788_v39  ;;  %v4744_v28 = vld [vmem:[#allocation6 + $0x264] ss:$8 sps:$4 sm:$0xff]  }
 0x769   : > { %4812 = vtanh.f32 %v2793_v41  ;;  %v4747_v42 = vld [vmem:[#allocation6 + $0x364] ss:$8 sps:$4 sm:$0xff]   ;;  %v4750_v31 = vld [vmem:[#allocation6 + $0x274] ss:$8 sps:$4 sm:$0xff]   ;;  %v4748_v33 = vld [vmem:[#allocation6 + $0x270] ss:$8 sps:$4 sm:$0xff]  }
 0x76a   : > { %4814 = vtanh.f32 %v2794_v43  ;;  %v4753_v32 = vld [vmem:[#allocation6 + $0x374] ss:$8 sps:$4 sm:$0xff]   ;;  %v1935_v34 = vsub.s32 6, %v5153_v37  ;;  %v4751_v36 = vld [vmem:[#allocation6 + $0x370] ss:$8 sps:$4 sm:$0xff]   ;;  %v1939_v41 = vsub.s32 7, %v5153_v37 }
 0x76b   : > { %4816 = vtanh.f32 %v2796_v45  ;;  %v4756_v39 = vld [vmem:[#allocation6 + $0x284] ss:$8 sps:$4 sm:$0xff]   ;;  %v1928_v45 = vrot.slane %v5342_v5, %v647_v0 }
 0x76c   : > { %4818 = vtanh.f32 %v2795_v46  ;;  %v4759_v43 = vld [vmem:[#allocation6 + $0x384] ss:$8 sps:$4 sm:$0xff]   ;;  %v1936_v46 = vrot.slane %v5342_v5, %v1935_v34  ;;  %v4789_v34 = vld [vmem:[#allocation6 + $0x3d4] ss:$8 sps:$4 sm:$0xff]  }
 0x773   : > { %v4813_v47 = vpop.eup %4812 }
 0x774   : > { %v4815_v26 = vpop.eup %4814  ;;  %v2809_v50 = vadd.f32 1.0, %v4813_v47  ;;  %v4754_v47 = vld [vmem:[#allocation6 + $0x280] ss:$8 sps:$4 sm:$0xff]  }
 0x775   : > { %v4817_v52 = vpop.eup %4816  ;;  %v2810_v54 = vadd.f32 1.0, %v4815_v26  ;;  %v4757_v26 = vld [vmem:[#allocation6 + $0x380] ss:$8 sps:$4 sm:$0xff]  }
 0x776   : > { %v4819_v55 = vpop.eup %4818  ;;  %v2812_v35 = vadd.f32 1.0, %v4817_v52  ;;  %v2817_v58 = vmul.f32 %v2809_v50, %v2753_v48  ;;  %v1932_v48 = vrot.slane %v5342_v5, %v651_v1  ;;  %v1940_v50 = vrot.slane %v5342_v5, %v1939_v41  ;;  %v4762_v52 = vld [vmem:[#allocation6 + $0x294] ss:$8 sps:$4 sm:$0xff]   ;;  %v4792_v41 = vld [vmem:[#allocation6 + $0x2e4] ss:$8 sps:$4 sm:$0xff]  }
 0x777   : > { %v2818_v44 = vmul.f32 %v2810_v54, %v2754_v53  ;;  %v2811_v60 = vadd.f32 1.0, %v4819_v55  ;;  %v4765_v53 = vld [vmem:[#allocation6 + $0x394] ss:$8 sps:$4 sm:$0xff]  }
 0x778   : > { %v2820_v61 = vmul.f32 %v2812_v35, %v2756_v57  ;;  %v2825_v6 = vpack.c.bf16 %v2817_v58, %v2817_v58 }
 0x779   : > { %v2826_v62 = vpack.c.bf16 %v2818_v44, %v2818_v44  ;;  %v2819_v2 = vmul.f32 %v2811_v60, %v2755_v59  ;;  %v4760_v44 = vld [vmem:[#allocation6 + $0x290] ss:$8 sps:$4 sm:$0xff]  }
 0x77a   : > { %v2828_v3 = vpack.c.bf16 %v2820_v61, %v2820_v61  ;;  %v4763_v59 = vld [vmem:[#allocation6 + $0x390] ss:$8 sps:$4 sm:$0xff]   ;;  %v4768_v61 = vld [vmem:[#allocation6 + $0x2a4] ss:$8 sps:$4 sm:$0xff]  }
 0x77b   : > { %3645 = vmatprep.mubr.bf16.mxu0 %v2826_v62  ;;  %v2827_v8 = vpack.c.bf16 %v2819_v2, %v2819_v2  ;;  %v4771_v62 = vld [vmem:[#allocation6 + $0x3a4] ss:$8 sps:$4 sm:$0xff]  }
 0x77c   : > { %3686 = vmatprep.mubr.bf16.mxu1 %v2828_v3  ;;  %3646 = vmatmul.mubr.bf16.vlgmr.msra.gmra.mrb[24].mxu0 %v2825_v6 }
 0x77d   : > { %3687 = vmatmul.mubr.bf16.vlgmr.msra.gmra.mrb[24].mxu1 %v2827_v8  ;;  %3696 = vmatpush1.bf16.msra.mxu0 %v4706_v63 }
 0x77e   : > { %3737 = vmatpush1.bf16.msra.mxu1 %v4709_v4  ;;  %3697 = vmatprep.subr.bf16.mxu0 %v4714_v7 }
 0x77f   : > { %3738 = vmatprep.subr.bf16.mxu1 %v4717_v25 }
 0x781   : > { %3698 = vmatpush1.bf16.msra.mxu0 %v4712_v9  ;;  %v4766_v9 = vld [vmem:[#allocation6 + $0x2a0] ss:$8 sps:$4 sm:$0xff]  }
 0x782   : > { %3739 = vmatpush1.bf16.msra.mxu1 %v4715_v10  ;;  %3699 = vmatprep.subr.bf16.mxu0 %v4720_v11 }
 0x783   : > { %3740 = vmatprep.subr.bf16.mxu1 %v4723_v12  ;;  %v4769_v12 = vld [vmem:[#allocation6 + $0x3a0] ss:$8 sps:$4 sm:$0xff]  }
 0x785   : > { %3700 = vmatpush1.bf16.msra.mxu0 %v4718_v13  ;;  %v4774_v13 = vld [vmem:[#allocation6 + $0x2b4] ss:$8 sps:$4 sm:$0xff]  }
 0x786   : > { %3741 = vmatpush1.bf16.msra.mxu1 %v4721_v14  ;;  %3701 = vmatprep.subr.bf16.mxu0 %v4726_v15 }
 0x787   : > { %3742 = vmatprep.subr.bf16.mxu1 %v4729_v16  ;;  %v4777_v16 = vld [vmem:[#allocation6 + $0x3b4] ss:$8 sps:$4 sm:$0xff]  }
 0x789   : > { %3702 = vmatpush1.bf16.msra.mxu0 %v4724_v17 }
 0x78a   : > { %3743 = vmatpush1.bf16.msra.mxu1 %v4727_v18  ;;  %3703 = vmatprep.subr.bf16.mxu0 %v4732_v19 }
 0x78b   : > { %3744 = vmatprep.subr.bf16.mxu1 %v4735_v20 }
 0x78d   : > { %3704 = vmatpush1.bf16.msra.mxu0 %v4730_v38  ;;  %v4772_v38 = vld [vmem:[#allocation6 + $0x2b0] ss:$8 sps:$4 sm:$0xff]  }
 0x78e   : > { %3745 = vmatpush1.bf16.msra.mxu1 %v4733_v21  ;;  %3705 = vmatprep.subr.bf16.mxu0 %v4738_v22  ;;  %v4775_v21 = vld [vmem:[#allocation6 + $0x3b0] ss:$8 sps:$4 sm:$0xff]   ;;  %v4780_v22 = vld [vmem:[#allocation6 + $0x2c4] ss:$8 sps:$4 sm:$0xff]  }
 0x78f   : > { %3746 = vmatprep.subr.bf16.mxu1 %v4741_v23 }
 0x791   : > { %3706 = vmatpush1.bf16.msra.mxu0 %v4736_v24 }
 0x792   : > { %3747 = vmatpush1.bf16.msra.mxu1 %v4739_v27  ;;  %3707 = vmatprep.subr.bf16.mxu0 %v4744_v28  ;;  %v4783_v27 = vld [vmem:[#allocation6 + $0x3c4] ss:$8 sps:$4 sm:$0xff]  }
 0x793   : > { %3748 = vmatprep.subr.bf16.mxu1 %v4747_v42 }
 0x795   : > { %3708 = vmatpush1.bf16.msra.mxu0 %v4742_v29 }
 0x796   : > { %3749 = vmatpush1.bf16.msra.mxu1 %v4745_v30  ;;  %3709 = vmatprep.subr.bf16.mxu0 %v4750_v31  ;;  %v4778_v31 = vld [vmem:[#allocation6 + $0x2c0] ss:$8 sps:$4 sm:$0xff]  }
 0x797   : > { %3750 = vmatprep.subr.bf16.mxu1 %v4753_v32  ;;  %v4781_v32 = vld [vmem:[#allocation6 + $0x3c0] ss:$8 sps:$4 sm:$0xff]  }
 0x799   : > { %3710 = vmatpush1.bf16.msra.mxu0 %v4748_v33  ;;  %v4786_v33 = vld [vmem:[#allocation6 + $0x2d4] ss:$8 sps:$4 sm:$0xff]  }
 0x79a   : > { %3751 = vmatpush1.bf16.msra.mxu1 %v4751_v36  ;;  %3711 = vmatprep.subr.bf16.mxu0 %v4756_v39  ;;  %v4784_v36 = vld [vmem:[#allocation6 + $0x2d0] ss:$8 sps:$4 sm:$0xff]  }
 0x79b   : > { %3752 = vmatprep.subr.bf16.mxu1 %v4759_v43  ;;  %v4787_v39 = vld [vmem:[#allocation6 + $0x3d0] ss:$8 sps:$4 sm:$0xff]   ;;  %v4795_v43 = vld [vmem:[#allocation6 + $0x3e4] ss:$8 sps:$4 sm:$0xff]  }
 0x79c   : > { %v2705_v54 = vpop.f32.mrb[20].mxu0  ;;  %v2746_v55 = vpop.f32.mrb[20].mxu1 }
 0x79d   : > { %v5364_v57 = vadd.f32 %v2705_v54, %v1928_v45  ;;  %v5366_v0 = vadd.f32 %v2746_v55, %v1936_v46  ;;  %v2707_v35 = vpop.f32.mrb[21].mxu0  ;;  %v2748_v58 = vpop.f32.mrb[21].mxu1  ;;  %3712 = vmatpush1.bf16.msra.mxu0 %v4754_v47  ;;  %v4790_v45 = vld [vmem:[#allocation6 + $0x2e0] ss:$8 sps:$4 sm:$0xff]   ;;  %v4798_v47 = vld [vmem:[#allocation6 + $0x2f4] ss:$8 sps:$4 sm:$0xff]  }
 0x79e   : > { %v5368_v60 = vadd.f32 %v2707_v35, %v1932_v48  ;;  %v5370_v37 = vadd.f32 %v2748_v58, %v1940_v50  ;;  %3753 = vmatpush1.bf16.msra.mxu1 %v4757_v26  ;;  %v2709_v1 = vpop.f32.mrb[22].mxu0  ;;  %v2750_v5 = vpop.f32.mrb[22].mxu1  ;;  %3713 = vmatprep.subr.bf16.mxu0 %v4762_v52  ;;  %v4793_v46 = vld [vmem:[#allocation6 + $0x3e0] ss:$8 sps:$4 sm:$0xff]   ;;  %v4801_v48 = vld [vmem:[#allocation6 + $0x3f4] ss:$8 sps:$4 sm:$0xff]  }
 0x79f   : > { %v2765_v63 = vmul.f32 0.044715, %v5364_v57  ;;  %v2767_v2 = vmul.f32 0.044715, %v5366_v0  ;;  %v2710_v3 = vpop.f32.mrb[23].mxu0  ;;  %v2751_v4 = vpop.f32.mrb[23].mxu1  ;;  %3754 = vmatprep.subr.bf16.mxu1 %v4765_v53 }
 0x7a0   : > { %v2766_v6 = vmul.f32 0.044715, %v5368_v60  ;;  %v2768_v7 = vmul.f32 0.044715, %v5370_v37  ;;  %v2757_v52 = vmul.f32 0.5, %v5364_v57  ;;  %v2758_v35 = vmul.f32 0.5, %v5368_v60 }
 0x7a1   : > { %v2773_v8 = vmul.f32 %v2765_v63, %v5364_v57  ;;  %v2775_v25 = vmul.f32 %v2767_v2, %v5366_v0  ;;  %3714 = vmatpush1.bf16.msra.mxu0 %v4760_v44  ;;  %v4796_v55 = vld [vmem:[#allocation6 + $0x2f0] ss:$8 sps:$4 sm:$0xff]   ;;  %v2760_v1 = vmul.f32 0.5, %v5370_v37  ;;  %v2759_v63 = vmul.f32 0.5, %v5366_v0 }
 0x7a2   : > { %v2774_v10 = vmul.f32 %v2766_v6, %v5368_v60  ;;  %v2776_v11 = vmul.f32 %v2768_v7, %v5370_v37  ;;  %3755 = vmatpush1.bf16.msra.mxu1 %v4763_v59  ;;  %3715 = vmatprep.subr.bf16.mxu0 %v4768_v61  ;;  %v4799_v59 = vld [vmem:[#allocation6 + $0x3f0] ss:$8 sps:$4 sm:$0xff]  }
 0x7a3   : > { %v2781_v14 = vmul.f32 %v2773_v8, %v5364_v57  ;;  %v2783_v15 = vmul.f32 %v2775_v25, %v5366_v0  ;;  %3756 = vmatprep.subr.bf16.mxu1 %v4771_v62 }
 0x7a4   : > { %v2782_v17 = vmul.f32 %v2774_v10, %v5368_v60  ;;  %v2784_v18 = vmul.f32 %v2776_v11, %v5370_v37 }
 0x7a5   : > { %v2789_v19 = vadd.f32 %v2781_v14, %v5364_v57  ;;  %v2791_v20 = vadd.f32 %v2783_v15, %v5366_v0  ;;  %3716 = vmatpush1.bf16.msra.mxu0 %v4766_v9 }
 0x7a6   : > { %3757 = vmatpush1.bf16.msra.mxu1 %v4769_v12  ;;  %3717 = vmatprep.subr.bf16.mxu0 %v4774_v13  ;;  %v2790_v23 = vadd.f32 %v2782_v17, %v5368_v60  ;;  %v2792_v24 = vadd.f32 %v2784_v18, %v5370_v37  ;;  %v2961_v37 = vld [vmem:[%s5428_s11] sm:$0x3] }
 0x7a7   : > { %3758 = vmatprep.subr.bf16.mxu1 %v4777_v16  ;;  %v2797_v28 = vmul.f32 0.7978846, %v2789_v19  ;;  %v2799_v30 = vmul.f32 0.7978846, %v2791_v20  ;;  %v2966_v8 = vrot.slane %v2961_v37, %v5160_v40  ;;  %v2970_v0 = vrot.slane %v2961_v37, %v5169_v56 }
 0x7a8   : > { %v2798_v42 = vmul.f32 0.7978846, %v2790_v23  ;;  %v2800_v29 = vmul.f32 0.7978846, %v2792_v24 }
 0x7a9   : > { %3718 = vmatpush1.bf16.msra.mxu0 %v4772_v38  ;;  %4820 = vtanh.f32 %v2797_v28 }
 0x7aa   : > { %3759 = vmatpush1.bf16.msra.mxu1 %v4775_v21  ;;  %3719 = vmatprep.subr.bf16.mxu0 %v4780_v22  ;;  %4822 = vtanh.f32 %v2798_v42 }
 0x7ab   : > { %3760 = vmatprep.subr.bf16.mxu1 %v4783_v27  ;;  %4824 = vtanh.f32 %v2800_v29 }
 0x7ac   : > { %4826 = vtanh.f32 %v2799_v30 }
 0x7ad   : > { %3720 = vmatpush1.bf16.msra.mxu0 %v4778_v31 }
 0x7ae   : > { %3761 = vmatpush1.bf16.msra.mxu1 %v4781_v32  ;;  %3721 = vmatprep.subr.bf16.mxu0 %v4786_v33 }
 0x7af   : > { %3762 = vmatprep.subr.bf16.mxu1 %v4789_v34 }
 0x7b1   : > { %3722 = vmatpush1.bf16.msra.mxu0 %v4784_v36 }
 0x7b2   : > { %3763 = vmatpush1.bf16.msra.mxu1 %v4787_v39  ;;  %3723 = vmatprep.subr.bf16.mxu0 %v4792_v41 }
 0x7b3   : > { %v4821_v26 = vpop.eup %4820  ;;  %3764 = vmatprep.subr.bf16.mxu1 %v4795_v43 }
 0x7b4   : > { %v4823_v50 = vpop.eup %4822  ;;  %v2813_v53 = vadd.f32 1.0, %v4821_v26 }
 0x7b5   : > { %v4825_v54 = vpop.eup %4824  ;;  %3724 = vmatpush1.bf16.msra.mxu0 %v4790_v45  ;;  %v2814_v58 = vadd.f32 1.0, %v4823_v50 }
 0x7b6   : > { %v4827_v44 = vpop.eup %4826  ;;  %3765 = vmatpush1.bf16.msra.mxu1 %v4793_v46  ;;  %3725 = vmatprep.subr.bf16.mxu0 %v4798_v47  ;;  %v2816_v5 = vadd.f32 1.0, %v4825_v54  ;;  %v2821_v61 = vmul.f32 %v2813_v53, %v2757_v52 }
 0x7b7   : > { %3766 = vmatprep.subr.bf16.mxu1 %v4801_v48  ;;  %v2822_v62 = vmul.f32 %v2814_v58, %v2758_v35  ;;  %v2815_v57 = vadd.f32 1.0, %v4827_v44 }
 0x7b8   : > { %v2824_v2 = vmul.f32 %v2816_v5, %v2760_v1  ;;  %v2829_v6 = vpack.c.bf16 %v2821_v61, %v2821_v61 }
 0x7b9   : > { %3726 = vmatpush1.bf16.msra.mxu0 %v4796_v55  ;;  %v2830_v3 = vpack.c.bf16 %v2822_v62, %v2822_v62  ;;  %v2823_v4 = vmul.f32 %v2815_v57, %v2759_v63 }
 0x7ba   : > { %3767 = vmatpush1.bf16.msra.mxu1 %v4799_v59  ;;  %v2832_v60 = vpack.c.bf16 %v2824_v2, %v2824_v2 }
 0x7bb   : > { %3727 = vmatprep.mubr.bf16.mxu0 %v2830_v3  ;;  %v2831_v7 = vpack.c.bf16 %v2823_v4, %v2823_v4 }
 0x7bc   : > { %3768 = vmatprep.mubr.bf16.mxu1 %v2832_v60  ;;  %3728 = vmatmul.mubr.bf16.vlgmr.msra.gmra.mrb[28].mxu0 %v2829_v6 }
 0x7bd   : > { %3769 = vmatmul.mubr.bf16.vlgmr.msra.gmra.mrb[28].mxu1 %v2831_v7 }
 0x84f   : > { %v3647_v25 = vpop.f32.mrb[24].mxu0 }
 0x850   : > { %v3648_v9 = vadd.f32 %v3647_v25, %v2966_v8  ;;  %v3688_v10 = vpop.f32.mrb[24].mxu1  ;;  %v3649_v11 = vpop.f32.mrb[25].mxu0 }
 0x851   : > { %v3650_v12 = vadd.f32 %v3649_v11, %v2970_v0  ;;  %v3690_v13 = vpop.f32.mrb[25].mxu1  ;;  %v3651_v14 = vpop.f32.mrb[26].mxu0 }
 0x852   : > { %v3689_v15 = vadd.f32 %v3688_v10, %v3648_v9  ;;  %v3692_v16 = vpop.f32.mrb[26].mxu1  ;;  %v3652_v17 = vpop.f32.mrb[27].mxu0 }
 0x853   : > { %v3691_v18 = vadd.f32 %v3690_v13, %v3650_v12  ;;  %v3693_v19 = vpop.f32.mrb[27].mxu1 }
 0x88f   : > { %v3729_v20 = vpop.f32.mrb[28].mxu0 }
 0x890   : > { %v3730_v38 = vadd.f32 %v3729_v20, %v3689_v15  ;;  %v3770_v21 = vpop.f32.mrb[28].mxu1  ;;  %v3731_v22 = vpop.f32.mrb[29].mxu0 }
 0x891   : > { %v3732_v23 = vadd.f32 %v3731_v22, %v3691_v18  ;;  %v3772_v24 = vpop.f32.mrb[29].mxu1  ;;  %v3733_v27 = vpop.f32.mrb[30].mxu0 }
 0x892   : > { %v3771_v28 = vadd.f32 %v3770_v21, %v3730_v38  ;;  %v3774_v42 = vpop.f32.mrb[30].mxu1  ;;  %v3734_v29 = vpop.f32.mrb[31].mxu0 }
 0x893   : > { %v3773_v30 = vadd.f32 %v3772_v24, %v3732_v23  ;;  %v3775_v31 = vpop.f32.mrb[31].mxu1 }
 0x894   : > { %v3777_v32 = vadd.f32 %v3771_v28, %v5327_v51  ;;  %v3779_v51 = vld [vmem:[%s5429_s12] sm:$0x3] }
 0x895   : > { %v3778_v33 = vadd.f32 %v3773_v30, %v5325_v49  ;;  %v3780_v49 = vld [vmem:[%s5446_s26] sm:$0x3]  ;;  %v3801_v52 = vrot.slane %v3779_v51, %v5160_v40  ;;  %v3805_v53 = vrot.slane %v3779_v51, %v5169_v56 }
 0x896   : > { %v3814_v55 = vrot.slane %v3780_v49, %v5160_v40  ;;  %v3818_v35 = vrot.slane %v3780_v49, %v5169_v56 }
 0x897   : > { %v3781_v34 = vadd.f32 %v3778_v33, %v3777_v32 }
 0x899   : > { %3782 = vadd.xlane.f32.xlu0 %v3781_v34 }
 0x926   : > { %v3783_v36 = vpop.xlane.xlu0 %3782 }
 0x927   : > { %v3784_v39 = vmul.f32 0.00390625, %v3783_v36 }
 0x929   : > { %v3785_v41 = vsub.f32 %v3777_v32, %v3784_v39  ;;  %v3786_v43 = vsub.f32 %v3778_v33, %v3784_v39 }
 0x92b   : > { %v3787_v45 = vmul.f32 %v3785_v41, %v3785_v41  ;;  %v3788_v46 = vmul.f32 %v3786_v43, %v3786_v43 }
 0x92d   : > { %v3789_v47 = vadd.f32 %v3788_v46, %v3787_v45 }
 0x92f   : > { %3790 = vadd.xlane.f32.xlu1 %v3789_v47 }
 0x9bc   : > { %v3791_v26 = vpop.xlane.xlu1 %3790 }
 0x9bd   : > { %v3792_v48 = vmul.f32 0.00390625, %v3791_v26 }
 0x9bf   : > { %v3793_v50 = vadd.f32 1e-05, %v3792_v48 }
 0x9c1   : > { %4828 = vrsqrt.f32 %v3793_v50 }
 0x9cb   : > { %v4829_v54 = vpop.eup %4828 }
 0x9cc   : > { %v3795_v58 = vmul.f32 %v4829_v54, %v3785_v41  ;;  %v3796_v44 = vmul.f32 %v4829_v54, %v3786_v43 }
 0x9ce   : > { %v3808_v59 = vmul.f32 %v3801_v52, %v3795_v58  ;;  %v3809_v1 = vmul.f32 %v3805_v53, %v3796_v44 }
 0x9d0   : > { %v3821_v5 = vadd.f32 %v3814_v55, %v3808_v59  ;;  %v3822_v61 = vadd.f32 %v3818_v35, %v3809_v1 }
 0x9d2   : > { %v4336_v62 = vpack.c.bf16 %v3822_v61, %v3821_v5 }
 0x9d4   : > { %3831 = vst [vmem:[%s525_s21] sm:$0xff] %v4336_v62 }
 0x9d5 PF: > { %s5448_s15 = sld [smem:[#allocation9_spill]] }
 0x9db   : > { %s26_s29 = sadd.s32 1, %s5448_s15  }
 0x9dc   : > { %p23_p13 = scmp.ge.s32.totalorder %s26_s29, 4  }
 0x9de   :  { %25 = sbr.rel (!%p23_p13) target bundleno = 5 (0x5), region = 122 }
 0x9e5   :  { %3853 = vsyncpa [#allocation3], 1 }
 0x9e6   :  { %3855 = vsyncpa [#allocation3 + $0x1], 1 }
 0x9e7   :  { %3856 = vsyncpa [#allocation5], 1 }

</bundles_post_ra>
